<compile_context>
chip_gen: v6e
topology: v6e:2x2x1
jax: 0.10.0
libtpu: 0.0.40
codegen_flags: <defaults>
</compile_context>

<pallas_src>
import math
import functools

import jax
import jax.numpy as jnp
from jax.experimental import pallas as pl
from jax.experimental.pallas import tpu as pltpu

EPS = 1e-5  # torch.nn.LayerNorm default eps

_CP = pltpu.CompilerParams(
    dimension_semantics=("parallel", "parallel"),
    vmem_limit_bytes=64 * 1024 * 1024,
)


# ------------------------------ in-kernel helpers -----------------------------


def _ln(x, g, b):
    mu = jnp.mean(x, axis=-1, keepdims=True)
    var = jnp.mean(jnp.square(x - mu), axis=-1, keepdims=True)
    return (x - mu) * jax.lax.rsqrt(var + EPS) * g + b


def _mha(n_head, q, kv, bias, qm, wq_ref, wk_ref, wv_ref, wo_ref, bo_ref):
    """Multi-head attention + output projection + residual. Returns (out, attn)."""
    _, D = q.shape
    dk = D // n_head
    scale = 1.0 / math.sqrt(dk)

    qb = q.astype(jnp.bfloat16)
    kb = kv.astype(jnp.bfloat16)

    # Per-head projections (full-D contraction, head-major weights), stacked so the
    # score / context matmuls are single leading-batch einsums.
    Qh = jnp.stack([jnp.dot(qb, wq_ref[h], preferred_element_type=jnp.float32)
                    for h in range(n_head)], axis=0)                  # (H, tq, dk)
    Kh = jnp.stack([jnp.dot(kb, wk_ref[h], preferred_element_type=jnp.float32)
                    for h in range(n_head)], axis=0)                  # (H, Tk, dk)
    Vh = jnp.stack([jnp.dot(kb, wv_ref[h], preferred_element_type=jnp.float32)
                    for h in range(n_head)], axis=0)                  # (H, Tk, dk)

    s = jnp.einsum("hqd,hkd->hqk",
                   (Qh * scale).astype(jnp.bfloat16),
                   Kh.astype(jnp.bfloat16),
                   preferred_element_type=jnp.float32)                # (H, tq, Tk)
    s = s + bias[None, :, :]                                          # additive mask
    s = s - jnp.max(s, axis=-1, keepdims=True)
    e = jnp.exp(s)
    a = e * pl.reciprocal(jnp.sum(e, axis=-1, keepdims=True), approx=True)
    a = a * qm[None, :, :]                                            # query-side mask

    ctx = jnp.einsum("hqk,hkd->hqd",
                     a.astype(jnp.bfloat16), Vh.astype(jnp.bfloat16),
                     preferred_element_type=jnp.float32)              # (H, tq, dk)

    out = bo_ref[...]                                                 # (1, D) broadcast
    for h in range(n_head):                                           # O-proj, no concat
        out = out + jnp.dot(ctx[h].astype(jnp.bfloat16), wo_ref[h],
                            preferred_element_type=jnp.float32)
    return out + q, a


def _ffn(x, qm, w1_ref, b1_ref, w2_ref, b2_ref):
    h = jnp.dot(x.astype(jnp.bfloat16), w1_ref[...],
                preferred_element_type=jnp.float32) + b1_ref[...]
    h = jnp.maximum(h, 0.0)
    y = jnp.dot(h.astype(jnp.bfloat16), w2_ref[...],
                preferred_element_type=jnp.float32) + b2_ref[...]
    return x + y * qm


# ---------------------------------- kernels -----------------------------------


def _fft_block_kernel(n_head,
                      q_ref, kv_ref, bias_ref, qm_ref,
                      wq_ref, wk_ref, wv_ref, wo_ref, bo_ref,
                      g1_ref, b1_ref,
                      w1_ref, fb1_ref, w2_ref, fb2_ref,
                      g2_ref, b2_ref,
                      out_ref, attn_ref):
    q = q_ref[0]                               # (tq, D)
    kv = kv_ref[0]                             # (Tk, D)
    bias = bias_ref[0].astype(jnp.float32)     # (tq, Tk)
    qm = qm_ref[0]                             # (tq, 1)
    x, a = _mha(n_head, q, kv, bias, qm, wq_ref, wk_ref, wv_ref, wo_ref, bo_ref)
    attn_ref[0] = a.astype(attn_ref.dtype)
    x = _ln(x, g1_ref[...], b1_ref[...])
    x = _ffn(x, qm, w1_ref, fb1_ref, w2_ref, fb2_ref)
    out_ref[0] = _ln(x, g2_ref[...], b2_ref[...]).astype(out_ref.dtype)


def _fft_block_add_kernel(n_head,
                          q_ref, kv_ref, bias_ref, qm_ref, mem_ref,
                          wq_ref, wk_ref, wv_ref, wo_ref, bo_ref,
                          g1_ref, b1_ref, ga_ref, ba_ref,
                          w1_ref, fb1_ref, w2_ref, fb2_ref,
                          g2_ref, b2_ref,
                          out_ref, attn_ref):
    q = q_ref[0]
    kv = kv_ref[0]
    bias = bias_ref[0].astype(jnp.float32)
    qm = qm_ref[0]
    x, a = _mha(n_head, q, kv, bias, qm, wq_ref, wk_ref, wv_ref, wo_ref, bo_ref)
    attn_ref[0] = a.astype(attn_ref.dtype)
    x = _ln(x, g1_ref[...], b1_ref[...])
    # Add_norm: LayerNorm(x + memory_tile * query_mask)   (dropout = identity)
    x = _ln(x + mem_ref[0] * qm, ga_ref[...], ba_ref[...])
    x = _ffn(x, qm, w1_ref, fb1_ref, w2_ref, fb2_ref)
    out_ref[0] = _ln(x, g2_ref[...], b2_ref[...]).astype(out_ref.dtype)


def _ln_kernel(x_ref, g_ref, b_ref, out_ref):
    out_ref[0] = _ln(x_ref[0], g_ref[...], b_ref[...]).astype(out_ref.dtype)


# ---------------------------------- wrappers ----------------------------------


def _pick_tile(T, target=128):
    """Largest tile <= target that divides T (keeping the sublane dim 8-aligned)."""
    if T <= target:
        return T
    for t in range(target, 7, -1):
        if T % t == 0 and t % 8 == 0:
            return t
    return T


def _full_spec(arr):
    return pl.BlockSpec(arr.shape, lambda b, i: (0,) * arr.ndim)


def fused_fft_block(x, bias, qm, p, n_head, memory=None):
    """One fused fft_block (memory=None) or fft_block_add.  Returns (out, attn)."""
    B, T, D = x.shape
    H = n_head
    tq = _pick_tile(T)
    grid = (B, T // tq)

    data_specs = [
        pl.BlockSpec((1, tq, D), lambda b, i: (b, i, 0)),   # query tile
        pl.BlockSpec((1, T, D), lambda b, i: (b, 0, 0)),    # full keys/values
        pl.BlockSpec((1, tq, T), lambda b, i: (b, i, 0)),   # additive mask bias (bf16)
        pl.BlockSpec((1, tq, 1), lambda b, i: (b, i, 0)),   # query mask
    ]

    a_p, ln1, ffn, ln2 = p["attn"], p["ln1"], p["ffn"], p["ln2"]
    if memory is None:
        kernel = functools.partial(_fft_block_kernel, n_head)
        weights = [a_p["wq"], a_p["wk"], a_p["wv"], a_p["wo"], a_p["bo"],
                   ln1["g"], ln1["b"],
                   ffn["w1"], ffn["b1"], ffn["w2"], ffn["b2"],
                   ln2["g"], ln2["b"]]
        operands = [x, x, bias, qm] + weights
        in_specs = data_specs + [_full_spec(w) for w in weights]
    else:
        add_ln = p["add_ln"]
        kernel = functools.partial(_fft_block_add_kernel, n_head)
        weights = [a_p["wq"], a_p["wk"], a_p["wv"], a_p["wo"], a_p["bo"],
                   ln1["g"], ln1["b"], add_ln["g"], add_ln["b"],
                   ffn["w1"], ffn["b1"], ffn["w2"], ffn["b2"],
                   ln2["g"], ln2["b"]]
        operands = [x, x, bias, qm, memory] + weights
        in_specs = (data_specs
                    + [pl.BlockSpec((1, tq, D), lambda b, i: (b, i, 0))]
                    + [_full_spec(w) for w in weights])

    out, attn = pl.pallas_call(
        kernel,
        grid=grid,
        in_specs=in_specs,
        out_specs=(
            pl.BlockSpec((1, tq, D), lambda b, i: (b, i, 0)),
            pl.BlockSpec((1, H, tq, T), lambda b, i: (b, 0, i, 0)),
        ),
        out_shape=(
            jax.ShapeDtypeStruct((B, T, D), x.dtype),
            jax.ShapeDtypeStruct((B, H, T, T), jnp.float32),
        ),
        compiler_params=_CP,
    )(*operands)
    return out, attn


def layernorm(x, ln_p):
    B, T, D = x.shape
    tq = _pick_tile(T)
    return pl.pallas_call(
        _ln_kernel,
        grid=(B, T // tq),
        in_specs=[pl.BlockSpec((1, tq, D), lambda b, i: (b, i, 0)),
                  pl.BlockSpec((1, D), lambda b, i: (0, 0)),
                  pl.BlockSpec((1, D), lambda b, i: (0, 0))],
        out_specs=pl.BlockSpec((1, tq, D), lambda b, i: (b, i, 0)),
        out_shape=jax.ShapeDtypeStruct((B, T, D), x.dtype),
        compiler_params=_CP,
    )(x, ln_p["g"], ln_p["b"])


# ----------------------------- module forward (glue) --------------------------


def phone_autoregressive_decoder_layer(params, query, memory, pad_mask, dur_mask,
                                       query_mask, n_head):
    """decoder_cache=None path of Phone_Autoaggressive_DecoderLayer.forward."""
    B, T, D = query.shape
    Tm = memory.shape[1]
    assert Tm >= T, "memory must have at least as many frames as the query"
    mem_s = memory[:, Tm - T:, :]                       # Add_norm uses memory[:, -T:, :]

    # torch: mask.eq(0) marks masked positions -> pre-scaled additive bias (bf16)
    pad_bias = jnp.where(pad_mask == 0, -1e9, 0.0).astype(jnp.bfloat16)
    dur_bias = jnp.where(dur_mask == 0, -1e9, 0.0).astype(jnp.bfloat16)
    qm = query_mask.astype(jnp.float32)[..., None]      # (B, T, 1)

    # normalize_before
    x = layernorm(query, params["norm"])

    attn_list = []
    # pre_fft_block (fft_block_add): attn -> ln1 -> Add_norm(memory) -> ffn -> ln2
    out, attns = fused_fft_block(x, pad_bias, qm, params["pre"], n_head, memory=mem_s)
    attn_list.append(attns)

    # 5 x fft_block: attn -> ln1 -> ffn -> ln2
    for p in params["blocks"]:
        out, attns = fused_fft_block(out, dur_bias, qm, p, n_head)
        attn_list.append(attns)

    new_cache = None
    return out, attn_list, new_cache


# ----------------------- deterministic parameter init -------------------------


def init_params(key, D, n_head, n_blocks=5, ffn_hidden=None):
    ffn_hidden = ffn_hidden or 4 * D
    dk = D // n_head
    keys = iter(jax.random.split(key, 256))

    def dense(shape):
        return jax.random.normal(next(keys), shape, jnp.float32) * 0.02

    def attn_p():
        # nn.Linear-style (D, D) weights stored head-major + bf16 for the kernel.
        wq = dense((D, D)).reshape(D, n_head, dk).transpose(1, 0, 2)   # (H, D, dk)
        wk = dense((D, D)).reshape(D, n_head, dk).transpose(1, 0, 2)
        wv = dense((D, D)).reshape(D, n_head, dk).transpose(1, 0, 2)
        wo = dense((D, D)).reshape(n_head, dk, D)                      # (H, dk, D)
        return dict(wq=wq.astype(jnp.bfloat16), wk=wk.astype(jnp.bfloat16),
                    wv=wv.astype(jnp.bfloat16), wo=wo.astype(jnp.bfloat16),
                    bo=jnp.zeros((1, D), jnp.float32))

    def ln_p():
        return dict(g=jnp.ones((1, D), jnp.float32), b=jnp.zeros((1, D), jnp.float32))

    def ffn_p():
        return dict(w1=dense((D, ffn_hidden)).astype(jnp.bfloat16),
                    b1=jnp.zeros((1, ffn_hidden), jnp.float32),
                    w2=dense((ffn_hidden, D)).astype(jnp.bfloat16),
                    b2=jnp.zeros((1, D), jnp.float32))

    return dict(
        norm=ln_p(),
        pre=dict(attn=attn_p(), ln1=ln_p(), add_ln=ln_p(), ffn=ffn_p(), ln2=ln_p()),
        blocks=[dict(attn=attn_p(), ln1=ln_p(), ffn=ffn_p(), ln2=ln_p())
                for _ in range(n_blocks)],
    )


# ------------------------------------ main -------------------------------------

if __name__ == "__main__":
    B, T, D, H = 2, 8, 32, 4

    key = jax.random.PRNGKey(0)
    k_q, k_m, k_p = jax.random.split(key, 3)

    query = jax.random.normal(k_q, (B, T, D), jnp.float32)
    memory = jax.random.normal(k_m, (B, T, D), jnp.float32)
    pad_mask = jnp.ones((B, T, T), jnp.int32)                                   # no padding
    dur_mask = jnp.broadcast_to(jnp.tril(jnp.ones((T, T))), (B, T, T)).astype(jnp.int32)
    query_mask = jnp.ones((B, T), jnp.float32).at[1, -2:].set(0.0)

    params = init_params(k_p, D, H)

    fwd = jax.jit(functools.partial(phone_autoregressive_decoder_layer, n_head=H))
    out, attn_list, new_cache = fwd(params, query, memory, pad_mask, dur_mask, query_mask)

    jax.block_until_ready(out)
    for a in attn_list:
        jax.block_until_ready(a)

    assert out.shape == (B, T, D)
    assert len(attn_list) == 6
    assert all(a.shape == (B, H, T, T) for a in attn_list)
    assert new_cache is None
    assert bool(jnp.all(jnp.isfinite(out)))
    print("KERNEL_OK")
</pallas_src>

<mosaic_0001>
module attributes {stable_mosaic.version = 11 : i64} {
  func.func @_ln_kernel(%arg0: i32, %arg1: i32, %arg2: memref<1x8x32xf32, #tpu.memory_space<vmem>>, %arg3: memref<1x32xf32, #tpu.memory_space<vmem>>, %arg4: memref<1x32xf32, #tpu.memory_space<vmem>>, %arg5: memref<1x8x32xf32, #tpu.memory_space<vmem>>) attributes {dimension_semantics = [#tpu.dimension_semantics<parallel>, #tpu.dimension_semantics<parallel>], iteration_bounds = array<i64: 2, 1>, scalar_prefetch = 0 : i64, scratch_operands = 0 : i64, tpu.core_type = #tpu.core_type<tc>, window_params = [{transform_indices = @transform_0, window_bounds = array<i64: 1, 8, 32>}, {pipeline_mode = #tpu.pipeline_mode<synchronous>, transform_indices = @transform_1, window_bounds = array<i64: 1, 32>}, {pipeline_mode = #tpu.pipeline_mode<synchronous>, transform_indices = @transform_2, window_bounds = array<i64: 1, 32>}, {transform_indices = @transform_3, window_bounds = array<i64: 1, 8, 32>}]} {
    %c0 = arith.constant 0 : index
    %c0_0 = arith.constant 0 : index
    %c0_1 = arith.constant 0 : index
    %0 = vector.load %arg2[%c0, %c0_0, %c0_1] : memref<1x8x32xf32, #tpu.memory_space<vmem>>, vector<1x8x32xf32>
    %1 = vector.shape_cast %0 : vector<1x8x32xf32> to vector<8x32xf32>
    %c0_2 = arith.constant 0 : index
    %c0_3 = arith.constant 0 : index
    %2 = vector.load %arg3[%c0_2, %c0_3] : memref<1x32xf32, #tpu.memory_space<vmem>>, vector<1x32xf32>
    %c0_4 = arith.constant 0 : index
    %c0_5 = arith.constant 0 : index
    %3 = vector.load %arg4[%c0_4, %c0_5] : memref<1x32xf32, #tpu.memory_space<vmem>>, vector<1x32xf32>
    %cst = arith.constant dense<0.000000e+00> : vector<8xf32>
    %4 = vector.multi_reduction <add>, %1, %cst [1] : vector<8x32xf32> to vector<8xf32>
    %5 = vector.shape_cast %4 : vector<8xf32> to vector<8x1xf32>
    %cst_6 = arith.constant 3.200000e+01 : f32
    %6 = vector.broadcast %cst_6 : f32 to vector<8x1xf32>
    %7 = arith.divf %5, %6 : vector<8x1xf32>
    %8 = vector.broadcast %7 : vector<8x1xf32> to vector<8x32xf32>
    %9 = arith.subf %1, %8 : vector<8x32xf32>
    %10 = arith.mulf %9, %9 : vector<8x32xf32>
    %cst_7 = arith.constant dense<0.000000e+00> : vector<8xf32>
    %11 = vector.multi_reduction <add>, %10, %cst_7 [1] : vector<8x32xf32> to vector<8xf32>
    %12 = vector.shape_cast %11 : vector<8xf32> to vector<8x1xf32>
    %cst_8 = arith.constant 3.200000e+01 : f32
    %13 = vector.broadcast %cst_8 : f32 to vector<8x1xf32>
    %14 = arith.divf %12, %13 : vector<8x1xf32>
    %15 = vector.broadcast %7 : vector<8x1xf32> to vector<8x32xf32>
    %16 = arith.subf %1, %15 : vector<8x32xf32>
    %cst_9 = arith.constant 9.99999974E-6 : f32
    %17 = vector.broadcast %cst_9 : f32 to vector<8x1xf32>
    %18 = arith.addf %14, %17 : vector<8x1xf32>
    %19 = math.rsqrt %18 : vector<8x1xf32>
    %20 = vector.broadcast %19 : vector<8x1xf32> to vector<8x32xf32>
    %21 = arith.mulf %16, %20 : vector<8x32xf32>
    %22 = vector.broadcast %2 : vector<1x32xf32> to vector<8x32xf32>
    %23 = arith.mulf %21, %22 : vector<8x32xf32>
    %24 = vector.broadcast %3 : vector<1x32xf32> to vector<8x32xf32>
    %25 = arith.addf %23, %24 : vector<8x32xf32>
    %c0_10 = arith.constant 0 : index
    %c0_11 = arith.constant 0 : index
    %c0_12 = arith.constant 0 : index
    %26 = vector.load %arg5[%c0_10, %c0_11, %c0_12] : memref<1x8x32xf32, #tpu.memory_space<vmem>>, vector<1x8x32xf32>
    %27 = vector.shape_cast %26 : vector<1x8x32xf32> to vector<8x32xf32>
    %28 = vector.shape_cast %25 : vector<8x32xf32> to vector<1x8x32xf32>
    tpu.vector_store %arg5[%c0_10, %c0_11, %c0_12], %28 {strides = array<i32>} : memref<1x8x32xf32, #tpu.memory_space<vmem>>, vector<1x8x32xf32>,
    return
  }
  func.func @transform_0(%arg0: i32, %arg1: i32) -> (i32, i32, i32) {
    %c0_i32 = arith.constant 0 : i32
    %c0_i32_0 = arith.constant 0 : i32
    return %arg0, %arg1, %c0_i32 : i32, i32, i32
  }
  func.func @transform_1(%arg0: i32, %arg1: i32) -> (i32, i32) {
    %c0_i32 = arith.constant 0 : i32
    %c0_i32_0 = arith.constant 0 : i32
    %c0_i32_1 = arith.constant 0 : i32
    return %c0_i32, %c0_i32_0 : i32, i32
  }
  func.func @transform_2(%arg0: i32, %arg1: i32) -> (i32, i32) {
    %c0_i32 = arith.constant 0 : i32
    %c0_i32_0 = arith.constant 0 : i32
    %c0_i32_1 = arith.constant 0 : i32
    return %c0_i32, %c0_i32_0 : i32, i32
  }
  func.func @transform_3(%arg0: i32, %arg1: i32) -> (i32, i32, i32) {
    %c0_i32 = arith.constant 0 : i32
    %c0_i32_0 = arith.constant 0 : i32
    return %arg0, %arg1, %c0_i32 : i32, i32, i32
  }
}

module attributes {stable_mosaic.version = 11 : i64} {
  func.func @_fft_block_kernel(%arg0: i32, %arg1: i32, %arg2: memref<1x8x32xf32, #tpu.memory_space<vmem>>, %arg3: memref<1x8x32xf32, #tpu.memory_space<vmem>>, %arg4: memref<1x8x8xbf16, #tpu.memory_space<vmem>>, %arg5: memref<1x8x1xf32, #tpu.memory_space<vmem>>, %arg6: memref<4x32x8xbf16, #tpu.memory_space<vmem>>, %arg7: memref<4x32x8xbf16, #tpu.memory_space<vmem>>, %arg8: memref<4x32x8xbf16, #tpu.memory_space<vmem>>, %arg9: memref<4x8x32xbf16, #tpu.memory_space<vmem>>, %arg10: memref<1x32xf32, #tpu.memory_space<vmem>>, %arg11: memref<1x32xf32, #tpu.memory_space<vmem>>, %arg12: memref<1x32xf32, #tpu.memory_space<vmem>>, %arg13: memref<32x128xbf16, #tpu.memory_space<vmem>>, %arg14: memref<1x128xf32, #tpu.memory_space<vmem>>, %arg15: memref<128x32xbf16, #tpu.memory_space<vmem>>, %arg16: memref<1x32xf32, #tpu.memory_space<vmem>>, %arg17: memref<1x32xf32, #tpu.memory_space<vmem>>, %arg18: memref<1x32xf32, #tpu.memory_space<vmem>>, %arg19: memref<1x8x32xf32, #tpu.memory_space<vmem>>, %arg20: memref<1x4x8x8xf32, #tpu.memory_space<vmem>>) attributes {dimension_semantics = [#tpu.dimension_semantics<parallel>, #tpu.dimension_semantics<parallel>], iteration_bounds = array<i64: 2, 1>, scalar_prefetch = 0 : i64, scratch_operands = 0 : i64, tpu.core_type = #tpu.core_type<tc>, window_params = [{transform_indices = @transform_0, window_bounds = array<i64: 1, 8, 32>}, {transform_indices = @transform_1, window_bounds = array<i64: 1, 8, 32>}, {transform_indices = @transform_2, window_bounds = array<i64: 1, 8, 8>}, {transform_indices = @transform_3, window_bounds = array<i64: 1, 8, 1>}, {pipeline_mode = #tpu.pipeline_mode<synchronous>, transform_indices = @transform_4, window_bounds = array<i64: 4, 32, 8>}, {pipeline_mode = #tpu.pipeline_mode<synchronous>, transform_indices = @transform_5, window_bounds = array<i64: 4, 32, 8>}, {pipeline_mode = #tpu.pipeline_mode<synchronous>, transform_indices = @transform_6, window_bounds = array<i64: 4, 32, 8>}, {pipeline_mode = #tpu.pipeline_mode<synchronous>, transform_indices = @transform_7, window_bounds = array<i64: 4, 8, 32>}, {pipeline_mode = #tpu.pipeline_mode<synchronous>, transform_indices = @transform_8, window_bounds = array<i64: 1, 32>}, {pipeline_mode = #tpu.pipeline_mode<synchronous>, transform_indices = @transform_9, window_bounds = array<i64: 1, 32>}, {pipeline_mode = #tpu.pipeline_mode<synchronous>, transform_indices = @transform_10, window_bounds = array<i64: 1, 32>}, {pipeline_mode = #tpu.pipeline_mode<synchronous>, transform_indices = @transform_11, window_bounds = array<i64: 32, 128>}, {pipeline_mode = #tpu.pipeline_mode<synchronous>, transform_indices = @transform_12, window_bounds = array<i64: 1, 128>}, {pipeline_mode = #tpu.pipeline_mode<synchronous>, transform_indices = @transform_13, window_bounds = array<i64: 128, 32>}, {pipeline_mode = #tpu.pipeline_mode<synchronous>, transform_indices = @transform_14, window_bounds = array<i64: 1, 32>}, {pipeline_mode = #tpu.pipeline_mode<synchronous>, transform_indices = @transform_15, window_bounds = array<i64: 1, 32>}, {pipeline_mode = #tpu.pipeline_mode<synchronous>, transform_indices = @transform_16, window_bounds = array<i64: 1, 32>}, {transform_indices = @transform_17, window_bounds = array<i64: 1, 8, 32>}, {transform_indices = @transform_18, window_bounds = array<i64: 1, 4, 8, 8>}]} {
    %c0 = arith.constant 0 : index
    %c0_0 = arith.constant 0 : index
    %c0_1 = arith.constant 0 : index
    %0 = vector.load %arg2[%c0, %c0_0, %c0_1] : memref<1x8x32xf32, #tpu.memory_space<vmem>>, vector<1x8x32xf32>
    %1 = vector.shape_cast %0 : vector<1x8x32xf32> to vector<8x32xf32>
    %c0_2 = arith.constant 0 : index
    %c0_3 = arith.constant 0 : index
    %c0_4 = arith.constant 0 : index
    %2 = vector.load %arg3[%c0_2, %c0_3, %c0_4] : memref<1x8x32xf32, #tpu.memory_space<vmem>>, vector<1x8x32xf32>
    %3 = vector.shape_cast %2 : vector<1x8x32xf32> to vector<8x32xf32>
    %c0_5 = arith.constant 0 : index
    %c0_6 = arith.constant 0 : index
    %c0_7 = arith.constant 0 : index
    %4 = vector.load %arg4[%c0_5, %c0_6, %c0_7] : memref<1x8x8xbf16, #tpu.memory_space<vmem>>, vector<1x8x8xbf16>
    %5 = vector.shape_cast %4 : vector<1x8x8xbf16> to vector<8x8xbf16>
    %6 = arith.extf %5 : vector<8x8xbf16> to vector<8x8xf32>
    %c0_8 = arith.constant 0 : index
    %c0_9 = arith.constant 0 : index
    %c0_10 = arith.constant 0 : index
    %7 = vector.load %arg5[%c0_8, %c0_9, %c0_10] : memref<1x8x1xf32, #tpu.memory_space<vmem>>, vector<1x8x1xf32>
    %8 = vector.shape_cast %7 : vector<1x8x1xf32> to vector<8x1xf32>
    %9 = arith.truncf %1 : vector<8x32xf32> to vector<8x32xbf16>
    %10 = arith.truncf %3 : vector<8x32xf32> to vector<8x32xbf16>
    %c0_11 = arith.constant 0 : index
    %c0_12 = arith.constant 0 : index
    %c0_13 = arith.constant 0 : index
    %11 = vector.load %arg6[%c0_11, %c0_12, %c0_13] : memref<4x32x8xbf16, #tpu.memory_space<vmem>>, vector<1x32x8xbf16>
    %12 = vector.shape_cast %11 : vector<1x32x8xbf16> to vector<32x8xbf16>
    %cst = arith.constant dense<0.000000e+00> : vector<8x8xf32>
    %13 = tpu.matmul %9, %12, %cst {dimension_numbers = #tpu.dot_dimension_numbers<[1], [0], [0], [1], [0, 0, 1, 1], [], []>} : vector<8x32xbf16>, vector<32x8xbf16>, vector<8x8xf32> -> vector<8x8xf32>
    %c1 = arith.constant 1 : index
    %c0_14 = arith.constant 0 : index
    %c0_15 = arith.constant 0 : index
    %14 = vector.load %arg6[%c1, %c0_14, %c0_15] : memref<4x32x8xbf16, #tpu.memory_space<vmem>>, vector<1x32x8xbf16>
    %15 = vector.shape_cast %14 : vector<1x32x8xbf16> to vector<32x8xbf16>
    %cst_16 = arith.constant dense<0.000000e+00> : vector<8x8xf32>
    %16 = tpu.matmul %9, %15, %cst_16 {dimension_numbers = #tpu.dot_dimension_numbers<[1], [0], [0], [1], [0, 0, 1, 1], [], []>} : vector<8x32xbf16>, vector<32x8xbf16>, vector<8x8xf32> -> vector<8x8xf32>
    %c2 = arith.constant 2 : index
    %c0_17 = arith.constant 0 : index
    %c0_18 = arith.constant 0 : index
    %17 = vector.load %arg6[%c2, %c0_17, %c0_18] : memref<4x32x8xbf16, #tpu.memory_space<vmem>>, vector<1x32x8xbf16>
    %18 = vector.shape_cast %17 : vector<1x32x8xbf16> to vector<32x8xbf16>
    %cst_19 = arith.constant dense<0.000000e+00> : vector<8x8xf32>
    %19 = tpu.matmul %9, %18, %cst_19 {dimension_numbers = #tpu.dot_dimension_numbers<[1], [0], [0], [1], [0, 0, 1, 1], [], []>} : vector<8x32xbf16>, vector<32x8xbf16>, vector<8x8xf32> -> vector<8x8xf32>
    %c3 = arith.constant 3 : index
    %c0_20 = arith.constant 0 : index
    %c0_21 = arith.constant 0 : index
    %20 = vector.load %arg6[%c3, %c0_20, %c0_21] : memref<4x32x8xbf16, #tpu.memory_space<vmem>>, vector<1x32x8xbf16>
    %21 = vector.shape_cast %20 : vector<1x32x8xbf16> to vector<32x8xbf16>
    %cst_22 = arith.constant dense<0.000000e+00> : vector<8x8xf32>
    %22 = tpu.matmul %9, %21, %cst_22 {dimension_numbers = #tpu.dot_dimension_numbers<[1], [0], [0], [1], [0, 0, 1, 1], [], []>} : vector<8x32xbf16>, vector<32x8xbf16>, vector<8x8xf32> -> vector<8x8xf32>
    %23 = vector.shape_cast %13 : vector<8x8xf32> to vector<1x8x8xf32>
    %24 = vector.shape_cast %16 : vector<8x8xf32> to vector<1x8x8xf32>
    %25 = vector.shape_cast %19 : vector<8x8xf32> to vector<1x8x8xf32>
    %26 = vector.shape_cast %22 : vector<8x8xf32> to vector<1x8x8xf32>
    %27 = tpu.concatenate %23, %24, %25, %26 in 0 : vector<1x8x8xf32>, vector<1x8x8xf32>, vector<1x8x8xf32>, vector<1x8x8xf32> -> vector<4x8x8xf32>
    %c0_23 = arith.constant 0 : index
    %c0_24 = arith.constant 0 : index
    %c0_25 = arith.constant 0 : index
    %28 = vector.load %arg7[%c0_23, %c0_24, %c0_25] : memref<4x32x8xbf16, #tpu.memory_space<vmem>>, vector<1x32x8xbf16>
    %29 = vector.shape_cast %28 : vector<1x32x8xbf16> to vector<32x8xbf16>
    %cst_26 = arith.constant dense<0.000000e+00> : vector<8x8xf32>
    %30 = tpu.matmul %10, %29, %cst_26 {dimension_numbers = #tpu.dot_dimension_numbers<[1], [0], [0], [1], [0, 0, 1, 1], [], []>} : vector<8x32xbf16>, vector<32x8xbf16>, vector<8x8xf32> -> vector<8x8xf32>
    %c1_27 = arith.constant 1 : index
    %c0_28 = arith.constant 0 : index
    %c0_29 = arith.constant 0 : index
    %31 = vector.load %arg7[%c1_27, %c0_28, %c0_29] : memref<4x32x8xbf16, #tpu.memory_space<vmem>>, vector<1x32x8xbf16>
    %32 = vector.shape_cast %31 : vector<1x32x8xbf16> to vector<32x8xbf16>
    %cst_30 = arith.constant dense<0.000000e+00> : vector<8x8xf32>
    %33 = tpu.matmul %10, %32, %cst_30 {dimension_numbers = #tpu.dot_dimension_numbers<[1], [0], [0], [1], [0, 0, 1, 1], [], []>} : vector<8x32xbf16>, vector<32x8xbf16>, vector<8x8xf32> -> vector<8x8xf32>
    %c2_31 = arith.constant 2 : index
    %c0_32 = arith.constant 0 : index
    %c0_33 = arith.constant 0 : index
    %34 = vector.load %arg7[%c2_31, %c0_32, %c0_33] : memref<4x32x8xbf16, #tpu.memory_space<vmem>>, vector<1x32x8xbf16>
    %35 = vector.shape_cast %34 : vector<1x32x8xbf16> to vector<32x8xbf16>
    %cst_34 = arith.constant dense<0.000000e+00> : vector<8x8xf32>
    %36 = tpu.matmul %10, %35, %cst_34 {dimension_numbers = #tpu.dot_dimension_numbers<[1], [0], [0], [1], [0, 0, 1, 1], [], []>} : vector<8x32xbf16>, vector<32x8xbf16>, vector<8x8xf32> -> vector<8x8xf32>
    %c3_35 = arith.constant 3 : index
    %c0_36 = arith.constant 0 : index
    %c0_37 = arith.constant 0 : index
    %37 = vector.load %arg7[%c3_35, %c0_36, %c0_37] : memref<4x32x8xbf16, #tpu.memory_space<vmem>>, vector<1x32x8xbf16>
    %38 = vector.shape_cast %37 : vector<1x32x8xbf16> to vector<32x8xbf16>
    %cst_38 = arith.constant dense<0.000000e+00> : vector<8x8xf32>
    %39 = tpu.matmul %10, %38, %cst_38 {dimension_numbers = #tpu.dot_dimension_numbers<[1], [0], [0], [1], [0, 0, 1, 1], [], []>} : vector<8x32xbf16>, vector<32x8xbf16>, vector<8x8xf32> -> vector<8x8xf32>
    %40 = vector.shape_cast %30 : vector<8x8xf32> to vector<1x8x8xf32>
    %41 = vector.shape_cast %33 : vector<8x8xf32> to vector<1x8x8xf32>
    %42 = vector.shape_cast %36 : vector<8x8xf32> to vector<1x8x8xf32>
    %43 = vector.shape_cast %39 : vector<8x8xf32> to vector<1x8x8xf32>
    %44 = tpu.concatenate %40, %41, %42, %43 in 0 : vector<1x8x8xf32>, vector<1x8x8xf32>, vector<1x8x8xf32>, vector<1x8x8xf32> -> vector<4x8x8xf32>
    %c0_39 = arith.constant 0 : index
    %c0_40 = arith.constant 0 : index
    %c0_41 = arith.constant 0 : index
    %45 = vector.load %arg8[%c0_39, %c0_40, %c0_41] : memref<4x32x8xbf16, #tpu.memory_space<vmem>>, vector<1x32x8xbf16>
    %46 = vector.shape_cast %45 : vector<1x32x8xbf16> to vector<32x8xbf16>
    %cst_42 = arith.constant dense<0.000000e+00> : vector<8x8xf32>
    %47 = tpu.matmul %10, %46, %cst_42 {dimension_numbers = #tpu.dot_dimension_numbers<[1], [0], [0], [1], [0, 0, 1, 1], [], []>} : vector<8x32xbf16>, vector<32x8xbf16>, vector<8x8xf32> -> vector<8x8xf32>
    %c1_43 = arith.constant 1 : index
    %c0_44 = arith.constant 0 : index
    %c0_45 = arith.constant 0 : index
    %48 = vector.load %arg8[%c1_43, %c0_44, %c0_45] : memref<4x32x8xbf16, #tpu.memory_space<vmem>>, vector<1x32x8xbf16>
    %49 = vector.shape_cast %48 : vector<1x32x8xbf16> to vector<32x8xbf16>
    %cst_46 = arith.constant dense<0.000000e+00> : vector<8x8xf32>
    %50 = tpu.matmul %10, %49, %cst_46 {dimension_numbers = #tpu.dot_dimension_numbers<[1], [0], [0], [1], [0, 0, 1, 1], [], []>} : vector<8x32xbf16>, vector<32x8xbf16>, vector<8x8xf32> -> vector<8x8xf32>
    %c2_47 = arith.constant 2 : index
    %c0_48 = arith.constant 0 : index
    %c0_49 = arith.constant 0 : index
    %51 = vector.load %arg8[%c2_47, %c0_48, %c0_49] : memref<4x32x8xbf16, #tpu.memory_space<vmem>>, vector<1x32x8xbf16>
    %52 = vector.shape_cast %51 : vector<1x32x8xbf16> to vector<32x8xbf16>
    %cst_50 = arith.constant dense<0.000000e+00> : vector<8x8xf32>
    %53 = tpu.matmul %10, %52, %cst_50 {dimension_numbers = #tpu.dot_dimension_numbers<[1], [0], [0], [1], [0, 0, 1, 1], [], []>} : vector<8x32xbf16>, vector<32x8xbf16>, vector<8x8xf32> -> vector<8x8xf32>
    %c3_51 = arith.constant 3 : index
    %c0_52 = arith.constant 0 : index
    %c0_53 = arith.constant 0 : index
    %54 = vector.load %arg8[%c3_51, %c0_52, %c0_53] : memref<4x32x8xbf16, #tpu.memory_space<vmem>>, vector<1x32x8xbf16>
    %55 = vector.shape_cast %54 : vector<1x32x8xbf16> to vector<32x8xbf16>
    %cst_54 = arith.constant dense<0.000000e+00> : vector<8x8xf32>
    %56 = tpu.matmul %10, %55, %cst_54 {dimension_numbers = #tpu.dot_dimension_numbers<[1], [0], [0], [1], [0, 0, 1, 1], [], []>} : vector<8x32xbf16>, vector<32x8xbf16>, vector<8x8xf32> -> vector<8x8xf32>
    %57 = vector.shape_cast %47 : vector<8x8xf32> to vector<1x8x8xf32>
    %58 = vector.shape_cast %50 : vector<8x8xf32> to vector<1x8x8xf32>
    %59 = vector.shape_cast %53 : vector<8x8xf32> to vector<1x8x8xf32>
    %60 = vector.shape_cast %56 : vector<8x8xf32> to vector<1x8x8xf32>
    %61 = tpu.concatenate %57, %58, %59, %60 in 0 : vector<1x8x8xf32>, vector<1x8x8xf32>, vector<1x8x8xf32>, vector<1x8x8xf32> -> vector<4x8x8xf32>
    %cst_55 = arith.constant 0.353553385 : f32
    %62 = vector.broadcast %cst_55 : f32 to vector<4x8x8xf32>
    %63 = arith.mulf %27, %62 : vector<4x8x8xf32>
    %64 = arith.truncf %63 : vector<4x8x8xf32> to vector<4x8x8xbf16>
    %65 = arith.truncf %44 : vector<4x8x8xf32> to vector<4x8x8xbf16>
    "tpu.trace_start"() <{level = 10 : i32, message = "hqd,hkd->hqk"}> : () -> ()
    %cst_56 = arith.constant dense<0.000000e+00> : vector<4x8x8xf32>
    %66 = tpu.matmul %64, %65, %cst_56 {dimension_numbers = #tpu.dot_dimension_numbers<[2], [2], [1], [1], [0, 0, 0, 1, 1, 1], [0], [0]>} : vector<4x8x8xbf16>, vector<4x8x8xbf16>, vector<4x8x8xf32> -> vector<4x8x8xf32>
    "tpu.trace_stop"() : () -> ()
    %67 = vector.shape_cast %6 : vector<8x8xf32> to vector<1x8x8xf32>
    %68 = vector.broadcast %67 : vector<1x8x8xf32> to vector<4x8x8xf32>
    %69 = arith.addf %66, %68 : vector<4x8x8xf32>
    %cst_57 = arith.constant dense<0xFF800000> : vector<4x8xf32>
    %70 = vector.multi_reduction <maximumf>, %69, %cst_57 [2] : vector<4x8x8xf32> to vector<4x8xf32>
    %71 = vector.shape_cast %70 : vector<4x8xf32> to vector<4x8x1xf32>
    %72 = vector.broadcast %71 : vector<4x8x1xf32> to vector<4x8x8xf32>
    %73 = arith.subf %69, %72 : vector<4x8x8xf32>
    %74 = math.exp %73 : vector<4x8x8xf32>
    %cst_58 = arith.constant dense<0.000000e+00> : vector<4x8xf32>
    %75 = vector.multi_reduction <add>, %74, %cst_58 [2] : vector<4x8x8xf32> to vector<4x8xf32>
    %76 = vector.shape_cast %75 : vector<4x8xf32> to vector<4x8x1xf32>
    %77 = tpu.reciprocal %76 {approx = true} : vector<4x8x1xf32> -> vector<4x8x1xf32>
    %78 = vector.broadcast %77 : vector<4x8x1xf32> to vector<4x8x8xf32>
    %79 = arith.mulf %74, %78 : vector<4x8x8xf32>
    %80 = vector.shape_cast %8 : vector<8x1xf32> to vector<1x8x1xf32>
    %81 = vector.broadcast %80 : vector<1x8x1xf32> to vector<4x8x8xf32>
    %82 = arith.mulf %79, %81 : vector<4x8x8xf32>
    %83 = arith.truncf %82 : vector<4x8x8xf32> to vector<4x8x8xbf16>
    %84 = arith.truncf %61 : vector<4x8x8xf32> to vector<4x8x8xbf16>
    "tpu.trace_start"() <{level = 10 : i32, message = "hqk,hkd->hqd"}> : () -> ()
    %cst_59 = arith.constant dense<0.000000e+00> : vector<4x8x8xf32>
    %85 = tpu.matmul %83, %84, %cst_59 {dimension_numbers = #tpu.dot_dimension_numbers<[2], [1], [1], [2], [0, 0, 0, 1, 1, 2], [0], [0]>} : vector<4x8x8xbf16>, vector<4x8x8xbf16>, vector<4x8x8xf32> -> vector<4x8x8xf32>
    "tpu.trace_stop"() : () -> ()
    %c0_60 = arith.constant 0 : index
    %c0_61 = arith.constant 0 : index
    %86 = vector.load %arg10[%c0_60, %c0_61] : memref<1x32xf32, #tpu.memory_space<vmem>>, vector<1x32xf32>
    %87 = vector.extract_strided_slice %85 {offsets = [0, 0, 0], sizes = [1, 8, 8], strides = [1, 1, 1]} : vector<4x8x8xf32> to vector<1x8x8xf32>
    %88 = vector.shape_cast %87 : vector<1x8x8xf32> to vector<8x8xf32>
    %89 = arith.truncf %88 : vector<8x8xf32> to vector<8x8xbf16>
    %c0_62 = arith.constant 0 : index
    %c0_63 = arith.constant 0 : index
    %c0_64 = arith.constant 0 : index
    %90 = vector.load %arg9[%c0_62, %c0_63, %c0_64] : memref<4x8x32xbf16, #tpu.memory_space<vmem>>, vector<1x8x32xbf16>
    %91 = vector.shape_cast %90 : vector<1x8x32xbf16> to vector<8x32xbf16>
    %cst_65 = arith.constant dense<0.000000e+00> : vector<8x32xf32>
    %92 = tpu.matmul %89, %91, %cst_65 {dimension_numbers = #tpu.dot_dimension_numbers<[1], [0], [0], [1], [0, 0, 1, 1], [], []>} : vector<8x8xbf16>, vector<8x32xbf16>, vector<8x32xf32> -> vector<8x32xf32>
    %93 = vector.broadcast %86 : vector<1x32xf32> to vector<8x32xf32>
    %94 = arith.addf %93, %92 : vector<8x32xf32>
    %95 = vector.extract_strided_slice %85 {offsets = [1, 0, 0], sizes = [1, 8, 8], strides = [1, 1, 1]} : vector<4x8x8xf32> to vector<1x8x8xf32>
    %96 = vector.shape_cast %95 : vector<1x8x8xf32> to vector<8x8xf32>
    %97 = arith.truncf %96 : vector<8x8xf32> to vector<8x8xbf16>
    %c1_66 = arith.constant 1 : index
    %c0_67 = arith.constant 0 : index
    %c0_68 = arith.constant 0 : index
    %98 = vector.load %arg9[%c1_66, %c0_67, %c0_68] : memref<4x8x32xbf16, #tpu.memory_space<vmem>>, vector<1x8x32xbf16>
    %99 = vector.shape_cast %98 : vector<1x8x32xbf16> to vector<8x32xbf16>
    %cst_69 = arith.constant dense<0.000000e+00> : vector<8x32xf32>
    %100 = tpu.matmul %97, %99, %cst_69 {dimension_numbers = #tpu.dot_dimension_numbers<[1], [0], [0], [1], [0, 0, 1, 1], [], []>} : vector<8x8xbf16>, vector<8x32xbf16>, vector<8x32xf32> -> vector<8x32xf32>
    %101 = arith.addf %94, %100 : vector<8x32xf32>
    %102 = vector.extract_strided_slice %85 {offsets = [2, 0, 0], sizes = [1, 8, 8], strides = [1, 1, 1]} : vector<4x8x8xf32> to vector<1x8x8xf32>
    %103 = vector.shape_cast %102 : vector<1x8x8xf32> to vector<8x8xf32>
    %104 = arith.truncf %103 : vector<8x8xf32> to vector<8x8xbf16>
    %c2_70 = arith.constant 2 : index
    %c0_71 = arith.constant 0 : index
    %c0_72 = arith.constant 0 : index
    %105 = vector.load %arg9[%c2_70, %c0_71, %c0_72] : memref<4x8x32xbf16, #tpu.memory_space<vmem>>, vector<1x8x32xbf16>
    %106 = vector.shape_cast %105 : vector<1x8x32xbf16> to vector<8x32xbf16>
    %cst_73 = arith.constant dense<0.000000e+00> : vector<8x32xf32>
    %107 = tpu.matmul %104, %106, %cst_73 {dimension_numbers = #tpu.dot_dimension_numbers<[1], [0], [0], [1], [0, 0, 1, 1], [], []>} : vector<8x8xbf16>, vector<8x32xbf16>, vector<8x32xf32> -> vector<8x32xf32>
    %108 = arith.addf %101, %107 : vector<8x32xf32>
    %109 = vector.extract_strided_slice %85 {offsets = [3, 0, 0], sizes = [1, 8, 8], strides = [1, 1, 1]} : vector<4x8x8xf32> to vector<1x8x8xf32>
    %110 = vector.shape_cast %109 : vector<1x8x8xf32> to vector<8x8xf32>
    %111 = arith.truncf %110 : vector<8x8xf32> to vector<8x8xbf16>
    %c3_74 = arith.constant 3 : index
    %c0_75 = arith.constant 0 : index
    %c0_76 = arith.constant 0 : index
    %112 = vector.load %arg9[%c3_74, %c0_75, %c0_76] : memref<4x8x32xbf16, #tpu.memory_space<vmem>>, vector<1x8x32xbf16>
    %113 = vector.shape_cast %112 : vector<1x8x32xbf16> to vector<8x32xbf16>
    %cst_77 = arith.constant dense<0.000000e+00> : vector<8x32xf32>
    %114 = tpu.matmul %111, %113, %cst_77 {dimension_numbers = #tpu.dot_dimension_numbers<[1], [0], [0], [1], [0, 0, 1, 1], [], []>} : vector<8x8xbf16>, vector<8x32xbf16>, vector<8x32xf32> -> vector<8x32xf32>
    %115 = arith.addf %108, %114 : vector<8x32xf32>
    %116 = arith.addf %115, %1 : vector<8x32xf32>
    %c0_78 = arith.constant 0 : index
    %c0_79 = arith.constant 0 : index
    %c0_80 = arith.constant 0 : index
    %c0_81 = arith.constant 0 : index
    %117 = vector.load %arg20[%c0_78, %c0_79, %c0_80, %c0_81] : memref<1x4x8x8xf32, #tpu.memory_space<vmem>>, vector<1x4x8x8xf32>
    %118 = vector.shape_cast %117 : vector<1x4x8x8xf32> to vector<4x8x8xf32>
    %119 = vector.shape_cast %82 : vector<4x8x8xf32> to vector<1x4x8x8xf32>
    tpu.vector_store %arg20[%c0_78, %c0_79, %c0_80, %c0_81], %119 {strides = array<i32>} : memref<1x4x8x8xf32, #tpu.memory_space<vmem>>, vector<1x4x8x8xf32>,
    %c0_82 = arith.constant 0 : index
    %c0_83 = arith.constant 0 : index
    %120 = vector.load %arg11[%c0_82, %c0_83] : memref<1x32xf32, #tpu.memory_space<vmem>>, vector<1x32xf32>
    %c0_84 = arith.constant 0 : index
    %c0_85 = arith.constant 0 : index
    %121 = vector.load %arg12[%c0_84, %c0_85] : memref<1x32xf32, #tpu.memory_space<vmem>>, vector<1x32xf32>
    %cst_86 = arith.constant dense<0.000000e+00> : vector<8xf32>
    %122 = vector.multi_reduction <add>, %116, %cst_86 [1] : vector<8x32xf32> to vector<8xf32>
    %123 = vector.shape_cast %122 : vector<8xf32> to vector<8x1xf32>
    %cst_87 = arith.constant 3.200000e+01 : f32
    %124 = vector.broadcast %cst_87 : f32 to vector<8x1xf32>
    %125 = arith.divf %123, %124 : vector<8x1xf32>
    %126 = vector.broadcast %125 : vector<8x1xf32> to vector<8x32xf32>
    %127 = arith.subf %116, %126 : vector<8x32xf32>
    %128 = arith.mulf %127, %127 : vector<8x32xf32>
    %cst_88 = arith.constant dense<0.000000e+00> : vector<8xf32>
    %129 = vector.multi_reduction <add>, %128, %cst_88 [1] : vector<8x32xf32> to vector<8xf32>
    %130 = vector.shape_cast %129 : vector<8xf32> to vector<8x1xf32>
    %cst_89 = arith.constant 3.200000e+01 : f32
    %131 = vector.broadcast %cst_89 : f32 to vector<8x1xf32>
    %132 = arith.divf %130, %131 : vector<8x1xf32>
    %133 = vector.broadcast %125 : vector<8x1xf32> to vector<8x32xf32>
    %134 = arith.subf %116, %133 : vector<8x32xf32>
    %cst_90 = arith.constant 9.99999974E-6 : f32
    %135 = vector.broadcast %cst_90 : f32 to vector<8x1xf32>
    %136 = arith.addf %132, %135 : vector<8x1xf32>
    %137 = math.rsqrt %136 : vector<8x1xf32>
    %138 = vector.broadcast %137 : vector<8x1xf32> to vector<8x32xf32>
    %139 = arith.mulf %134, %138 : vector<8x32xf32>
    %140 = vector.broadcast %120 : vector<1x32xf32> to vector<8x32xf32>
    %141 = arith.mulf %139, %140 : vector<8x32xf32>
    %142 = vector.broadcast %121 : vector<1x32xf32> to vector<8x32xf32>
    %143 = arith.addf %141, %142 : vector<8x32xf32>
    %144 = arith.truncf %143 : vector<8x32xf32> to vector<8x32xbf16>
    %c0_91 = arith.constant 0 : index
    %c0_92 = arith.constant 0 : index
    %145 = vector.load %arg13[%c0_91, %c0_92] : memref<32x128xbf16, #tpu.memory_space<vmem>>, vector<32x128xbf16>
    %cst_93 = arith.constant dense<0.000000e+00> : vector<8x128xf32>
    %146 = tpu.matmul %144, %145, %cst_93 {dimension_numbers = #tpu.dot_dimension_numbers<[1], [0], [0], [1], [0, 0, 1, 1], [], []>} : vector<8x32xbf16>, vector<32x128xbf16>, vector<8x128xf32> -> vector<8x128xf32>
    %c0_94 = arith.constant 0 : index
    %c0_95 = arith.constant 0 : index
    %147 = vector.load %arg14[%c0_94, %c0_95] : memref<1x128xf32, #tpu.memory_space<vmem>>, vector<1x128xf32>
    %148 = vector.broadcast %147 : vector<1x128xf32> to vector<8x128xf32>
    %149 = arith.addf %146, %148 : vector<8x128xf32>
    %cst_96 = arith.constant 0.000000e+00 : f32
    %150 = vector.broadcast %cst_96 : f32 to vector<8x128xf32>
    %151 = arith.maximumf %149, %150 : vector<8x128xf32>
    %152 = arith.truncf %151 : vector<8x128xf32> to vector<8x128xbf16>
    %c0_97 = arith.constant 0 : index
    %c0_98 = arith.constant 0 : index
    %153 = vector.load %arg15[%c0_97, %c0_98] : memref<128x32xbf16, #tpu.memory_space<vmem>>, vector<128x32xbf16>
    %cst_99 = arith.constant dense<0.000000e+00> : vector<8x32xf32>
    %154 = tpu.matmul %152, %153, %cst_99 {dimension_numbers = #tpu.dot_dimension_numbers<[1], [0], [0], [1], [0, 0, 1, 1], [], []>} : vector<8x128xbf16>, vector<128x32xbf16>, vector<8x32xf32> -> vector<8x32xf32>
    %c0_100 = arith.constant 0 : index
    %c0_101 = arith.constant 0 : index
    %155 = vector.load %arg16[%c0_100, %c0_101] : memref<1x32xf32, #tpu.memory_space<vmem>>, vector<1x32xf32>
    %156 = vector.broadcast %155 : vector<1x32xf32> to vector<8x32xf32>
    %157 = arith.addf %154, %156 : vector<8x32xf32>
    %158 = vector.broadcast %8 : vector<8x1xf32> to vector<8x32xf32>
    %159 = arith.mulf %157, %158 : vector<8x32xf32>
    %160 = arith.addf %143, %159 : vector<8x32xf32>
    %c0_102 = arith.constant 0 : index
    %c0_103 = arith.constant 0 : index
    %161 = vector.load %arg17[%c0_102, %c0_103] : memref<1x32xf32, #tpu.memory_space<vmem>>, vector<1x32xf32>
    %c0_104 = arith.constant 0 : index
    %c0_105 = arith.constant 0 : index
    %162 = vector.load %arg18[%c0_104, %c0_105] : memref<1x32xf32, #tpu.memory_space<vmem>>, vector<1x32xf32>
    %cst_106 = arith.constant dense<0.000000e+00> : vector<8xf32>
    %163 = vector.multi_reduction <add>, %160, %cst_106 [1] : vector<8x32xf32> to vector<8xf32>
    %164 = vector.shape_cast %163 : vector<8xf32> to vector<8x1xf32>
    %cst_107 = arith.constant 3.200000e+01 : f32
    %165 = vector.broadcast %cst_107 : f32 to vector<8x1xf32>
    %166 = arith.divf %164, %165 : vector<8x1xf32>
    %167 = vector.broadcast %166 : vector<8x1xf32> to vector<8x32xf32>
    %168 = arith.subf %160, %167 : vector<8x32xf32>
    %169 = arith.mulf %168, %168 : vector<8x32xf32>
    %cst_108 = arith.constant dense<0.000000e+00> : vector<8xf32>
    %170 = vector.multi_reduction <add>, %169, %cst_108 [1] : vector<8x32xf32> to vector<8xf32>
    %171 = vector.shape_cast %170 : vector<8xf32> to vector<8x1xf32>
    %cst_109 = arith.constant 3.200000e+01 : f32
    %172 = vector.broadcast %cst_109 : f32 to vector<8x1xf32>
    %173 = arith.divf %171, %172 : vector<8x1xf32>
    %174 = vector.broadcast %166 : vector<8x1xf32> to vector<8x32xf32>
    %175 = arith.subf %160, %174 : vector<8x32xf32>
    %cst_110 = arith.constant 9.99999974E-6 : f32
    %176 = vector.broadcast %cst_110 : f32 to vector<8x1xf32>
    %177 = arith.addf %173, %176 : vector<8x1xf32>
    %178 = math.rsqrt %177 : vector<8x1xf32>
    %179 = vector.broadcast %178 : vector<8x1xf32> to vector<8x32xf32>
    %180 = arith.mulf %175, %179 : vector<8x32xf32>
    %181 = vector.broadcast %161 : vector<1x32xf32> to vector<8x32xf32>
    %182 = arith.mulf %180, %181 : vector<8x32xf32>
    %183 = vector.broadcast %162 : vector<1x32xf32> to vector<8x32xf32>
    %184 = arith.addf %182, %183 : vector<8x32xf32>
    %c0_111 = arith.constant 0 : index
    %c0_112 = arith.constant 0 : index
    %c0_113 = arith.constant 0 : index
    %185 = vector.load %arg19[%c0_111, %c0_112, %c0_113] : memref<1x8x32xf32, #tpu.memory_space<vmem>>, vector<1x8x32xf32>
    %186 = vector.shape_cast %185 : vector<1x8x32xf32> to vector<8x32xf32>
    %187 = vector.shape_cast %184 : vector<8x32xf32> to vector<1x8x32xf32>
    tpu.vector_store %arg19[%c0_111, %c0_112, %c0_113], %187 {strides = array<i32>} : memref<1x8x32xf32, #tpu.memory_space<vmem>>, vector<1x8x32xf32>,
    return
  }
  func.func @transform_0(%arg0: i32, %arg1: i32) -> (i32, i32, i32) {
    %c0_i32 = arith.constant 0 : i32
    %c0_i32_0 = arith.constant 0 : i32
    return %arg0, %arg1, %c0_i32 : i32, i32, i32
  }
  func.func @transform_1(%arg0: i32, %arg1: i32) -> (i32, i32, i32) {
    %c0_i32 = arith.constant 0 : i32
    %c0_i32_0 = arith.constant 0 : i32
    %c0_i32_1 = arith.constant 0 : i32
    return %arg0, %c0_i32, %c0_i32_0 : i32, i32, i32
  }
  func.func @transform_2(%arg0: i32, %arg1: i32) -> (i32, i32, i32) {
    %c0_i32 = arith.constant 0 : i32
    %c0_i32_0 = arith.constant 0 : i32
    return %arg0, %arg1, %c0_i32 : i32, i32, i32
  }
  func.func @transform_3(%arg0: i32, %arg1: i32) -> (i32, i32, i32) {
    %c0_i32 = arith.constant 0 : i32
    %c0_i32_0 = arith.constant 0 : i32
    return %arg0, %arg1, %c0_i32 : i32, i32, i32
  }
  func.func @transform_4(%arg0: i32, %arg1: i32) -> (i32, i32, i32) {
    %c0_i32 = arith.constant 0 : i32
    %c0_i32_0 = arith.constant 0 : i32
    %c0_i32_1 = arith.constant 0 : i32
    %c0_i32_2 = arith.constant 0 : i32
    return %c0_i32, %c0_i32_0, %c0_i32_1 : i32, i32, i32
  }
  func.func @transform_5(%arg0: i32, %arg1: i32) -> (i32, i32, i32) {
    %c0_i32 = arith.constant 0 : i32
    %c0_i32_0 = arith.constant 0 : i32
    %c0_i32_1 = arith.constant 0 : i32
    %c0_i32_2 = arith.constant 0 : i32
    return %c0_i32, %c0_i32_0, %c0_i32_1 : i32, i32, i32
  }
  func.func @transform_6(%arg0: i32, %arg1: i32) -> (i32, i32, i32) {
    %c0_i32 = arith.constant 0 : i32
    %c0_i32_0 = arith.constant 0 : i32
    %c0_i32_1 = arith.constant 0 : i32
    %c0_i32_2 = arith.constant 0 : i32
    return %c0_i32, %c0_i32_0, %c0_i32_1 : i32, i32, i32
  }
  func.func @transform_7(%arg0: i32, %arg1: i32) -> (i32, i32, i32) {
    %c0_i32 = arith.constant 0 : i32
    %c0_i32_0 = arith.constant 0 : i32
    %c0_i32_1 = arith.constant 0 : i32
    %c0_i32_2 = arith.constant 0 : i32
    return %c0_i32, %c0_i32_0, %c0_i32_1 : i32, i32, i32
  }
  func.func @transform_8(%arg0: i32, %arg1: i32) -> (i32, i32) {
    %c0_i32 = arith.constant 0 : i32
    %c0_i32_0 = arith.constant 0 : i32
    %c0_i32_1 = arith.constant 0 : i32
    return %c0_i32, %c0_i32_0 : i32, i32
  }
  func.func @transform_9(%arg0: i32, %arg1: i32) -> (i32, i32) {
    %c0_i32 = arith.constant 0 : i32
    %c0_i32_0 = arith.constant 0 : i32
    %c0_i32_1 = arith.constant 0 : i32
    return %c0_i32, %c0_i32_0 : i32, i32
  }
  func.func @transform_10(%arg0: i32, %arg1: i32) -> (i32, i32) {
    %c0_i32 = arith.constant 0 : i32
    %c0_i32_0 = arith.constant 0 : i32
    %c0_i32_1 = arith.constant 0 : i32
    return %c0_i32, %c0_i32_0 : i32, i32
  }
  func.func @transform_11(%arg0: i32, %arg1: i32) -> (i32, i32) {
    %c0_i32 = arith.constant 0 : i32
    %c0_i32_0 = arith.constant 0 : i32
    %c0_i32_1 = arith.constant 0 : i32
    return %c0_i32, %c0_i32_0 : i32, i32
  }
  func.func @transform_12(%arg0: i32, %arg1: i32) -> (i32, i32) {
    %c0_i32 = arith.constant 0 : i32
    %c0_i32_0 = arith.constant 0 : i32
    %c0_i32_1 = arith.constant 0 : i32
    return %c0_i32, %c0_i32_0 : i32, i32
  }
  func.func @transform_13(%arg0: i32, %arg1: i32) -> (i32, i32) {
    %c0_i32 = arith.constant 0 : i32
    %c0_i32_0 = arith.constant 0 : i32
    %c0_i32_1 = arith.constant 0 : i32
    return %c0_i32, %c0_i32_0 : i32, i32
  }
  func.func @transform_14(%arg0: i32, %arg1: i32) -> (i32, i32) {
    %c0_i32 = arith.constant 0 : i32
    %c0_i32_0 = arith.constant 0 : i32
    %c0_i32_1 = arith.constant 0 : i32
    return %c0_i32, %c0_i32_0 : i32, i32
  }
  func.func @transform_15(%arg0: i32, %arg1: i32) -> (i32, i32) {
    %c0_i32 = arith.constant 0 : i32
    %c0_i32_0 = arith.constant 0 : i32
    %c0_i32_1 = arith.constant 0 : i32
    return %c0_i32, %c0_i32_0 : i32, i32
  }
  func.func @transform_16(%arg0: i32, %arg1: i32) -> (i32, i32) {
    %c0_i32 = arith.constant 0 : i32
    %c0_i32_0 = arith.constant 0 : i32
    %c0_i32_1 = arith.constant 0 : i32
    return %c0_i32, %c0_i32_0 : i32, i32
  }
  func.func @transform_17(%arg0: i32, %arg1: i32) -> (i32, i32, i32) {
    %c0_i32 = arith.constant 0 : i32
    %c0_i32_0 = arith.constant 0 : i32
    return %arg0, %arg1, %c0_i32 : i32, i32, i32
  }
  func.func @transform_18(%arg0: i32, %arg1: i32) -> (i32, i32, i32, i32) {
    %c0_i32 = arith.constant 0 : i32
    %c0_i32_0 = arith.constant 0 : i32
    %c0_i32_1 = arith.constant 0 : i32
    return %arg0, %c0_i32, %arg1, %c0_i32_0 : i32, i32, i32, i32
  }
}

module attributes {stable_mosaic.version = 11 : i64} {
  func.func @_fft_block_add_kernel(%arg0: i32, %arg1: i32, %arg2: memref<1x8x32xf32, #tpu.memory_space<vmem>>, %arg3: memref<1x8x32xf32, #tpu.memory_space<vmem>>, %arg4: memref<1x8x8xbf16, #tpu.memory_space<vmem>>, %arg5: memref<1x8x1xf32, #tpu.memory_space<vmem>>, %arg6: memref<1x8x32xf32, #tpu.memory_space<vmem>>, %arg7: memref<4x32x8xbf16, #tpu.memory_space<vmem>>, %arg8: memref<4x32x8xbf16, #tpu.memory_space<vmem>>, %arg9: memref<4x32x8xbf16, #tpu.memory_space<vmem>>, %arg10: memref<4x8x32xbf16, #tpu.memory_space<vmem>>, %arg11: memref<1x32xf32, #tpu.memory_space<vmem>>, %arg12: memref<1x32xf32, #tpu.memory_space<vmem>>, %arg13: memref<1x32xf32, #tpu.memory_space<vmem>>, %arg14: memref<1x32xf32, #tpu.memory_space<vmem>>, %arg15: memref<1x32xf32, #tpu.memory_space<vmem>>, %arg16: memref<32x128xbf16, #tpu.memory_space<vmem>>, %arg17: memref<1x128xf32, #tpu.memory_space<vmem>>, %arg18: memref<128x32xbf16, #tpu.memory_space<vmem>>, %arg19: memref<1x32xf32, #tpu.memory_space<vmem>>, %arg20: memref<1x32xf32, #tpu.memory_space<vmem>>, %arg21: memref<1x32xf32, #tpu.memory_space<vmem>>, %arg22: memref<1x8x32xf32, #tpu.memory_space<vmem>>, %arg23: memref<1x4x8x8xf32, #tpu.memory_space<vmem>>) attributes {dimension_semantics = [#tpu.dimension_semantics<parallel>, #tpu.dimension_semantics<parallel>], iteration_bounds = array<i64: 2, 1>, scalar_prefetch = 0 : i64, scratch_operands = 0 : i64, tpu.core_type = #tpu.core_type<tc>, window_params = [{transform_indices = @transform_0, window_bounds = array<i64: 1, 8, 32>}, {transform_indices = @transform_1, window_bounds = array<i64: 1, 8, 32>}, {transform_indices = @transform_2, window_bounds = array<i64: 1, 8, 8>}, {transform_indices = @transform_3, window_bounds = array<i64: 1, 8, 1>}, {transform_indices = @transform_4, window_bounds = array<i64: 1, 8, 32>}, {pipeline_mode = #tpu.pipeline_mode<synchronous>, transform_indices = @transform_5, window_bounds = array<i64: 4, 32, 8>}, {pipeline_mode = #tpu.pipeline_mode<synchronous>, transform_indices = @transform_6, window_bounds = array<i64: 4, 32, 8>}, {pipeline_mode = #tpu.pipeline_mode<synchronous>, transform_indices = @transform_7, window_bounds = array<i64: 4, 32, 8>}, {pipeline_mode = #tpu.pipeline_mode<synchronous>, transform_indices = @transform_8, window_bounds = array<i64: 4, 8, 32>}, {pipeline_mode = #tpu.pipeline_mode<synchronous>, transform_indices = @transform_9, window_bounds = array<i64: 1, 32>}, {pipeline_mode = #tpu.pipeline_mode<synchronous>, transform_indices = @transform_10, window_bounds = array<i64: 1, 32>}, {pipeline_mode = #tpu.pipeline_mode<synchronous>, transform_indices = @transform_11, window_bounds = array<i64: 1, 32>}, {pipeline_mode = #tpu.pipeline_mode<synchronous>, transform_indices = @transform_12, window_bounds = array<i64: 1, 32>}, {pipeline_mode = #tpu.pipeline_mode<synchronous>, transform_indices = @transform_13, window_bounds = array<i64: 1, 32>}, {pipeline_mode = #tpu.pipeline_mode<synchronous>, transform_indices = @transform_14, window_bounds = array<i64: 32, 128>}, {pipeline_mode = #tpu.pipeline_mode<synchronous>, transform_indices = @transform_15, window_bounds = array<i64: 1, 128>}, {pipeline_mode = #tpu.pipeline_mode<synchronous>, transform_indices = @transform_16, window_bounds = array<i64: 128, 32>}, {pipeline_mode = #tpu.pipeline_mode<synchronous>, transform_indices = @transform_17, window_bounds = array<i64: 1, 32>}, {pipeline_mode = #tpu.pipeline_mode<synchronous>, transform_indices = @transform_18, window_bounds = array<i64: 1, 32>}, {pipeline_mode = #tpu.pipeline_mode<synchronous>, transform_indices = @transform_19, window_bounds = array<i64: 1, 32>}, {transform_indices = @transform_20, window_bounds = array<i64: 1, 8, 32>}, {transform_indices = @transform_21, window_bounds = array<i64: 1, 4, 8, 8>}]} {
    %c0 = arith.constant 0 : index
    %c0_0 = arith.constant 0 : index
    %c0_1 = arith.constant 0 : index
    %0 = vector.load %arg2[%c0, %c0_0, %c0_1] : memref<1x8x32xf32, #tpu.memory_space<vmem>>, vector<1x8x32xf32>
    %1 = vector.shape_cast %0 : vector<1x8x32xf32> to vector<8x32xf32>
    %c0_2 = arith.constant 0 : index
    %c0_3 = arith.constant 0 : index
    %c0_4 = arith.constant 0 : index
    %2 = vector.load %arg3[%c0_2, %c0_3, %c0_4] : memref<1x8x32xf32, #tpu.memory_space<vmem>>, vector<1x8x32xf32>
    %3 = vector.shape_cast %2 : vector<1x8x32xf32> to vector<8x32xf32>
    %c0_5 = arith.constant 0 : index
    %c0_6 = arith.constant 0 : index
    %c0_7 = arith.constant 0 : index
    %4 = vector.load %arg4[%c0_5, %c0_6, %c0_7] : memref<1x8x8xbf16, #tpu.memory_space<vmem>>, vector<1x8x8xbf16>
    %5 = vector.shape_cast %4 : vector<1x8x8xbf16> to vector<8x8xbf16>
    %6 = arith.extf %5 : vector<8x8xbf16> to vector<8x8xf32>
    %c0_8 = arith.constant 0 : index
    %c0_9 = arith.constant 0 : index
    %c0_10 = arith.constant 0 : index
    %7 = vector.load %arg5[%c0_8, %c0_9, %c0_10] : memref<1x8x1xf32, #tpu.memory_space<vmem>>, vector<1x8x1xf32>
    %8 = vector.shape_cast %7 : vector<1x8x1xf32> to vector<8x1xf32>
    %9 = arith.truncf %1 : vector<8x32xf32> to vector<8x32xbf16>
    %10 = arith.truncf %3 : vector<8x32xf32> to vector<8x32xbf16>
    %c0_11 = arith.constant 0 : index
    %c0_12 = arith.constant 0 : index
    %c0_13 = arith.constant 0 : index
    %11 = vector.load %arg7[%c0_11, %c0_12, %c0_13] : memref<4x32x8xbf16, #tpu.memory_space<vmem>>, vector<1x32x8xbf16>
    %12 = vector.shape_cast %11 : vector<1x32x8xbf16> to vector<32x8xbf16>
    %cst = arith.constant dense<0.000000e+00> : vector<8x8xf32>
    %13 = tpu.matmul %9, %12, %cst {dimension_numbers = #tpu.dot_dimension_numbers<[1], [0], [0], [1], [0, 0, 1, 1], [], []>} : vector<8x32xbf16>, vector<32x8xbf16>, vector<8x8xf32> -> vector<8x8xf32>
    %c1 = arith.constant 1 : index
    %c0_14 = arith.constant 0 : index
    %c0_15 = arith.constant 0 : index
    %14 = vector.load %arg7[%c1, %c0_14, %c0_15] : memref<4x32x8xbf16, #tpu.memory_space<vmem>>, vector<1x32x8xbf16>
    %15 = vector.shape_cast %14 : vector<1x32x8xbf16> to vector<32x8xbf16>
    %cst_16 = arith.constant dense<0.000000e+00> : vector<8x8xf32>
    %16 = tpu.matmul %9, %15, %cst_16 {dimension_numbers = #tpu.dot_dimension_numbers<[1], [0], [0], [1], [0, 0, 1, 1], [], []>} : vector<8x32xbf16>, vector<32x8xbf16>, vector<8x8xf32> -> vector<8x8xf32>
    %c2 = arith.constant 2 : index
    %c0_17 = arith.constant 0 : index
    %c0_18 = arith.constant 0 : index
    %17 = vector.load %arg7[%c2, %c0_17, %c0_18] : memref<4x32x8xbf16, #tpu.memory_space<vmem>>, vector<1x32x8xbf16>
    %18 = vector.shape_cast %17 : vector<1x32x8xbf16> to vector<32x8xbf16>
    %cst_19 = arith.constant dense<0.000000e+00> : vector<8x8xf32>
    %19 = tpu.matmul %9, %18, %cst_19 {dimension_numbers = #tpu.dot_dimension_numbers<[1], [0], [0], [1], [0, 0, 1, 1], [], []>} : vector<8x32xbf16>, vector<32x8xbf16>, vector<8x8xf32> -> vector<8x8xf32>
    %c3 = arith.constant 3 : index
    %c0_20 = arith.constant 0 : index
    %c0_21 = arith.constant 0 : index
    %20 = vector.load %arg7[%c3, %c0_20, %c0_21] : memref<4x32x8xbf16, #tpu.memory_space<vmem>>, vector<1x32x8xbf16>
    %21 = vector.shape_cast %20 : vector<1x32x8xbf16> to vector<32x8xbf16>
    %cst_22 = arith.constant dense<0.000000e+00> : vector<8x8xf32>
    %22 = tpu.matmul %9, %21, %cst_22 {dimension_numbers = #tpu.dot_dimension_numbers<[1], [0], [0], [1], [0, 0, 1, 1], [], []>} : vector<8x32xbf16>, vector<32x8xbf16>, vector<8x8xf32> -> vector<8x8xf32>
    %23 = vector.shape_cast %13 : vector<8x8xf32> to vector<1x8x8xf32>
    %24 = vector.shape_cast %16 : vector<8x8xf32> to vector<1x8x8xf32>
    %25 = vector.shape_cast %19 : vector<8x8xf32> to vector<1x8x8xf32>
    %26 = vector.shape_cast %22 : vector<8x8xf32> to vector<1x8x8xf32>
    %27 = tpu.concatenate %23, %24, %25, %26 in 0 : vector<1x8x8xf32>, vector<1x8x8xf32>, vector<1x8x8xf32>, vector<1x8x8xf32> -> vector<4x8x8xf32>
    %c0_23 = arith.constant 0 : index
    %c0_24 = arith.constant 0 : index
    %c0_25 = arith.constant 0 : index
    %28 = vector.load %arg8[%c0_23, %c0_24, %c0_25] : memref<4x32x8xbf16, #tpu.memory_space<vmem>>, vector<1x32x8xbf16>
    %29 = vector.shape_cast %28 : vector<1x32x8xbf16> to vector<32x8xbf16>
    %cst_26 = arith.constant dense<0.000000e+00> : vector<8x8xf32>
    %30 = tpu.matmul %10, %29, %cst_26 {dimension_numbers = #tpu.dot_dimension_numbers<[1], [0], [0], [1], [0, 0, 1, 1], [], []>} : vector<8x32xbf16>, vector<32x8xbf16>, vector<8x8xf32> -> vector<8x8xf32>
    %c1_27 = arith.constant 1 : index
    %c0_28 = arith.constant 0 : index
    %c0_29 = arith.constant 0 : index
    %31 = vector.load %arg8[%c1_27, %c0_28, %c0_29] : memref<4x32x8xbf16, #tpu.memory_space<vmem>>, vector<1x32x8xbf16>
    %32 = vector.shape_cast %31 : vector<1x32x8xbf16> to vector<32x8xbf16>
    %cst_30 = arith.constant dense<0.000000e+00> : vector<8x8xf32>
    %33 = tpu.matmul %10, %32, %cst_30 {dimension_numbers = #tpu.dot_dimension_numbers<[1], [0], [0], [1], [0, 0, 1, 1], [], []>} : vector<8x32xbf16>, vector<32x8xbf16>, vector<8x8xf32> -> vector<8x8xf32>
    %c2_31 = arith.constant 2 : index
    %c0_32 = arith.constant 0 : index
    %c0_33 = arith.constant 0 : index
    %34 = vector.load %arg8[%c2_31, %c0_32, %c0_33] : memref<4x32x8xbf16, #tpu.memory_space<vmem>>, vector<1x32x8xbf16>
    %35 = vector.shape_cast %34 : vector<1x32x8xbf16> to vector<32x8xbf16>
    %cst_34 = arith.constant dense<0.000000e+00> : vector<8x8xf32>
    %36 = tpu.matmul %10, %35, %cst_34 {dimension_numbers = #tpu.dot_dimension_numbers<[1], [0], [0], [1], [0, 0, 1, 1], [], []>} : vector<8x32xbf16>, vector<32x8xbf16>, vector<8x8xf32> -> vector<8x8xf32>
    %c3_35 = arith.constant 3 : index
    %c0_36 = arith.constant 0 : index
    %c0_37 = arith.constant 0 : index
    %37 = vector.load %arg8[%c3_35, %c0_36, %c0_37] : memref<4x32x8xbf16, #tpu.memory_space<vmem>>, vector<1x32x8xbf16>
    %38 = vector.shape_cast %37 : vector<1x32x8xbf16> to vector<32x8xbf16>
    %cst_38 = arith.constant dense<0.000000e+00> : vector<8x8xf32>
    %39 = tpu.matmul %10, %38, %cst_38 {dimension_numbers = #tpu.dot_dimension_numbers<[1], [0], [0], [1], [0, 0, 1, 1], [], []>} : vector<8x32xbf16>, vector<32x8xbf16>, vector<8x8xf32> -> vector<8x8xf32>
    %40 = vector.shape_cast %30 : vector<8x8xf32> to vector<1x8x8xf32>
    %41 = vector.shape_cast %33 : vector<8x8xf32> to vector<1x8x8xf32>
    %42 = vector.shape_cast %36 : vector<8x8xf32> to vector<1x8x8xf32>
    %43 = vector.shape_cast %39 : vector<8x8xf32> to vector<1x8x8xf32>
    %44 = tpu.concatenate %40, %41, %42, %43 in 0 : vector<1x8x8xf32>, vector<1x8x8xf32>, vector<1x8x8xf32>, vector<1x8x8xf32> -> vector<4x8x8xf32>
    %c0_39 = arith.constant 0 : index
    %c0_40 = arith.constant 0 : index
    %c0_41 = arith.constant 0 : index
    %45 = vector.load %arg9[%c0_39, %c0_40, %c0_41] : memref<4x32x8xbf16, #tpu.memory_space<vmem>>, vector<1x32x8xbf16>
    %46 = vector.shape_cast %45 : vector<1x32x8xbf16> to vector<32x8xbf16>
    %cst_42 = arith.constant dense<0.000000e+00> : vector<8x8xf32>
    %47 = tpu.matmul %10, %46, %cst_42 {dimension_numbers = #tpu.dot_dimension_numbers<[1], [0], [0], [1], [0, 0, 1, 1], [], []>} : vector<8x32xbf16>, vector<32x8xbf16>, vector<8x8xf32> -> vector<8x8xf32>
    %c1_43 = arith.constant 1 : index
    %c0_44 = arith.constant 0 : index
    %c0_45 = arith.constant 0 : index
    %48 = vector.load %arg9[%c1_43, %c0_44, %c0_45] : memref<4x32x8xbf16, #tpu.memory_space<vmem>>, vector<1x32x8xbf16>
    %49 = vector.shape_cast %48 : vector<1x32x8xbf16> to vector<32x8xbf16>
    %cst_46 = arith.constant dense<0.000000e+00> : vector<8x8xf32>
    %50 = tpu.matmul %10, %49, %cst_46 {dimension_numbers = #tpu.dot_dimension_numbers<[1], [0], [0], [1], [0, 0, 1, 1], [], []>} : vector<8x32xbf16>, vector<32x8xbf16>, vector<8x8xf32> -> vector<8x8xf32>
    %c2_47 = arith.constant 2 : index
    %c0_48 = arith.constant 0 : index
    %c0_49 = arith.constant 0 : index
    %51 = vector.load %arg9[%c2_47, %c0_48, %c0_49] : memref<4x32x8xbf16, #tpu.memory_space<vmem>>, vector<1x32x8xbf16>
    %52 = vector.shape_cast %51 : vector<1x32x8xbf16> to vector<32x8xbf16>
    %cst_50 = arith.constant dense<0.000000e+00> : vector<8x8xf32>
    %53 = tpu.matmul %10, %52, %cst_50 {dimension_numbers = #tpu.dot_dimension_numbers<[1], [0], [0], [1], [0, 0, 1, 1], [], []>} : vector<8x32xbf16>, vector<32x8xbf16>, vector<8x8xf32> -> vector<8x8xf32>
    %c3_51 = arith.constant 3 : index
    %c0_52 = arith.constant 0 : index
    %c0_53 = arith.constant 0 : index
    %54 = vector.load %arg9[%c3_51, %c0_52, %c0_53] : memref<4x32x8xbf16, #tpu.memory_space<vmem>>, vector<1x32x8xbf16>
    %55 = vector.shape_cast %54 : vector<1x32x8xbf16> to vector<32x8xbf16>
    %cst_54 = arith.constant dense<0.000000e+00> : vector<8x8xf32>
    %56 = tpu.matmul %10, %55, %cst_54 {dimension_numbers = #tpu.dot_dimension_numbers<[1], [0], [0], [1], [0, 0, 1, 1], [], []>} : vector<8x32xbf16>, vector<32x8xbf16>, vector<8x8xf32> -> vector<8x8xf32>
    %57 = vector.shape_cast %47 : vector<8x8xf32> to vector<1x8x8xf32>
    %58 = vector.shape_cast %50 : vector<8x8xf32> to vector<1x8x8xf32>
    %59 = vector.shape_cast %53 : vector<8x8xf32> to vector<1x8x8xf32>
    %60 = vector.shape_cast %56 : vector<8x8xf32> to vector<1x8x8xf32>
    %61 = tpu.concatenate %57, %58, %59, %60 in 0 : vector<1x8x8xf32>, vector<1x8x8xf32>, vector<1x8x8xf32>, vector<1x8x8xf32> -> vector<4x8x8xf32>
    %cst_55 = arith.constant 0.353553385 : f32
    %62 = vector.broadcast %cst_55 : f32 to vector<4x8x8xf32>
    %63 = arith.mulf %27, %62 : vector<4x8x8xf32>
    %64 = arith.truncf %63 : vector<4x8x8xf32> to vector<4x8x8xbf16>
    %65 = arith.truncf %44 : vector<4x8x8xf32> to vector<4x8x8xbf16>
    "tpu.trace_start"() <{level = 10 : i32, message = "hqd,hkd->hqk"}> : () -> ()
    %cst_56 = arith.constant dense<0.000000e+00> : vector<4x8x8xf32>
    %66 = tpu.matmul %64, %65, %cst_56 {dimension_numbers = #tpu.dot_dimension_numbers<[2], [2], [1], [1], [0, 0, 0, 1, 1, 1], [0], [0]>} : vector<4x8x8xbf16>, vector<4x8x8xbf16>, vector<4x8x8xf32> -> vector<4x8x8xf32>
    "tpu.trace_stop"() : () -> ()
    %67 = vector.shape_cast %6 : vector<8x8xf32> to vector<1x8x8xf32>
    %68 = vector.broadcast %67 : vector<1x8x8xf32> to vector<4x8x8xf32>
    %69 = arith.addf %66, %68 : vector<4x8x8xf32>
    %cst_57 = arith.constant dense<0xFF800000> : vector<4x8xf32>
    %70 = vector.multi_reduction <maximumf>, %69, %cst_57 [2] : vector<4x8x8xf32> to vector<4x8xf32>
    %71 = vector.shape_cast %70 : vector<4x8xf32> to vector<4x8x1xf32>
    %72 = vector.broadcast %71 : vector<4x8x1xf32> to vector<4x8x8xf32>
    %73 = arith.subf %69, %72 : vector<4x8x8xf32>
    %74 = math.exp %73 : vector<4x8x8xf32>
    %cst_58 = arith.constant dense<0.000000e+00> : vector<4x8xf32>
    %75 = vector.multi_reduction <add>, %74, %cst_58 [2] : vector<4x8x8xf32> to vector<4x8xf32>
    %76 = vector.shape_cast %75 : vector<4x8xf32> to vector<4x8x1xf32>
    %77 = tpu.reciprocal %76 {approx = true} : vector<4x8x1xf32> -> vector<4x8x1xf32>
    %78 = vector.broadcast %77 : vector<4x8x1xf32> to vector<4x8x8xf32>
    %79 = arith.mulf %74, %78 : vector<4x8x8xf32>
    %80 = vector.shape_cast %8 : vector<8x1xf32> to vector<1x8x1xf32>
    %81 = vector.broadcast %80 : vector<1x8x1xf32> to vector<4x8x8xf32>
    %82 = arith.mulf %79, %81 : vector<4x8x8xf32>
    %83 = arith.truncf %82 : vector<4x8x8xf32> to vector<4x8x8xbf16>
    %84 = arith.truncf %61 : vector<4x8x8xf32> to vector<4x8x8xbf16>
    "tpu.trace_start"() <{level = 10 : i32, message = "hqk,hkd->hqd"}> : () -> ()
    %cst_59 = arith.constant dense<0.000000e+00> : vector<4x8x8xf32>
    %85 = tpu.matmul %83, %84, %cst_59 {dimension_numbers = #tpu.dot_dimension_numbers<[2], [1], [1], [2], [0, 0, 0, 1, 1, 2], [0], [0]>} : vector<4x8x8xbf16>, vector<4x8x8xbf16>, vector<4x8x8xf32> -> vector<4x8x8xf32>
    "tpu.trace_stop"() : () -> ()
    %c0_60 = arith.constant 0 : index
    %c0_61 = arith.constant 0 : index
    %86 = vector.load %arg11[%c0_60, %c0_61] : memref<1x32xf32, #tpu.memory_space<vmem>>, vector<1x32xf32>
    %87 = vector.extract_strided_slice %85 {offsets = [0, 0, 0], sizes = [1, 8, 8], strides = [1, 1, 1]} : vector<4x8x8xf32> to vector<1x8x8xf32>
    %88 = vector.shape_cast %87 : vector<1x8x8xf32> to vector<8x8xf32>
    %89 = arith.truncf %88 : vector<8x8xf32> to vector<8x8xbf16>
    %c0_62 = arith.constant 0 : index
    %c0_63 = arith.constant 0 : index
    %c0_64 = arith.constant 0 : index
    %90 = vector.load %arg10[%c0_62, %c0_63, %c0_64] : memref<4x8x32xbf16, #tpu.memory_space<vmem>>, vector<1x8x32xbf16>
    %91 = vector.shape_cast %90 : vector<1x8x32xbf16> to vector<8x32xbf16>
    %cst_65 = arith.constant dense<0.000000e+00> : vector<8x32xf32>
    %92 = tpu.matmul %89, %91, %cst_65 {dimension_numbers = #tpu.dot_dimension_numbers<[1], [0], [0], [1], [0, 0, 1, 1], [], []>} : vector<8x8xbf16>, vector<8x32xbf16>, vector<8x32xf32> -> vector<8x32xf32>
    %93 = vector.broadcast %86 : vector<1x32xf32> to vector<8x32xf32>
    %94 = arith.addf %93, %92 : vector<8x32xf32>
    %95 = vector.extract_strided_slice %85 {offsets = [1, 0, 0], sizes = [1, 8, 8], strides = [1, 1, 1]} : vector<4x8x8xf32> to vector<1x8x8xf32>
    %96 = vector.shape_cast %95 : vector<1x8x8xf32> to vector<8x8xf32>
    %97 = arith.truncf %96 : vector<8x8xf32> to vector<8x8xbf16>
    %c1_66 = arith.constant 1 : index
    %c0_67 = arith.constant 0 : index
    %c0_68 = arith.constant 0 : index
    %98 = vector.load %arg10[%c1_66, %c0_67, %c0_68] : memref<4x8x32xbf16, #tpu.memory_space<vmem>>, vector<1x8x32xbf16>
    %99 = vector.shape_cast %98 : vector<1x8x32xbf16> to vector<8x32xbf16>
    %cst_69 = arith.constant dense<0.000000e+00> : vector<8x32xf32>
    %100 = tpu.matmul %97, %99, %cst_69 {dimension_numbers = #tpu.dot_dimension_numbers<[1], [0], [0], [1], [0, 0, 1, 1], [], []>} : vector<8x8xbf16>, vector<8x32xbf16>, vector<8x32xf32> -> vector<8x32xf32>
    %101 = arith.addf %94, %100 : vector<8x32xf32>
    %102 = vector.extract_strided_slice %85 {offsets = [2, 0, 0], sizes = [1, 8, 8], strides = [1, 1, 1]} : vector<4x8x8xf32> to vector<1x8x8xf32>
    %103 = vector.shape_cast %102 : vector<1x8x8xf32> to vector<8x8xf32>
    %104 = arith.truncf %103 : vector<8x8xf32> to vector<8x8xbf16>
    %c2_70 = arith.constant 2 : index
    %c0_71 = arith.constant 0 : index
    %c0_72 = arith.constant 0 : index
    %105 = vector.load %arg10[%c2_70, %c0_71, %c0_72] : memref<4x8x32xbf16, #tpu.memory_space<vmem>>, vector<1x8x32xbf16>
    %106 = vector.shape_cast %105 : vector<1x8x32xbf16> to vector<8x32xbf16>
    %cst_73 = arith.constant dense<0.000000e+00> : vector<8x32xf32>
    %107 = tpu.matmul %104, %106, %cst_73 {dimension_numbers = #tpu.dot_dimension_numbers<[1], [0], [0], [1], [0, 0, 1, 1], [], []>} : vector<8x8xbf16>, vector<8x32xbf16>, vector<8x32xf32> -> vector<8x32xf32>
    %108 = arith.addf %101, %107 : vector<8x32xf32>
    %109 = vector.extract_strided_slice %85 {offsets = [3, 0, 0], sizes = [1, 8, 8], strides = [1, 1, 1]} : vector<4x8x8xf32> to vector<1x8x8xf32>
    %110 = vector.shape_cast %109 : vector<1x8x8xf32> to vector<8x8xf32>
    %111 = arith.truncf %110 : vector<8x8xf32> to vector<8x8xbf16>
    %c3_74 = arith.constant 3 : index
    %c0_75 = arith.constant 0 : index
    %c0_76 = arith.constant 0 : index
    %112 = vector.load %arg10[%c3_74, %c0_75, %c0_76] : memref<4x8x32xbf16, #tpu.memory_space<vmem>>, vector<1x8x32xbf16>
    %113 = vector.shape_cast %112 : vector<1x8x32xbf16> to vector<8x32xbf16>
    %cst_77 = arith.constant dense<0.000000e+00> : vector<8x32xf32>
    %114 = tpu.matmul %111, %113, %cst_77 {dimension_numbers = #tpu.dot_dimension_numbers<[1], [0], [0], [1], [0, 0, 1, 1], [], []>} : vector<8x8xbf16>, vector<8x32xbf16>, vector<8x32xf32> -> vector<8x32xf32>
    %115 = arith.addf %108, %114 : vector<8x32xf32>
    %116 = arith.addf %115, %1 : vector<8x32xf32>
    %c0_78 = arith.constant 0 : index
    %c0_79 = arith.constant 0 : index
    %c0_80 = arith.constant 0 : index
    %c0_81 = arith.constant 0 : index
    %117 = vector.load %arg23[%c0_78, %c0_79, %c0_80, %c0_81] : memref<1x4x8x8xf32, #tpu.memory_space<vmem>>, vector<1x4x8x8xf32>
    %118 = vector.shape_cast %117 : vector<1x4x8x8xf32> to vector<4x8x8xf32>
    %119 = vector.shape_cast %82 : vector<4x8x8xf32> to vector<1x4x8x8xf32>
    tpu.vector_store %arg23[%c0_78, %c0_79, %c0_80, %c0_81], %119 {strides = array<i32>} : memref<1x4x8x8xf32, #tpu.memory_space<vmem>>, vector<1x4x8x8xf32>,
    %c0_82 = arith.constant 0 : index
    %c0_83 = arith.constant 0 : index
    %120 = vector.load %arg12[%c0_82, %c0_83] : memref<1x32xf32, #tpu.memory_space<vmem>>, vector<1x32xf32>
    %c0_84 = arith.constant 0 : index
    %c0_85 = arith.constant 0 : index
    %121 = vector.load %arg13[%c0_84, %c0_85] : memref<1x32xf32, #tpu.memory_space<vmem>>, vector<1x32xf32>
    %cst_86 = arith.constant dense<0.000000e+00> : vector<8xf32>
    %122 = vector.multi_reduction <add>, %116, %cst_86 [1] : vector<8x32xf32> to vector<8xf32>
    %123 = vector.shape_cast %122 : vector<8xf32> to vector<8x1xf32>
    %cst_87 = arith.constant 3.200000e+01 : f32
    %124 = vector.broadcast %cst_87 : f32 to vector<8x1xf32>
    %125 = arith.divf %123, %124 : vector<8x1xf32>
    %126 = vector.broadcast %125 : vector<8x1xf32> to vector<8x32xf32>
    %127 = arith.subf %116, %126 : vector<8x32xf32>
    %128 = arith.mulf %127, %127 : vector<8x32xf32>
    %cst_88 = arith.constant dense<0.000000e+00> : vector<8xf32>
    %129 = vector.multi_reduction <add>, %128, %cst_88 [1] : vector<8x32xf32> to vector<8xf32>
    %130 = vector.shape_cast %129 : vector<8xf32> to vector<8x1xf32>
    %cst_89 = arith.constant 3.200000e+01 : f32
    %131 = vector.broadcast %cst_89 : f32 to vector<8x1xf32>
    %132 = arith.divf %130, %131 : vector<8x1xf32>
    %133 = vector.broadcast %125 : vector<8x1xf32> to vector<8x32xf32>
    %134 = arith.subf %116, %133 : vector<8x32xf32>
    %cst_90 = arith.constant 9.99999974E-6 : f32
    %135 = vector.broadcast %cst_90 : f32 to vector<8x1xf32>
    %136 = arith.addf %132, %135 : vector<8x1xf32>
    %137 = math.rsqrt %136 : vector<8x1xf32>
    %138 = vector.broadcast %137 : vector<8x1xf32> to vector<8x32xf32>
    %139 = arith.mulf %134, %138 : vector<8x32xf32>
    %140 = vector.broadcast %120 : vector<1x32xf32> to vector<8x32xf32>
    %141 = arith.mulf %139, %140 : vector<8x32xf32>
    %142 = vector.broadcast %121 : vector<1x32xf32> to vector<8x32xf32>
    %143 = arith.addf %141, %142 : vector<8x32xf32>
    %c0_91 = arith.constant 0 : index
    %c0_92 = arith.constant 0 : index
    %c0_93 = arith.constant 0 : index
    %144 = vector.load %arg6[%c0_91, %c0_92, %c0_93] : memref<1x8x32xf32, #tpu.memory_space<vmem>>, vector<1x8x32xf32>
    %145 = vector.shape_cast %144 : vector<1x8x32xf32> to vector<8x32xf32>
    %146 = vector.broadcast %8 : vector<8x1xf32> to vector<8x32xf32>
    %147 = arith.mulf %145, %146 : vector<8x32xf32>
    %148 = arith.addf %143, %147 : vector<8x32xf32>
    %c0_94 = arith.constant 0 : index
    %c0_95 = arith.constant 0 : index
    %149 = vector.load %arg14[%c0_94, %c0_95] : memref<1x32xf32, #tpu.memory_space<vmem>>, vector<1x32xf32>
    %c0_96 = arith.constant 0 : index
    %c0_97 = arith.constant 0 : index
    %150 = vector.load %arg15[%c0_96, %c0_97] : memref<1x32xf32, #tpu.memory_space<vmem>>, vector<1x32xf32>
    %cst_98 = arith.constant dense<0.000000e+00> : vector<8xf32>
    %151 = vector.multi_reduction <add>, %148, %cst_98 [1] : vector<8x32xf32> to vector<8xf32>
    %152 = vector.shape_cast %151 : vector<8xf32> to vector<8x1xf32>
    %cst_99 = arith.constant 3.200000e+01 : f32
    %153 = vector.broadcast %cst_99 : f32 to vector<8x1xf32>
    %154 = arith.divf %152, %153 : vector<8x1xf32>
    %155 = vector.broadcast %154 : vector<8x1xf32> to vector<8x32xf32>
    %156 = arith.subf %148, %155 : vector<8x32xf32>
    %157 = arith.mulf %156, %156 : vector<8x32xf32>
    %cst_100 = arith.constant dense<0.000000e+00> : vector<8xf32>
    %158 = vector.multi_reduction <add>, %157, %cst_100 [1] : vector<8x32xf32> to vector<8xf32>
    %159 = vector.shape_cast %158 : vector<8xf32> to vector<8x1xf32>
    %cst_101 = arith.constant 3.200000e+01 : f32
    %160 = vector.broadcast %cst_101 : f32 to vector<8x1xf32>
    %161 = arith.divf %159, %160 : vector<8x1xf32>
    %162 = vector.broadcast %154 : vector<8x1xf32> to vector<8x32xf32>
    %163 = arith.subf %148, %162 : vector<8x32xf32>
    %cst_102 = arith.constant 9.99999974E-6 : f32
    %164 = vector.broadcast %cst_102 : f32 to vector<8x1xf32>
    %165 = arith.addf %161, %164 : vector<8x1xf32>
    %166 = math.rsqrt %165 : vector<8x1xf32>
    %167 = vector.broadcast %166 : vector<8x1xf32> to vector<8x32xf32>
    %168 = arith.mulf %163, %167 : vector<8x32xf32>
    %169 = vector.broadcast %149 : vector<1x32xf32> to vector<8x32xf32>
    %170 = arith.mulf %168, %169 : vector<8x32xf32>
    %171 = vector.broadcast %150 : vector<1x32xf32> to vector<8x32xf32>
    %172 = arith.addf %170, %171 : vector<8x32xf32>
    %173 = arith.truncf %172 : vector<8x32xf32> to vector<8x32xbf16>
    %c0_103 = arith.constant 0 : index
    %c0_104 = arith.constant 0 : index
    %174 = vector.load %arg16[%c0_103, %c0_104] : memref<32x128xbf16, #tpu.memory_space<vmem>>, vector<32x128xbf16>
    %cst_105 = arith.constant dense<0.000000e+00> : vector<8x128xf32>
    %175 = tpu.matmul %173, %174, %cst_105 {dimension_numbers = #tpu.dot_dimension_numbers<[1], [0], [0], [1], [0, 0, 1, 1], [], []>} : vector<8x32xbf16>, vector<32x128xbf16>, vector<8x128xf32> -> vector<8x128xf32>
    %c0_106 = arith.constant 0 : index
    %c0_107 = arith.constant 0 : index
    %176 = vector.load %arg17[%c0_106, %c0_107] : memref<1x128xf32, #tpu.memory_space<vmem>>, vector<1x128xf32>
    %177 = vector.broadcast %176 : vector<1x128xf32> to vector<8x128xf32>
    %178 = arith.addf %175, %177 : vector<8x128xf32>
    %cst_108 = arith.constant 0.000000e+00 : f32
    %179 = vector.broadcast %cst_108 : f32 to vector<8x128xf32>
    %180 = arith.maximumf %178, %179 : vector<8x128xf32>
    %181 = arith.truncf %180 : vector<8x128xf32> to vector<8x128xbf16>
    %c0_109 = arith.constant 0 : index
    %c0_110 = arith.constant 0 : index
    %182 = vector.load %arg18[%c0_109, %c0_110] : memref<128x32xbf16, #tpu.memory_space<vmem>>, vector<128x32xbf16>
    %cst_111 = arith.constant dense<0.000000e+00> : vector<8x32xf32>
    %183 = tpu.matmul %181, %182, %cst_111 {dimension_numbers = #tpu.dot_dimension_numbers<[1], [0], [0], [1], [0, 0, 1, 1], [], []>} : vector<8x128xbf16>, vector<128x32xbf16>, vector<8x32xf32> -> vector<8x32xf32>
    %c0_112 = arith.constant 0 : index
    %c0_113 = arith.constant 0 : index
    %184 = vector.load %arg19[%c0_112, %c0_113] : memref<1x32xf32, #tpu.memory_space<vmem>>, vector<1x32xf32>
    %185 = vector.broadcast %184 : vector<1x32xf32> to vector<8x32xf32>
    %186 = arith.addf %183, %185 : vector<8x32xf32>
    %187 = vector.broadcast %8 : vector<8x1xf32> to vector<8x32xf32>
    %188 = arith.mulf %186, %187 : vector<8x32xf32>
    %189 = arith.addf %172, %188 : vector<8x32xf32>
    %c0_114 = arith.constant 0 : index
    %c0_115 = arith.constant 0 : index
    %190 = vector.load %arg20[%c0_114, %c0_115] : memref<1x32xf32, #tpu.memory_space<vmem>>, vector<1x32xf32>
    %c0_116 = arith.constant 0 : index
    %c0_117 = arith.constant 0 : index
    %191 = vector.load %arg21[%c0_116, %c0_117] : memref<1x32xf32, #tpu.memory_space<vmem>>, vector<1x32xf32>
    %cst_118 = arith.constant dense<0.000000e+00> : vector<8xf32>
    %192 = vector.multi_reduction <add>, %189, %cst_118 [1] : vector<8x32xf32> to vector<8xf32>
    %193 = vector.shape_cast %192 : vector<8xf32> to vector<8x1xf32>
    %cst_119 = arith.constant 3.200000e+01 : f32
    %194 = vector.broadcast %cst_119 : f32 to vector<8x1xf32>
    %195 = arith.divf %193, %194 : vector<8x1xf32>
    %196 = vector.broadcast %195 : vector<8x1xf32> to vector<8x32xf32>
    %197 = arith.subf %189, %196 : vector<8x32xf32>
    %198 = arith.mulf %197, %197 : vector<8x32xf32>
    %cst_120 = arith.constant dense<0.000000e+00> : vector<8xf32>
    %199 = vector.multi_reduction <add>, %198, %cst_120 [1] : vector<8x32xf32> to vector<8xf32>
    %200 = vector.shape_cast %199 : vector<8xf32> to vector<8x1xf32>
    %cst_121 = arith.constant 3.200000e+01 : f32
    %201 = vector.broadcast %cst_121 : f32 to vector<8x1xf32>
    %202 = arith.divf %200, %201 : vector<8x1xf32>
    %203 = vector.broadcast %195 : vector<8x1xf32> to vector<8x32xf32>
    %204 = arith.subf %189, %203 : vector<8x32xf32>
    %cst_122 = arith.constant 9.99999974E-6 : f32
    %205 = vector.broadcast %cst_122 : f32 to vector<8x1xf32>
    %206 = arith.addf %202, %205 : vector<8x1xf32>
    %207 = math.rsqrt %206 : vector<8x1xf32>
    %208 = vector.broadcast %207 : vector<8x1xf32> to vector<8x32xf32>
    %209 = arith.mulf %204, %208 : vector<8x32xf32>
    %210 = vector.broadcast %190 : vector<1x32xf32> to vector<8x32xf32>
    %211 = arith.mulf %209, %210 : vector<8x32xf32>
    %212 = vector.broadcast %191 : vector<1x32xf32> to vector<8x32xf32>
    %213 = arith.addf %211, %212 : vector<8x32xf32>
    %c0_123 = arith.constant 0 : index
    %c0_124 = arith.constant 0 : index
    %c0_125 = arith.constant 0 : index
    %214 = vector.load %arg22[%c0_123, %c0_124, %c0_125] : memref<1x8x32xf32, #tpu.memory_space<vmem>>, vector<1x8x32xf32>
    %215 = vector.shape_cast %214 : vector<1x8x32xf32> to vector<8x32xf32>
    %216 = vector.shape_cast %213 : vector<8x32xf32> to vector<1x8x32xf32>
    tpu.vector_store %arg22[%c0_123, %c0_124, %c0_125], %216 {strides = array<i32>} : memref<1x8x32xf32, #tpu.memory_space<vmem>>, vector<1x8x32xf32>,
    return
  }
  func.func @transform_0(%arg0: i32, %arg1: i32) -> (i32, i32, i32) {
    %c0_i32 = arith.constant 0 : i32
    %c0_i32_0 = arith.constant 0 : i32
    return %arg0, %arg1, %c0_i32 : i32, i32, i32
  }
  func.func @transform_1(%arg0: i32, %arg1: i32) -> (i32, i32, i32) {
    %c0_i32 = arith.constant 0 : i32
    %c0_i32_0 = arith.constant 0 : i32
    %c0_i32_1 = arith.constant 0 : i32
    return %arg0, %c0_i32, %c0_i32_0 : i32, i32, i32
  }
  func.func @transform_2(%arg0: i32, %arg1: i32) -> (i32, i32, i32) {
    %c0_i32 = arith.constant 0 : i32
    %c0_i32_0 = arith.constant 0 : i32
    return %arg0, %arg1, %c0_i32 : i32, i32, i32
  }
  func.func @transform_3(%arg0: i32, %arg1: i32) -> (i32, i32, i32) {
    %c0_i32 = arith.constant 0 : i32
    %c0_i32_0 = arith.constant 0 : i32
    return %arg0, %arg1, %c0_i32 : i32, i32, i32
  }
  func.func @transform_4(%arg0: i32, %arg1: i32) -> (i32, i32, i32) {
    %c0_i32 = arith.constant 0 : i32
    %c0_i32_0 = arith.constant 0 : i32
    return %arg0, %arg1, %c0_i32 : i32, i32, i32
  }
  func.func @transform_5(%arg0: i32, %arg1: i32) -> (i32, i32, i32) {
    %c0_i32 = arith.constant 0 : i32
    %c0_i32_0 = arith.constant 0 : i32
    %c0_i32_1 = arith.constant 0 : i32
    %c0_i32_2 = arith.constant 0 : i32
    return %c0_i32, %c0_i32_0, %c0_i32_1 : i32, i32, i32
  }
  func.func @transform_6(%arg0: i32, %arg1: i32) -> (i32, i32, i32) {
    %c0_i32 = arith.constant 0 : i32
    %c0_i32_0 = arith.constant 0 : i32
    %c0_i32_1 = arith.constant 0 : i32
    %c0_i32_2 = arith.constant 0 : i32
    return %c0_i32, %c0_i32_0, %c0_i32_1 : i32, i32, i32
  }
  func.func @transform_7(%arg0: i32, %arg1: i32) -> (i32, i32, i32) {
    %c0_i32 = arith.constant 0 : i32
    %c0_i32_0 = arith.constant 0 : i32
    %c0_i32_1 = arith.constant 0 : i32
    %c0_i32_2 = arith.constant 0 : i32
    return %c0_i32, %c0_i32_0, %c0_i32_1 : i32, i32, i32
  }
  func.func @transform_8(%arg0: i32, %arg1: i32) -> (i32, i32, i32) {
    %c0_i32 = arith.constant 0 : i32
    %c0_i32_0 = arith.constant 0 : i32
    %c0_i32_1 = arith.constant 0 : i32
    %c0_i32_2 = arith.constant 0 : i32
    return %c0_i32, %c0_i32_0, %c0_i32_1 : i32, i32, i32
  }
  func.func @transform_9(%arg0: i32, %arg1: i32) -> (i32, i32) {
    %c0_i32 = arith.constant 0 : i32
    %c0_i32_0 = arith.constant 0 : i32
    %c0_i32_1 = arith.constant 0 : i32
    return %c0_i32, %c0_i32_0 : i32, i32
  }
  func.func @transform_10(%arg0: i32, %arg1: i32) -> (i32, i32) {
    %c0_i32 = arith.constant 0 : i32
    %c0_i32_0 = arith.constant 0 : i32
    %c0_i32_1 = arith.constant 0 : i32
    return %c0_i32, %c0_i32_0 : i32, i32
  }
  func.func @transform_11(%arg0: i32, %arg1: i32) -> (i32, i32) {
    %c0_i32 = arith.constant 0 : i32
    %c0_i32_0 = arith.constant 0 : i32
    %c0_i32_1 = arith.constant 0 : i32
    return %c0_i32, %c0_i32_0 : i32, i32
  }
  func.func @transform_12(%arg0: i32, %arg1: i32) -> (i32, i32) {
    %c0_i32 = arith.constant 0 : i32
    %c0_i32_0 = arith.constant 0 : i32
    %c0_i32_1 = arith.constant 0 : i32
    return %c0_i32, %c0_i32_0 : i32, i32
  }
  func.func @transform_13(%arg0: i32, %arg1: i32) -> (i32, i32) {
    %c0_i32 = arith.constant 0 : i32
    %c0_i32_0 = arith.constant 0 : i32
    %c0_i32_1 = arith.constant 0 : i32
    return %c0_i32, %c0_i32_0 : i32, i32
  }
  func.func @transform_14(%arg0: i32, %arg1: i32) -> (i32, i32) {
    %c0_i32 = arith.constant 0 : i32
    %c0_i32_0 = arith.constant 0 : i32
    %c0_i32_1 = arith.constant 0 : i32
    return %c0_i32, %c0_i32_0 : i32, i32
  }
  func.func @transform_15(%arg0: i32, %arg1: i32) -> (i32, i32) {
    %c0_i32 = arith.constant 0 : i32
    %c0_i32_0 = arith.constant 0 : i32
    %c0_i32_1 = arith.constant 0 : i32
    return %c0_i32, %c0_i32_0 : i32, i32
  }
  func.func @transform_16(%arg0: i32, %arg1: i32) -> (i32, i32) {
    %c0_i32 = arith.constant 0 : i32
    %c0_i32_0 = arith.constant 0 : i32
    %c0_i32_1 = arith.constant 0 : i32
    return %c0_i32, %c0_i32_0 : i32, i32
  }
  func.func @transform_17(%arg0: i32, %arg1: i32) -> (i32, i32) {
    %c0_i32 = arith.constant 0 : i32
    %c0_i32_0 = arith.constant 0 : i32
    %c0_i32_1 = arith.constant 0 : i32
    return %c0_i32, %c0_i32_0 : i32, i32
  }
  func.func @transform_18(%arg0: i32, %arg1: i32) -> (i32, i32) {
    %c0_i32 = arith.constant 0 : i32
    %c0_i32_0 = arith.constant 0 : i32
    %c0_i32_1 = arith.constant 0 : i32
    return %c0_i32, %c0_i32_0 : i32, i32
  }
  func.func @transform_19(%arg0: i32, %arg1: i32) -> (i32, i32) {
    %c0_i32 = arith.constant 0 : i32
    %c0_i32_0 = arith.constant 0 : i32
    %c0_i32_1 = arith.constant 0 : i32
    return %c0_i32, %c0_i32_0 : i32, i32
  }
  func.func @transform_20(%arg0: i32, %arg1: i32) -> (i32, i32, i32) {
    %c0_i32 = arith.constant 0 : i32
    %c0_i32_0 = arith.constant 0 : i32
    return %arg0, %arg1, %c0_i32 : i32, i32, i32
  }
  func.func @transform_21(%arg0: i32, %arg1: i32) -> (i32, i32, i32, i32) {
    %c0_i32 = arith.constant 0 : i32
    %c0_i32_0 = arith.constant 0 : i32
    %c0_i32_1 = arith.constant 0 : i32
    return %arg0, %c0_i32, %arg1, %c0_i32_0 : i32, i32, i32, i32
  }
}

module attributes {stable_mosaic.version = 11 : i64} {
  func.func @_fft_block_kernel(%arg0: i32, %arg1: i32, %arg2: memref<1x8x32xf32, #tpu.memory_space<vmem>>, %arg3: memref<1x8x32xf32, #tpu.memory_space<vmem>>, %arg4: memref<1x8x8xbf16, #tpu.memory_space<vmem>>, %arg5: memref<1x8x1xf32, #tpu.memory_space<vmem>>, %arg6: memref<4x32x8xbf16, #tpu.memory_space<vmem>>, %arg7: memref<4x32x8xbf16, #tpu.memory_space<vmem>>, %arg8: memref<4x32x8xbf16, #tpu.memory_space<vmem>>, %arg9: memref<4x8x32xbf16, #tpu.memory_space<vmem>>, %arg10: memref<1x32xf32, #tpu.memory_space<vmem>>, %arg11: memref<1x32xf32, #tpu.memory_space<vmem>>, %arg12: memref<1x32xf32, #tpu.memory_space<vmem>>, %arg13: memref<32x128xbf16, #tpu.memory_space<vmem>>, %arg14: memref<1x128xf32, #tpu.memory_space<vmem>>, %arg15: memref<128x32xbf16, #tpu.memory_space<vmem>>, %arg16: memref<1x32xf32, #tpu.memory_space<vmem>>, %arg17: memref<1x32xf32, #tpu.memory_space<vmem>>, %arg18: memref<1x32xf32, #tpu.memory_space<vmem>>, %arg19: memref<1x8x32xf32, #tpu.memory_space<vmem>>, %arg20: memref<1x4x8x8xf32, #tpu.memory_space<vmem>>) attributes {dimension_semantics = [#tpu.dimension_semantics<parallel>, #tpu.dimension_semantics<parallel>], iteration_bounds = array<i64: 2, 1>, scalar_prefetch = 0 : i64, scratch_operands = 0 : i64, tpu.core_type = #tpu.core_type<tc>, window_params = [{transform_indices = @transform_0, window_bounds = array<i64: 1, 8, 32>}, {transform_indices = @transform_1, window_bounds = array<i64: 1, 8, 32>}, {transform_indices = @transform_2, window_bounds = array<i64: 1, 8, 8>}, {transform_indices = @transform_3, window_bounds = array<i64: 1, 8, 1>}, {pipeline_mode = #tpu.pipeline_mode<synchronous>, transform_indices = @transform_4, window_bounds = array<i64: 4, 32, 8>}, {pipeline_mode = #tpu.pipeline_mode<synchronous>, transform_indices = @transform_5, window_bounds = array<i64: 4, 32, 8>}, {pipeline_mode = #tpu.pipeline_mode<synchronous>, transform_indices = @transform_6, window_bounds = array<i64: 4, 32, 8>}, {pipeline_mode = #tpu.pipeline_mode<synchronous>, transform_indices = @transform_7, window_bounds = array<i64: 4, 8, 32>}, {pipeline_mode = #tpu.pipeline_mode<synchronous>, transform_indices = @transform_8, window_bounds = array<i64: 1, 32>}, {pipeline_mode = #tpu.pipeline_mode<synchronous>, transform_indices = @transform_9, window_bounds = array<i64: 1, 32>}, {pipeline_mode = #tpu.pipeline_mode<synchronous>, transform_indices = @transform_10, window_bounds = array<i64: 1, 32>}, {pipeline_mode = #tpu.pipeline_mode<synchronous>, transform_indices = @transform_11, window_bounds = array<i64: 32, 128>}, {pipeline_mode = #tpu.pipeline_mode<synchronous>, transform_indices = @transform_12, window_bounds = array<i64: 1, 128>}, {pipeline_mode = #tpu.pipeline_mode<synchronous>, transform_indices = @transform_13, window_bounds = array<i64: 128, 32>}, {pipeline_mode = #tpu.pipeline_mode<synchronous>, transform_indices = @transform_14, window_bounds = array<i64: 1, 32>}, {pipeline_mode = #tpu.pipeline_mode<synchronous>, transform_indices = @transform_15, window_bounds = array<i64: 1, 32>}, {pipeline_mode = #tpu.pipeline_mode<synchronous>, transform_indices = @transform_16, window_bounds = array<i64: 1, 32>}, {transform_indices = @transform_17, window_bounds = array<i64: 1, 8, 32>}, {transform_indices = @transform_18, window_bounds = array<i64: 1, 4, 8, 8>}]} {
    %c0 = arith.constant 0 : index
    %c0_0 = arith.constant 0 : index
    %c0_1 = arith.constant 0 : index
    %0 = vector.load %arg2[%c0, %c0_0, %c0_1] : memref<1x8x32xf32, #tpu.memory_space<vmem>>, vector<1x8x32xf32>
    %1 = vector.shape_cast %0 : vector<1x8x32xf32> to vector<8x32xf32>
    %c0_2 = arith.constant 0 : index
    %c0_3 = arith.constant 0 : index
    %c0_4 = arith.constant 0 : index
    %2 = vector.load %arg3[%c0_2, %c0_3, %c0_4] : memref<1x8x32xf32, #tpu.memory_space<vmem>>, vector<1x8x32xf32>
    %3 = vector.shape_cast %2 : vector<1x8x32xf32> to vector<8x32xf32>
    %c0_5 = arith.constant 0 : index
    %c0_6 = arith.constant 0 : index
    %c0_7 = arith.constant 0 : index
    %4 = vector.load %arg4[%c0_5, %c0_6, %c0_7] : memref<1x8x8xbf16, #tpu.memory_space<vmem>>, vector<1x8x8xbf16>
    %5 = vector.shape_cast %4 : vector<1x8x8xbf16> to vector<8x8xbf16>
    %6 = arith.extf %5 : vector<8x8xbf16> to vector<8x8xf32>
    %c0_8 = arith.constant 0 : index
    %c0_9 = arith.constant 0 : index
    %c0_10 = arith.constant 0 : index
    %7 = vector.load %arg5[%c0_8, %c0_9, %c0_10] : memref<1x8x1xf32, #tpu.memory_space<vmem>>, vector<1x8x1xf32>
    %8 = vector.shape_cast %7 : vector<1x8x1xf32> to vector<8x1xf32>
    %9 = arith.truncf %1 : vector<8x32xf32> to vector<8x32xbf16>
    %10 = arith.truncf %3 : vector<8x32xf32> to vector<8x32xbf16>
    %c0_11 = arith.constant 0 : index
    %c0_12 = arith.constant 0 : index
    %c0_13 = arith.constant 0 : index
    %11 = vector.load %arg6[%c0_11, %c0_12, %c0_13] : memref<4x32x8xbf16, #tpu.memory_space<vmem>>, vector<1x32x8xbf16>
    %12 = vector.shape_cast %11 : vector<1x32x8xbf16> to vector<32x8xbf16>
    %cst = arith.constant dense<0.000000e+00> : vector<8x8xf32>
    %13 = tpu.matmul %9, %12, %cst {dimension_numbers = #tpu.dot_dimension_numbers<[1], [0], [0], [1], [0, 0, 1, 1], [], []>} : vector<8x32xbf16>, vector<32x8xbf16>, vector<8x8xf32> -> vector<8x8xf32>
    %c1 = arith.constant 1 : index
    %c0_14 = arith.constant 0 : index
    %c0_15 = arith.constant 0 : index
    %14 = vector.load %arg6[%c1, %c0_14, %c0_15] : memref<4x32x8xbf16, #tpu.memory_space<vmem>>, vector<1x32x8xbf16>
    %15 = vector.shape_cast %14 : vector<1x32x8xbf16> to vector<32x8xbf16>
    %cst_16 = arith.constant dense<0.000000e+00> : vector<8x8xf32>
    %16 = tpu.matmul %9, %15, %cst_16 {dimension_numbers = #tpu.dot_dimension_numbers<[1], [0], [0], [1], [0, 0, 1, 1], [], []>} : vector<8x32xbf16>, vector<32x8xbf16>, vector<8x8xf32> -> vector<8x8xf32>
    %c2 = arith.constant 2 : index
    %c0_17 = arith.constant 0 : index
    %c0_18 = arith.constant 0 : index
    %17 = vector.load %arg6[%c2, %c0_17, %c0_18] : memref<4x32x8xbf16, #tpu.memory_space<vmem>>, vector<1x32x8xbf16>
    %18 = vector.shape_cast %17 : vector<1x32x8xbf16> to vector<32x8xbf16>
    %cst_19 = arith.constant dense<0.000000e+00> : vector<8x8xf32>
    %19 = tpu.matmul %9, %18, %cst_19 {dimension_numbers = #tpu.dot_dimension_numbers<[1], [0], [0], [1], [0, 0, 1, 1], [], []>} : vector<8x32xbf16>, vector<32x8xbf16>, vector<8x8xf32> -> vector<8x8xf32>
    %c3 = arith.constant 3 : index
    %c0_20 = arith.constant 0 : index
    %c0_21 = arith.constant 0 : index
    %20 = vector.load %arg6[%c3, %c0_20, %c0_21] : memref<4x32x8xbf16, #tpu.memory_space<vmem>>, vector<1x32x8xbf16>
    %21 = vector.shape_cast %20 : vector<1x32x8xbf16> to vector<32x8xbf16>
    %cst_22 = arith.constant dense<0.000000e+00> : vector<8x8xf32>
    %22 = tpu.matmul %9, %21, %cst_22 {dimension_numbers = #tpu.dot_dimension_numbers<[1], [0], [0], [1], [0, 0, 1, 1], [], []>} : vector<8x32xbf16>, vector<32x8xbf16>, vector<8x8xf32> -> vector<8x8xf32>
    %23 = vector.shape_cast %13 : vector<8x8xf32> to vector<1x8x8xf32>
    %24 = vector.shape_cast %16 : vector<8x8xf32> to vector<1x8x8xf32>
    %25 = vector.shape_cast %19 : vector<8x8xf32> to vector<1x8x8xf32>
    %26 = vector.shape_cast %22 : vector<8x8xf32> to vector<1x8x8xf32>
    %27 = tpu.concatenate %23, %24, %25, %26 in 0 : vector<1x8x8xf32>, vector<1x8x8xf32>, vector<1x8x8xf32>, vector<1x8x8xf32> -> vector<4x8x8xf32>
    %c0_23 = arith.constant 0 : index
    %c0_24 = arith.constant 0 : index
    %c0_25 = arith.constant 0 : index
    %28 = vector.load %arg7[%c0_23, %c0_24, %c0_25] : memref<4x32x8xbf16, #tpu.memory_space<vmem>>, vector<1x32x8xbf16>
    %29 = vector.shape_cast %28 : vector<1x32x8xbf16> to vector<32x8xbf16>
    %cst_26 = arith.constant dense<0.000000e+00> : vector<8x8xf32>
    %30 = tpu.matmul %10, %29, %cst_26 {dimension_numbers = #tpu.dot_dimension_numbers<[1], [0], [0], [1], [0, 0, 1, 1], [], []>} : vector<8x32xbf16>, vector<32x8xbf16>, vector<8x8xf32> -> vector<8x8xf32>
    %c1_27 = arith.constant 1 : index
    %c0_28 = arith.constant 0 : index
    %c0_29 = arith.constant 0 : index
    %31 = vector.load %arg7[%c1_27, %c0_28, %c0_29] : memref<4x32x8xbf16, #tpu.memory_space<vmem>>, vector<1x32x8xbf16>
    %32 = vector.shape_cast %31 : vector<1x32x8xbf16> to vector<32x8xbf16>
    %cst_30 = arith.constant dense<0.000000e+00> : vector<8x8xf32>
    %33 = tpu.matmul %10, %32, %cst_30 {dimension_numbers = #tpu.dot_dimension_numbers<[1], [0], [0], [1], [0, 0, 1, 1], [], []>} : vector<8x32xbf16>, vector<32x8xbf16>, vector<8x8xf32> -> vector<8x8xf32>
    %c2_31 = arith.constant 2 : index
    %c0_32 = arith.constant 0 : index
    %c0_33 = arith.constant 0 : index
    %34 = vector.load %arg7[%c2_31, %c0_32, %c0_33] : memref<4x32x8xbf16, #tpu.memory_space<vmem>>, vector<1x32x8xbf16>
    %35 = vector.shape_cast %34 : vector<1x32x8xbf16> to vector<32x8xbf16>
    %cst_34 = arith.constant dense<0.000000e+00> : vector<8x8xf32>
    %36 = tpu.matmul %10, %35, %cst_34 {dimension_numbers = #tpu.dot_dimension_numbers<[1], [0], [0], [1], [0, 0, 1, 1], [], []>} : vector<8x32xbf16>, vector<32x8xbf16>, vector<8x8xf32> -> vector<8x8xf32>
    %c3_35 = arith.constant 3 : index
    %c0_36 = arith.constant 0 : index
    %c0_37 = arith.constant 0 : index
    %37 = vector.load %arg7[%c3_35, %c0_36, %c0_37] : memref<4x32x8xbf16, #tpu.memory_space<vmem>>, vector<1x32x8xbf16>
    %38 = vector.shape_cast %37 : vector<1x32x8xbf16> to vector<32x8xbf16>
    %cst_38 = arith.constant dense<0.000000e+00> : vector<8x8xf32>
    %39 = tpu.matmul %10, %38, %cst_38 {dimension_numbers = #tpu.dot_dimension_numbers<[1], [0], [0], [1], [0, 0, 1, 1], [], []>} : vector<8x32xbf16>, vector<32x8xbf16>, vector<8x8xf32> -> vector<8x8xf32>
    %40 = vector.shape_cast %30 : vector<8x8xf32> to vector<1x8x8xf32>
    %41 = vector.shape_cast %33 : vector<8x8xf32> to vector<1x8x8xf32>
    %42 = vector.shape_cast %36 : vector<8x8xf32> to vector<1x8x8xf32>
    %43 = vector.shape_cast %39 : vector<8x8xf32> to vector<1x8x8xf32>
    %44 = tpu.concatenate %40, %41, %42, %43 in 0 : vector<1x8x8xf32>, vector<1x8x8xf32>, vector<1x8x8xf32>, vector<1x8x8xf32> -> vector<4x8x8xf32>
    %c0_39 = arith.constant 0 : index
    %c0_40 = arith.constant 0 : index
    %c0_41 = arith.constant 0 : index
    %45 = vector.load %arg8[%c0_39, %c0_40, %c0_41] : memref<4x32x8xbf16, #tpu.memory_space<vmem>>, vector<1x32x8xbf16>
    %46 = vector.shape_cast %45 : vector<1x32x8xbf16> to vector<32x8xbf16>
    %cst_42 = arith.constant dense<0.000000e+00> : vector<8x8xf32>
    %47 = tpu.matmul %10, %46, %cst_42 {dimension_numbers = #tpu.dot_dimension_numbers<[1], [0], [0], [1], [0, 0, 1, 1], [], []>} : vector<8x32xbf16>, vector<32x8xbf16>, vector<8x8xf32> -> vector<8x8xf32>
    %c1_43 = arith.constant 1 : index
    %c0_44 = arith.constant 0 : index
    %c0_45 = arith.constant 0 : index
    %48 = vector.load %arg8[%c1_43, %c0_44, %c0_45] : memref<4x32x8xbf16, #tpu.memory_space<vmem>>, vector<1x32x8xbf16>
    %49 = vector.shape_cast %48 : vector<1x32x8xbf16> to vector<32x8xbf16>
    %cst_46 = arith.constant dense<0.000000e+00> : vector<8x8xf32>
    %50 = tpu.matmul %10, %49, %cst_46 {dimension_numbers = #tpu.dot_dimension_numbers<[1], [0], [0], [1], [0, 0, 1, 1], [], []>} : vector<8x32xbf16>, vector<32x8xbf16>, vector<8x8xf32> -> vector<8x8xf32>
    %c2_47 = arith.constant 2 : index
    %c0_48 = arith.constant 0 : index
    %c0_49 = arith.constant 0 : index
    %51 = vector.load %arg8[%c2_47, %c0_48, %c0_49] : memref<4x32x8xbf16, #tpu.memory_space<vmem>>, vector<1x32x8xbf16>
    %52 = vector.shape_cast %51 : vector<1x32x8xbf16> to vector<32x8xbf16>
    %cst_50 = arith.constant dense<0.000000e+00> : vector<8x8xf32>
    %53 = tpu.matmul %10, %52, %cst_50 {dimension_numbers = #tpu.dot_dimension_numbers<[1], [0], [0], [1], [0, 0, 1, 1], [], []>} : vector<8x32xbf16>, vector<32x8xbf16>, vector<8x8xf32> -> vector<8x8xf32>
    %c3_51 = arith.constant 3 : index
    %c0_52 = arith.constant 0 : index
    %c0_53 = arith.constant 0 : index
    %54 = vector.load %arg8[%c3_51, %c0_52, %c0_53] : memref<4x32x8xbf16, #tpu.memory_space<vmem>>, vector<1x32x8xbf16>
    %55 = vector.shape_cast %54 : vector<1x32x8xbf16> to vector<32x8xbf16>
    %cst_54 = arith.constant dense<0.000000e+00> : vector<8x8xf32>
    %56 = tpu.matmul %10, %55, %cst_54 {dimension_numbers = #tpu.dot_dimension_numbers<[1], [0], [0], [1], [0, 0, 1, 1], [], []>} : vector<8x32xbf16>, vector<32x8xbf16>, vector<8x8xf32> -> vector<8x8xf32>
    %57 = vector.shape_cast %47 : vector<8x8xf32> to vector<1x8x8xf32>
    %58 = vector.shape_cast %50 : vector<8x8xf32> to vector<1x8x8xf32>
    %59 = vector.shape_cast %53 : vector<8x8xf32> to vector<1x8x8xf32>
    %60 = vector.shape_cast %56 : vector<8x8xf32> to vector<1x8x8xf32>
    %61 = tpu.concatenate %57, %58, %59, %60 in 0 : vector<1x8x8xf32>, vector<1x8x8xf32>, vector<1x8x8xf32>, vector<1x8x8xf32> -> vector<4x8x8xf32>
    %cst_55 = arith.constant 0.353553385 : f32
    %62 = vector.broadcast %cst_55 : f32 to vector<4x8x8xf32>
    %63 = arith.mulf %27, %62 : vector<4x8x8xf32>
    %64 = arith.truncf %63 : vector<4x8x8xf32> to vector<4x8x8xbf16>
    %65 = arith.truncf %44 : vector<4x8x8xf32> to vector<4x8x8xbf16>
    "tpu.trace_start"() <{level = 10 : i32, message = "hqd,hkd->hqk"}> : () -> ()
    %cst_56 = arith.constant dense<0.000000e+00> : vector<4x8x8xf32>
    %66 = tpu.matmul %64, %65, %cst_56 {dimension_numbers = #tpu.dot_dimension_numbers<[2], [2], [1], [1], [0, 0, 0, 1, 1, 1], [0], [0]>} : vector<4x8x8xbf16>, vector<4x8x8xbf16>, vector<4x8x8xf32> -> vector<4x8x8xf32>
    "tpu.trace_stop"() : () -> ()
    %67 = vector.shape_cast %6 : vector<8x8xf32> to vector<1x8x8xf32>
    %68 = vector.broadcast %67 : vector<1x8x8xf32> to vector<4x8x8xf32>
    %69 = arith.addf %66, %68 : vector<4x8x8xf32>
    %cst_57 = arith.constant dense<0xFF800000> : vector<4x8xf32>
    %70 = vector.multi_reduction <maximumf>, %69, %cst_57 [2] : vector<4x8x8xf32> to vector<4x8xf32>
    %71 = vector.shape_cast %70 : vector<4x8xf32> to vector<4x8x1xf32>
    %72 = vector.broadcast %71 : vector<4x8x1xf32> to vector<4x8x8xf32>
    %73 = arith.subf %69, %72 : vector<4x8x8xf32>
    %74 = math.exp %73 : vector<4x8x8xf32>
    %cst_58 = arith.constant dense<0.000000e+00> : vector<4x8xf32>
    %75 = vector.multi_reduction <add>, %74, %cst_58 [2] : vector<4x8x8xf32> to vector<4x8xf32>
    %76 = vector.shape_cast %75 : vector<4x8xf32> to vector<4x8x1xf32>
    %77 = tpu.reciprocal %76 {approx = true} : vector<4x8x1xf32> -> vector<4x8x1xf32>
    %78 = vector.broadcast %77 : vector<4x8x1xf32> to vector<4x8x8xf32>
    %79 = arith.mulf %74, %78 : vector<4x8x8xf32>
    %80 = vector.shape_cast %8 : vector<8x1xf32> to vector<1x8x1xf32>
    %81 = vector.broadcast %80 : vector<1x8x1xf32> to vector<4x8x8xf32>
    %82 = arith.mulf %79, %81 : vector<4x8x8xf32>
    %83 = arith.truncf %82 : vector<4x8x8xf32> to vector<4x8x8xbf16>
    %84 = arith.truncf %61 : vector<4x8x8xf32> to vector<4x8x8xbf16>
    "tpu.trace_start"() <{level = 10 : i32, message = "hqk,hkd->hqd"}> : () -> ()
    %cst_59 = arith.constant dense<0.000000e+00> : vector<4x8x8xf32>
    %85 = tpu.matmul %83, %84, %cst_59 {dimension_numbers = #tpu.dot_dimension_numbers<[2], [1], [1], [2], [0, 0, 0, 1, 1, 2], [0], [0]>} : vector<4x8x8xbf16>, vector<4x8x8xbf16>, vector<4x8x8xf32> -> vector<4x8x8xf32>
    "tpu.trace_stop"() : () -> ()
    %c0_60 = arith.constant 0 : index
    %c0_61 = arith.constant 0 : index
    %86 = vector.load %arg10[%c0_60, %c0_61] : memref<1x32xf32, #tpu.memory_space<vmem>>, vector<1x32xf32>
    %87 = vector.extract_strided_slice %85 {offsets = [0, 0, 0], sizes = [1, 8, 8], strides = [1, 1, 1]} : vector<4x8x8xf32> to vector<1x8x8xf32>
    %88 = vector.shape_cast %87 : vector<1x8x8xf32> to vector<8x8xf32>
    %89 = arith.truncf %88 : vector<8x8xf32> to vector<8x8xbf16>
    %c0_62 = arith.constant 0 : index
    %c0_63 = arith.constant 0 : index
    %c0_64 = arith.constant 0 : index
    %90 = vector.load %arg9[%c0_62, %c0_63, %c0_64] : memref<4x8x32xbf16, #tpu.memory_space<vmem>>, vector<1x8x32xbf16>
    %91 = vector.shape_cast %90 : vector<1x8x32xbf16> to vector<8x32xbf16>
    %cst_65 = arith.constant dense<0.000000e+00> : vector<8x32xf32>
    %92 = tpu.matmul %89, %91, %cst_65 {dimension_numbers = #tpu.dot_dimension_numbers<[1], [0], [0], [1], [0, 0, 1, 1], [], []>} : vector<8x8xbf16>, vector<8x32xbf16>, vector<8x32xf32> -> vector<8x32xf32>
    %93 = vector.broadcast %86 : vector<1x32xf32> to vector<8x32xf32>
    %94 = arith.addf %93, %92 : vector<8x32xf32>
    %95 = vector.extract_strided_slice %85 {offsets = [1, 0, 0], sizes = [1, 8, 8], strides = [1, 1, 1]} : vector<4x8x8xf32> to vector<1x8x8xf32>
    %96 = vector.shape_cast %95 : vector<1x8x8xf32> to vector<8x8xf32>
    %97 = arith.truncf %96 : vector<8x8xf32> to vector<8x8xbf16>
    %c1_66 = arith.constant 1 : index
    %c0_67 = arith.constant 0 : index
    %c0_68 = arith.constant 0 : index
    %98 = vector.load %arg9[%c1_66, %c0_67, %c0_68] : memref<4x8x32xbf16, #tpu.memory_space<vmem>>, vector<1x8x32xbf16>
    %99 = vector.shape_cast %98 : vector<1x8x32xbf16> to vector<8x32xbf16>
    %cst_69 = arith.constant dense<0.000000e+00> : vector<8x32xf32>
    %100 = tpu.matmul %97, %99, %cst_69 {dimension_numbers = #tpu.dot_dimension_numbers<[1], [0], [0], [1], [0, 0, 1, 1], [], []>} : vector<8x8xbf16>, vector<8x32xbf16>, vector<8x32xf32> -> vector<8x32xf32>
    %101 = arith.addf %94, %100 : vector<8x32xf32>
    %102 = vector.extract_strided_slice %85 {offsets = [2, 0, 0], sizes = [1, 8, 8], strides = [1, 1, 1]} : vector<4x8x8xf32> to vector<1x8x8xf32>
    %103 = vector.shape_cast %102 : vector<1x8x8xf32> to vector<8x8xf32>
    %104 = arith.truncf %103 : vector<8x8xf32> to vector<8x8xbf16>
    %c2_70 = arith.constant 2 : index
    %c0_71 = arith.constant 0 : index
    %c0_72 = arith.constant 0 : index
    %105 = vector.load %arg9[%c2_70, %c0_71, %c0_72] : memref<4x8x32xbf16, #tpu.memory_space<vmem>>, vector<1x8x32xbf16>
    %106 = vector.shape_cast %105 : vector<1x8x32xbf16> to vector<8x32xbf16>
    %cst_73 = arith.constant dense<0.000000e+00> : vector<8x32xf32>
    %107 = tpu.matmul %104, %106, %cst_73 {dimension_numbers = #tpu.dot_dimension_numbers<[1], [0], [0], [1], [0, 0, 1, 1], [], []>} : vector<8x8xbf16>, vector<8x32xbf16>, vector<8x32xf32> -> vector<8x32xf32>
    %108 = arith.addf %101, %107 : vector<8x32xf32>
    %109 = vector.extract_strided_slice %85 {offsets = [3, 0, 0], sizes = [1, 8, 8], strides = [1, 1, 1]} : vector<4x8x8xf32> to vector<1x8x8xf32>
    %110 = vector.shape_cast %109 : vector<1x8x8xf32> to vector<8x8xf32>
    %111 = arith.truncf %110 : vector<8x8xf32> to vector<8x8xbf16>
    %c3_74 = arith.constant 3 : index
    %c0_75 = arith.constant 0 : index
    %c0_76 = arith.constant 0 : index
    %112 = vector.load %arg9[%c3_74, %c0_75, %c0_76] : memref<4x8x32xbf16, #tpu.memory_space<vmem>>, vector<1x8x32xbf16>
    %113 = vector.shape_cast %112 : vector<1x8x32xbf16> to vector<8x32xbf16>
    %cst_77 = arith.constant dense<0.000000e+00> : vector<8x32xf32>
    %114 = tpu.matmul %111, %113, %cst_77 {dimension_numbers = #tpu.dot_dimension_numbers<[1], [0], [0], [1], [0, 0, 1, 1], [], []>} : vector<8x8xbf16>, vector<8x32xbf16>, vector<8x32xf32> -> vector<8x32xf32>
    %115 = arith.addf %108, %114 : vector<8x32xf32>
    %116 = arith.addf %115, %1 : vector<8x32xf32>
    %c0_78 = arith.constant 0 : index
    %c0_79 = arith.constant 0 : index
    %c0_80 = arith.constant 0 : index
    %c0_81 = arith.constant 0 : index
    %117 = vector.load %arg20[%c0_78, %c0_79, %c0_80, %c0_81] : memref<1x4x8x8xf32, #tpu.memory_space<vmem>>, vector<1x4x8x8xf32>
    %118 = vector.shape_cast %117 : vector<1x4x8x8xf32> to vector<4x8x8xf32>
    %119 = vector.shape_cast %82 : vector<4x8x8xf32> to vector<1x4x8x8xf32>
    tpu.vector_store %arg20[%c0_78, %c0_79, %c0_80, %c0_81], %119 {strides = array<i32>} : memref<1x4x8x8xf32, #tpu.memory_space<vmem>>, vector<1x4x8x8xf32>,
    %c0_82 = arith.constant 0 : index
    %c0_83 = arith.constant 0 : index
    %120 = vector.load %arg11[%c0_82, %c0_83] : memref<1x32xf32, #tpu.memory_space<vmem>>, vector<1x32xf32>
    %c0_84 = arith.constant 0 : index
    %c0_85 = arith.constant 0 : index
    %121 = vector.load %arg12[%c0_84, %c0_85] : memref<1x32xf32, #tpu.memory_space<vmem>>, vector<1x32xf32>
    %cst_86 = arith.constant dense<0.000000e+00> : vector<8xf32>
    %122 = vector.multi_reduction <add>, %116, %cst_86 [1] : vector<8x32xf32> to vector<8xf32>
    %123 = vector.shape_cast %122 : vector<8xf32> to vector<8x1xf32>
    %cst_87 = arith.constant 3.200000e+01 : f32
    %124 = vector.broadcast %cst_87 : f32 to vector<8x1xf32>
    %125 = arith.divf %123, %124 : vector<8x1xf32>
    %126 = vector.broadcast %125 : vector<8x1xf32> to vector<8x32xf32>
    %127 = arith.subf %116, %126 : vector<8x32xf32>
    %128 = arith.mulf %127, %127 : vector<8x32xf32>
    %cst_88 = arith.constant dense<0.000000e+00> : vector<8xf32>
    %129 = vector.multi_reduction <add>, %128, %cst_88 [1] : vector<8x32xf32> to vector<8xf32>
    %130 = vector.shape_cast %129 : vector<8xf32> to vector<8x1xf32>
    %cst_89 = arith.constant 3.200000e+01 : f32
    %131 = vector.broadcast %cst_89 : f32 to vector<8x1xf32>
    %132 = arith.divf %130, %131 : vector<8x1xf32>
    %133 = vector.broadcast %125 : vector<8x1xf32> to vector<8x32xf32>
    %134 = arith.subf %116, %133 : vector<8x32xf32>
    %cst_90 = arith.constant 9.99999974E-6 : f32
    %135 = vector.broadcast %cst_90 : f32 to vector<8x1xf32>
    %136 = arith.addf %132, %135 : vector<8x1xf32>
    %137 = math.rsqrt %136 : vector<8x1xf32>
    %138 = vector.broadcast %137 : vector<8x1xf32> to vector<8x32xf32>
    %139 = arith.mulf %134, %138 : vector<8x32xf32>
    %140 = vector.broadcast %120 : vector<1x32xf32> to vector<8x32xf32>
    %141 = arith.mulf %139, %140 : vector<8x32xf32>
    %142 = vector.broadcast %121 : vector<1x32xf32> to vector<8x32xf32>
    %143 = arith.addf %141, %142 : vector<8x32xf32>
    %144 = arith.truncf %143 : vector<8x32xf32> to vector<8x32xbf16>
    %c0_91 = arith.constant 0 : index
    %c0_92 = arith.constant 0 : index
    %145 = vector.load %arg13[%c0_91, %c0_92] : memref<32x128xbf16, #tpu.memory_space<vmem>>, vector<32x128xbf16>
    %cst_93 = arith.constant dense<0.000000e+00> : vector<8x128xf32>
    %146 = tpu.matmul %144, %145, %cst_93 {dimension_numbers = #tpu.dot_dimension_numbers<[1], [0], [0], [1], [0, 0, 1, 1], [], []>} : vector<8x32xbf16>, vector<32x128xbf16>, vector<8x128xf32> -> vector<8x128xf32>
    %c0_94 = arith.constant 0 : index
    %c0_95 = arith.constant 0 : index
    %147 = vector.load %arg14[%c0_94, %c0_95] : memref<1x128xf32, #tpu.memory_space<vmem>>, vector<1x128xf32>
    %148 = vector.broadcast %147 : vector<1x128xf32> to vector<8x128xf32>
    %149 = arith.addf %146, %148 : vector<8x128xf32>
    %cst_96 = arith.constant 0.000000e+00 : f32
    %150 = vector.broadcast %cst_96 : f32 to vector<8x128xf32>
    %151 = arith.maximumf %149, %150 : vector<8x128xf32>
    %152 = arith.truncf %151 : vector<8x128xf32> to vector<8x128xbf16>
    %c0_97 = arith.constant 0 : index
    %c0_98 = arith.constant 0 : index
    %153 = vector.load %arg15[%c0_97, %c0_98] : memref<128x32xbf16, #tpu.memory_space<vmem>>, vector<128x32xbf16>
    %cst_99 = arith.constant dense<0.000000e+00> : vector<8x32xf32>
    %154 = tpu.matmul %152, %153, %cst_99 {dimension_numbers = #tpu.dot_dimension_numbers<[1], [0], [0], [1], [0, 0, 1, 1], [], []>} : vector<8x128xbf16>, vector<128x32xbf16>, vector<8x32xf32> -> vector<8x32xf32>
    %c0_100 = arith.constant 0 : index
    %c0_101 = arith.constant 0 : index
    %155 = vector.load %arg16[%c0_100, %c0_101] : memref<1x32xf32, #tpu.memory_space<vmem>>, vector<1x32xf32>
    %156 = vector.broadcast %155 : vector<1x32xf32> to vector<8x32xf32>
    %157 = arith.addf %154, %156 : vector<8x32xf32>
    %158 = vector.broadcast %8 : vector<8x1xf32> to vector<8x32xf32>
    %159 = arith.mulf %157, %158 : vector<8x32xf32>
    %160 = arith.addf %143, %159 : vector<8x32xf32>
    %c0_102 = arith.constant 0 : index
    %c0_103 = arith.constant 0 : index
    %161 = vector.load %arg17[%c0_102, %c0_103] : memref<1x32xf32, #tpu.memory_space<vmem>>, vector<1x32xf32>
    %c0_104 = arith.constant 0 : index
    %c0_105 = arith.constant 0 : index
    %162 = vector.load %arg18[%c0_104, %c0_105] : memref<1x32xf32, #tpu.memory_space<vmem>>, vector<1x32xf32>
    %cst_106 = arith.constant dense<0.000000e+00> : vector<8xf32>
    %163 = vector.multi_reduction <add>, %160, %cst_106 [1] : vector<8x32xf32> to vector<8xf32>
    %164 = vector.shape_cast %163 : vector<8xf32> to vector<8x1xf32>
    %cst_107 = arith.constant 3.200000e+01 : f32
    %165 = vector.broadcast %cst_107 : f32 to vector<8x1xf32>
    %166 = arith.divf %164, %165 : vector<8x1xf32>
    %167 = vector.broadcast %166 : vector<8x1xf32> to vector<8x32xf32>
    %168 = arith.subf %160, %167 : vector<8x32xf32>
    %169 = arith.mulf %168, %168 : vector<8x32xf32>
    %cst_108 = arith.constant dense<0.000000e+00> : vector<8xf32>
    %170 = vector.multi_reduction <add>, %169, %cst_108 [1] : vector<8x32xf32> to vector<8xf32>
    %171 = vector.shape_cast %170 : vector<8xf32> to vector<8x1xf32>
    %cst_109 = arith.constant 3.200000e+01 : f32
    %172 = vector.broadcast %cst_109 : f32 to vector<8x1xf32>
    %173 = arith.divf %171, %172 : vector<8x1xf32>
    %174 = vector.broadcast %166 : vector<8x1xf32> to vector<8x32xf32>
    %175 = arith.subf %160, %174 : vector<8x32xf32>
    %cst_110 = arith.constant 9.99999974E-6 : f32
    %176 = vector.broadcast %cst_110 : f32 to vector<8x1xf32>
    %177 = arith.addf %173, %176 : vector<8x1xf32>
    %178 = math.rsqrt %177 : vector<8x1xf32>
    %179 = vector.broadcast %178 : vector<8x1xf32> to vector<8x32xf32>
    %180 = arith.mulf %175, %179 : vector<8x32xf32>
    %181 = vector.broadcast %161 : vector<1x32xf32> to vector<8x32xf32>
    %182 = arith.mulf %180, %181 : vector<8x32xf32>
    %183 = vector.broadcast %162 : vector<1x32xf32> to vector<8x32xf32>
    %184 = arith.addf %182, %183 : vector<8x32xf32>
    %c0_111 = arith.constant 0 : index
    %c0_112 = arith.constant 0 : index
    %c0_113 = arith.constant 0 : index
    %185 = vector.load %arg19[%c0_111, %c0_112, %c0_113] : memref<1x8x32xf32, #tpu.memory_space<vmem>>, vector<1x8x32xf32>
    %186 = vector.shape_cast %185 : vector<1x8x32xf32> to vector<8x32xf32>
    %187 = vector.shape_cast %184 : vector<8x32xf32> to vector<1x8x32xf32>
    tpu.vector_store %arg19[%c0_111, %c0_112, %c0_113], %187 {strides = array<i32>} : memref<1x8x32xf32, #tpu.memory_space<vmem>>, vector<1x8x32xf32>,
    return
  }
  func.func @transform_0(%arg0: i32, %arg1: i32) -> (i32, i32, i32) {
    %c0_i32 = arith.constant 0 : i32
    %c0_i32_0 = arith.constant 0 : i32
    return %arg0, %arg1, %c0_i32 : i32, i32, i32
  }
  func.func @transform_1(%arg0: i32, %arg1: i32) -> (i32, i32, i32) {
    %c0_i32 = arith.constant 0 : i32
    %c0_i32_0 = arith.constant 0 : i32
    %c0_i32_1 = arith.constant 0 : i32
    return %arg0, %c0_i32, %c0_i32_0 : i32, i32, i32
  }
  func.func @transform_2(%arg0: i32, %arg1: i32) -> (i32, i32, i32) {
    %c0_i32 = arith.constant 0 : i32
    %c0_i32_0 = arith.constant 0 : i32
    return %arg0, %arg1, %c0_i32 : i32, i32, i32
  }
  func.func @transform_3(%arg0: i32, %arg1: i32) -> (i32, i32, i32) {
    %c0_i32 = arith.constant 0 : i32
    %c0_i32_0 = arith.constant 0 : i32
    return %arg0, %arg1, %c0_i32 : i32, i32, i32
  }
  func.func @transform_4(%arg0: i32, %arg1: i32) -> (i32, i32, i32) {
    %c0_i32 = arith.constant 0 : i32
    %c0_i32_0 = arith.constant 0 : i32
    %c0_i32_1 = arith.constant 0 : i32
    %c0_i32_2 = arith.constant 0 : i32
    return %c0_i32, %c0_i32_0, %c0_i32_1 : i32, i32, i32
  }
  func.func @transform_5(%arg0: i32, %arg1: i32) -> (i32, i32, i32) {
    %c0_i32 = arith.constant 0 : i32
    %c0_i32_0 = arith.constant 0 : i32
    %c0_i32_1 = arith.constant 0 : i32
    %c0_i32_2 = arith.constant 0 : i32
    return %c0_i32, %c0_i32_0, %c0_i32_1 : i32, i32, i32
  }
  func.func @transform_6(%arg0: i32, %arg1: i32) -> (i32, i32, i32) {
    %c0_i32 = arith.constant 0 : i32
    %c0_i32_0 = arith.constant 0 : i32
    %c0_i32_1 = arith.constant 0 : i32
    %c0_i32_2 = arith.constant 0 : i32
    return %c0_i32, %c0_i32_0, %c0_i32_1 : i32, i32, i32
  }
  func.func @transform_7(%arg0: i32, %arg1: i32) -> (i32, i32, i32) {
    %c0_i32 = arith.constant 0 : i32
    %c0_i32_0 = arith.constant 0 : i32
    %c0_i32_1 = arith.constant 0 : i32
    %c0_i32_2 = arith.constant 0 : i32
    return %c0_i32, %c0_i32_0, %c0_i32_1 : i32, i32, i32
  }
  func.func @transform_8(%arg0: i32, %arg1: i32) -> (i32, i32) {
    %c0_i32 = arith.constant 0 : i32
    %c0_i32_0 = arith.constant 0 : i32
    %c0_i32_1 = arith.constant 0 : i32
    return %c0_i32, %c0_i32_0 : i32, i32
  }
  func.func @transform_9(%arg0: i32, %arg1: i32) -> (i32, i32) {
    %c0_i32 = arith.constant 0 : i32
    %c0_i32_0 = arith.constant 0 : i32
    %c0_i32_1 = arith.constant 0 : i32
    return %c0_i32, %c0_i32_0 : i32, i32
  }
  func.func @transform_10(%arg0: i32, %arg1: i32) -> (i32, i32) {
    %c0_i32 = arith.constant 0 : i32
    %c0_i32_0 = arith.constant 0 : i32
    %c0_i32_1 = arith.constant 0 : i32
    return %c0_i32, %c0_i32_0 : i32, i32
  }
  func.func @transform_11(%arg0: i32, %arg1: i32) -> (i32, i32) {
    %c0_i32 = arith.constant 0 : i32
    %c0_i32_0 = arith.constant 0 : i32
    %c0_i32_1 = arith.constant 0 : i32
    return %c0_i32, %c0_i32_0 : i32, i32
  }
  func.func @transform_12(%arg0: i32, %arg1: i32) -> (i32, i32) {
    %c0_i32 = arith.constant 0 : i32
    %c0_i32_0 = arith.constant 0 : i32
    %c0_i32_1 = arith.constant 0 : i32
    return %c0_i32, %c0_i32_0 : i32, i32
  }
  func.func @transform_13(%arg0: i32, %arg1: i32) -> (i32, i32) {
    %c0_i32 = arith.constant 0 : i32
    %c0_i32_0 = arith.constant 0 : i32
    %c0_i32_1 = arith.constant 0 : i32
    return %c0_i32, %c0_i32_0 : i32, i32
  }
  func.func @transform_14(%arg0: i32, %arg1: i32) -> (i32, i32) {
    %c0_i32 = arith.constant 0 : i32
    %c0_i32_0 = arith.constant 0 : i32
    %c0_i32_1 = arith.constant 0 : i32
    return %c0_i32, %c0_i32_0 : i32, i32
  }
  func.func @transform_15(%arg0: i32, %arg1: i32) -> (i32, i32) {
    %c0_i32 = arith.constant 0 : i32
    %c0_i32_0 = arith.constant 0 : i32
    %c0_i32_1 = arith.constant 0 : i32
    return %c0_i32, %c0_i32_0 : i32, i32
  }
  func.func @transform_16(%arg0: i32, %arg1: i32) -> (i32, i32) {
    %c0_i32 = arith.constant 0 : i32
    %c0_i32_0 = arith.constant 0 : i32
    %c0_i32_1 = arith.constant 0 : i32
    return %c0_i32, %c0_i32_0 : i32, i32
  }
  func.func @transform_17(%arg0: i32, %arg1: i32) -> (i32, i32, i32) {
    %c0_i32 = arith.constant 0 : i32
    %c0_i32_0 = arith.constant 0 : i32
    return %arg0, %arg1, %c0_i32 : i32, i32, i32
  }
  func.func @transform_18(%arg0: i32, %arg1: i32) -> (i32, i32, i32, i32) {
    %c0_i32 = arith.constant 0 : i32
    %c0_i32_0 = arith.constant 0 : i32
    %c0_i32_1 = arith.constant 0 : i32
    return %arg0, %c0_i32, %arg1, %c0_i32_0 : i32, i32, i32, i32
  }
}

</mosaic_0001>

<bundles_post_ra>
// kernel: phone_autoregressive_decoder_layer.7
= control target key start
LH: loop header
LB: loop body
LE: loop exit
PB: predicated region body
PF: predicated region fallthrough
CT: control target
= control target key end

     0   :  { %s385_s12 = smov 0   ;;  %s387_s13 = smov 0   ;;  %s427_s0 = inlined_call_operand.vmem [shape: f32[2,8,32], index: 0, kind: input, shape index: {}]   ;;  %s428_s1 = inlined_call_operand.vmem [shape: f32[1,32], index: 1, kind: input, shape index: {}]   ;;  %s429_s2 = inlined_call_operand.vmem [shape: f32[1,32], index: 2, kind: input, shape index: {}]   ;;  %s430_s3 = inlined_call_operand.vmem [shape: f32[2,8,32], index: 3, kind: output, shape index: {}]  }
   0x1   :  { %s389_s14 = smov 0  }
   0x2 LB: > { %s25_s15 = sadd.s32 1, %s359_s13  ;;  %p308_p0 = scmp.ge.s32.totalorder %s363_s14, 1  ;;  %s363_s14 = sphi %s389_s14, %s13_s14   ;;  %s359_s13 = sphi %s387_s13, %s432_s13   ;;  %s355_s12 = sphi %s385_s12, %s431_s12  }
   0x3   : > { %p27_p1 = scmp.ge.s32.totalorder %s25_s15, 2  ;;  %p155_p2 = scmp.lt.s32.totalorder %s363_s14, 3 }
   0x5   : > { %s434_s15 = smov (%p27_p1, %s25_s15), 0  ;;  %p156_p3 = pnand %p308_p0, %p155_p2 }
   0x6   : > { %p183_p4 = scmp.lt.s32.totalorder (!%p156_p3), %s355_s12, 1 }
   0x7   : > { %159 = sbr.rel (%p156_p3) target bundleno = 325 (0x145), region = 32 }
   0xc   : > { %s436_s12 = smov (!%p183_p4, %s355_s12), 1  ;;  %vm200_vm0 = vcmask 261120   ;;  %v311_v11 = vld [vmem:[%s428_s1] ss:$0 sm:$0xff] }
   0xd   : > { %s309_s16 = sshll.u32 %s436_s12, 3  ;;  %v312_v13 = vld [vmem:[%s429_s2] ss:$0 sm:$0xff] }
   0xe   : > { %s189_s19 = scalar_lea.vmem %s427_s0, %s309_s16  ;;  %s196_s26 = scalar_lea.vmem %s430_s3, %s309_s16 }
   0xf   : > { %v197_v0 = vld [vmem:[%s189_s19] sm:$0xff] }
  0x10   : > { %v201_v1 = vsel %vm200_vm0, %v197_v0, 0.0 }
  0x11   : > { %202 = vadd.xlane.f32.xlu0 %v201_v1 }
  0x9a   : > { %v203_v2 = vpop.xlane.xlu0 %202 }
  0x9b   : > { %v205_v3 = vmul.f32 0.03125, %v203_v2 }
  0x9d   : > { %v206_v4 = vsub.f32 %v197_v0, %v205_v3 }
  0x9f   : > { %v207_v5 = vmul.f32 %v206_v4, %v206_v4 }
  0xa1   : > { %v208_v6 = vsel %vm200_vm0, %v207_v5, 0.0 }
  0xa2   : > { %209 = vadd.xlane.f32.xlu0 %v208_v6 }
 0x12b   : > { %v210_v7 = vpop.xlane.xlu0 %209 }
 0x12c   : > { %v211_v8 = vmul.f32 0.03125, %v210_v7 }
 0x12e   : > { %v212_v9 = vadd.f32 1e-05, %v211_v8 }
 0x130   : > { %339 = vrsqrt.f32 %v212_v9 }
 0x13d   : > { %v340_v10 = vpop.eup %339 }
 0x13e   : > { %v214_v12 = vmul.f32 %v340_v10, %v206_v4 }
 0x140   : > { %v221_v14 = vmul.f32 %v311_v11, %v214_v12 }
 0x142   : > { %v228_v15 = vadd.f32 %v312_v13, %v221_v14 }
 0x144   : > { %229 = vst.msk [vmem:[%s196_s26] sm:$0xff] %vm200_vm0, %v228_v15 }
 0x145 PF: > { %s13_s14 = sadd.s32 1, %s363_s14   ;;  %s431_s12 = smov %s359_s13 }
 0x146   : > { %p10_p5 = scmp.ge.s32.totalorder %s13_s14, 4   ;;  %s432_s13 = smov %s434_s15 }
 0x148   :  { %12 = sbr.rel (!%p10_p5) target bundleno = 2 (0x2), region = 62 }

// kernel: phone_autoregressive_decoder_layer.9
= control target key start
LH: loop header
LB: loop body
LE: loop exit
PB: predicated region body
PF: predicated region fallthrough
CT: control target
= control target key end

     0   :  { %s3601_s0 = inlined_call_operand.vmem [shape: f32[2,8,32], index: 0, kind: input, shape index: {}, may-alias: {0,1}]   ;;  %s3602_s1 = inlined_call_operand.vmem [shape: f32[2,8,32], index: 1, kind: input, shape index: {}, may-alias: {0,1}]   ;;  %s3603_s2 = inlined_call_operand.vmem [shape: bf16[2,8,8], index: 2, kind: input, shape index: {}]   ;;  %s3604_s3 = inlined_call_operand.vmem [shape: f32[2,8,1], index: 3, kind: input, shape index: {}]   ;;  %s3605_s4 = inlined_call_operand.vmem [shape: bf16[4,32,8], index: 4, kind: input, shape index: {}]   ;;  %s3606_s5 = inlined_call_operand.vmem [shape: bf16[4,32,8], index: 5, kind: input, shape index: {}]   ;;  %s3607_s6 = inlined_call_operand.vmem [shape: bf16[4,32,8], index: 6, kind: input, shape index: {}]   ;;  %s3608_s7 = inlined_call_operand.vmem [shape: bf16[4,8,32], index: 7, kind: input, shape index: {}]   ;;  %s3609_s8 = inlined_call_operand.vmem [shape: f32[1,32], index: 8, kind: input, shape index: {}]   ;;  %s3610_s9 = inlined_call_operand.vmem [shape: f32[1,32], index: 9, kind: input, shape index: {}]   ;;  %s3611_s10 = inlined_call_operand.vmem [shape: f32[1,32], index: 10, kind: input, shape index: {}]   ;;  %s3612_s11 = inlined_call_operand.vmem [shape: bf16[32,128], index: 11, kind: input, shape index: {}]   ;;  %s3613_s12 = inlined_call_operand.vmem [shape: f32[1,128], index: 12, kind: input, shape index: {}]   ;;  %s3614_s13 = inlined_call_operand.vmem [shape: bf16[128,32], index: 13, kind: input, shape index: {}]   ;;  %s3615_s14 = inlined_call_operand.vmem [shape: f32[1,32], index: 14, kind: input, shape index: {}]   ;;  %s3616_s15 = inlined_call_operand.vmem [shape: f32[1,32], index: 15, kind: input, shape index: {}]   ;;  %s3617_s16 = inlined_call_operand.vmem [shape: f32[1,32], index: 16, kind: input, shape index: {}]   ;;  %s3618_s17 = inlined_call_operand.vmem [shape: f32[2,8,32], index: 17, kind: output, shape index: {0}]   ;;  %s3619_s18 = inlined_call_operand.hbm [shape: f32[2,4,8,8], index: 18, kind: output, shape index: {1}]  }
   0x1   :  { %3627 = sst [smem:[#allocation12_spill]] %s3601_s0 }
   0x2   :  { %3628 = sst [smem:[#allocation13_spill]] %s3602_s1 }
   0x3   :  { %3629 = sst [smem:[#allocation14_spill]] %s3603_s2 }
   0x4   :  { %3630 = sst [smem:[#allocation15_spill]] %s3618_s17 }
   0x5   :  { %24 = vsyncpa [#allocation3], 0 }
   0x6   :  { %26 = vsyncpa [#allocation3 + $0x1], 0  ;;  %s3137_s27 = smov 0   ;;  %s3139_s28 = smov 0  }
   0x7   :  { %s3141_s29 = smov 0   ;;  %s3143_s30 = smov 0  }
   0x8   :  { %s3145_s0 = smov 0   ;;  %s3147_s19 = smov 0  }
   0x9 LB: > { %3631 = sst [smem:[#allocation5_spill]] %s3014_s27  ;;  %s2453_s1 = sadd.s32 4294967295, %s3034_s19   ;;  %s3034_s19 = sphi %s3147_s19, %s32_s19   ;;  %s3030_s0 = sphi %s3145_s0, %s3650_s0   ;;  %s3026_s30 = sphi %s3143_s30, %s3649_s30   ;;  %s3022_s29 = sphi %s3141_s29, %s3648_s29   ;;  %s3018_s28 = sphi %s3139_s28, %s3652_s28   ;;  %s3014_s27 = sphi %s3137_s27, %s3651_s27  }
   0xa   : > { %3632 = sst [smem:[#allocation6_spill]] %s3022_s29  ;;  %s2454_s20 = sadd.s32 4294967294, %s3034_s19  }
   0xb   : > { %3633 = sst [smem:[#allocation7_spill]] %s3030_s0  ;;  %s44_s21 = sadd.s32 1, %s3030_s0 }
   0xc   : > { %3634 = sst [smem:[#allocation8_spill]] %s3034_s19  ;;  %s464_s22 = sadd.s32 1, %s3022_s29 }
   0xd   : > { %p46_p0 = scmp.ge.s32.totalorder %s44_s21, 2  ;;  %p474_p1 = scmp.ne.s32.totalorder %s3022_s29, %s3018_s28 }
   0xe   : > { %p475_p2 = scmp.eq.s32.totalorder %s2453_s1, 1  ;;  %p480_p3 = scmp.ne.s32.totalorder %s3018_s28, %s3014_s27 }
   0xf   : > { %s3654_s21 = smov (%p46_p0, %s44_s21), 0  ;;  %p481_p5 = scmp.eq.s32.totalorder %s2454_s20, 1 }
  0x10   : > { %3635 = sst [smem:[#allocation9_spill]] %s3654_s21  ;;  %p3177_p4 = por %p475_p2, %p474_p1 }
  0x11   : > { %s459_s23 = ssub.s32 %s3030_s0, %s3654_s21  ;;  %p2457_p6 = scmp.ge.s32.totalorder %s3034_s19, 1 }
  0x12   : > { %p462_p7 = scmp.eq.s32.totalorder %s459_s23, 0  ;;  %p3184_p8 = por %p481_p5, %p480_p3 }
  0x13   : > { %p575_p9 = scmp.lt.s32.totalorder %s3034_s19, 3 }
  0x14   : > { %s3637_s24 = scalar_select %p3184_p8, 1, 0 }
  0x15   : > { %s3190_s25 = scalar_select %p462_p7, %s3022_s29, %s464_s22  }
  0x16   : > { %3638 = sst [smem:[#allocation10_spill]] %s3637_s24  ;;  %p576_p10 = pnand %p2457_p6, %p575_p9 }
  0x17   : > { %3639 = sst [smem:[#allocation11_spill]] %s3190_s25  ;;  %p656_p11 = scmp.lt.s32.totalorder (!%p576_p10), %s3026_s30, 1 }
  0x18   : > { %579 = sbr.rel (%p576_p10) target bundleno = 2197 (0x895), region = 88  ;;  %s3640_s0 = sld [smem:[#allocation12_spill]] (!%p576_p10) }
  0x19   : > { %s3641_s17 = sld [smem:[#allocation13_spill]] (!%p576_p10) }
  0x1a   : > { %s3642_s29 = sld [smem:[#allocation14_spill]] (!%p576_p10) }
  0x1d   : > { %v2904_v0 = vld [vmem:[%s3605_s4 + $0x8] sm:$0xff]   ;;  %v3036_v1 = vmov 0.0   ;;  %v2905_v2 = vld [vmem:[%s3605_s4 + $0x38] sm:$0xff]   ;;  %v2906_v3 = vld [vmem:[%s3605_s4] sm:$0xff]   ;;  %vm3037_vm0 = vmmov 0   ;;  %s3214_s20 = scalar_select %p656_p11, %s3026_s30, 1 }
  0x1e   : > { %2647 = vmatprep.subr.bf16.mxu0 %v3036_v1  ;;  %2671 = vmatprep.subr.bf16.mxu1 %v3036_v1  ;;  %v2907_v4 = vld [vmem:[%s3605_s4 + $0x30] sm:$0xff]   ;;  %v2908_v5 = vld [vmem:[%s3605_s4 + $0x18] sm:$0xff]   ;;  %vm712_vm1 = vcmask 261120   ;;  %v2912_v13 = vld [vmem:[%s3605_s4 + $0x28] sm:$0xff]   ;;  %vm1396_vm2 = vcmask 64512   ;;  %vm1645_vm3 = vcmask 1043456  }
  0x1f   : > { %2648 = vmatpush3.bf16.msra.mxu0 %v2904_v0  ;;  %2651 = vmatprep.mubr.msk.bf16.mxu0 %vm3037_vm0, %v3036_v1  ;;  %s3217_s21 = sshll.u32 %s3214_s20, 3  ;;  %v2909_v7 = vld [vmem:[%s3606_s5 + $0x18] sm:$0xff]   ;;  %v2910_v9 = vld [vmem:[%s3605_s4 + $0x10] sm:$0xff]   ;;  %v2914_v15 = vld [vmem:[%s3605_s4 + $0x20] sm:$0xff]   ;;  %s2461_s26 = sshll.u32 %s3214_s20, 2 }
  0x20   : > { %2672 = vmatpush3.bf16.msra.mxu1 %v2905_v2  ;;  %2649 = vmatprep.subr.bf16.mxu0 %v3036_v1  ;;  %s662_s25 = scalar_lea.vmem %s3640_s0, %s3217_s21  ;;  %s666_s23 = scalar_lea.vmem %s3641_s17, %s3217_s21  ;;  %v2911_v10 = vld [vmem:[%s3606_s5 + $0x10] sm:$0xff]   ;;  %v2913_v14 = vld [vmem:[%s3606_s5 + $0x38] sm:$0xff]   ;;  %v2916_v17 = vld [vmem:[%s3606_s5 + $0x8] sm:$0xff]  }
  0x21   : > { %2673 = vmatprep.subr.bf16.mxu1 %v3036_v1  ;;  %2675 = vmatprep.mubr.msk.bf16.mxu1 %vm3037_vm0, %v3036_v1  ;;  %v3227_v6 = vld [vmem:[%s662_s25] sm:$0xff]  ;;  %v2915_v16 = vld [vmem:[%s3606_s5 + $0x30] sm:$0xff]   ;;  %v2920_v18 = vld [vmem:[%s3607_s6 + $0x18] sm:$0xff]   ;;  %s673_s19 = scalar_lea.vmem %s3642_s29, %s2461_s26  ;;  %s680_s1 = scalar_lea.vmem %s3604_s3, %s3217_s21 }
  0x22   : > { %v694_v8 = vpack.c.bf16 %v3227_v6, %v3227_v6  ;;  %v690_v11 = vld [vmem:[%s666_s23] sm:$0xff]  ;;  %v2918_v20 = vld [vmem:[%s3606_s5 + $0x28] sm:$0xff]   ;;  %v2921_v22 = vld [vmem:[%s3607_s6 + $0x10] sm:$0xff]   ;;  %s653_s23 = sand.u32 1, %s3018_s28  }
  0x23   : > { %2650 = vmatpush3.bf16.msra.mxu0 %v2906_v3  ;;  %v3253_v12 = vpack.c.bf16 %v690_v11, %v690_v11  ;;  %v2917_v19 = vld [vmem:[%s3606_s5] sm:$0xff]   ;;  %v2922_v23 = vld [vmem:[%s3607_s6 + $0x38] sm:$0xff]   ;;  %v2923_v24 = vld [vmem:[%s3607_s6 + $0x8] sm:$0xff]   ;;  %s2458_s0 = sshll.u32 %s653_s23, 5  ;;  %s3545_s27 = scalar_lea.sflag [#allocation3], %s653_s23 }
  0x24   : > { %2674 = vmatpush3.bf16.msra.mxu1 %v2907_v4  ;;  %2655 = vmatprep.subr.bf16.mxu0 %v3036_v1  ;;  %v2919_v21 = vld [vmem:[%s3606_s5 + $0x20] sm:$0xff]   ;;  %v2924_v25 = vld [vmem:[%s3607_s6 + $0x30] sm:$0xff]   ;;  %v2926_v27 = vld [vmem:[%s3607_s6 + $0x28] sm:$0xff]   ;;  %s3411_s22 = scalar_lea.vmem [#allocation2], %s2458_s0 }
  0x25   : > { %2687 = vmatprep.subr.bf16.mxu1 %v3036_v1  ;;  %v2925_v26 = vld [vmem:[%s3607_s6] sm:$0xff]   ;;  %s2305_s0 = sshll.u32 %s3411_s22, 4  ;;  %s3541_s0 = int_to_ptr.vmem [resolvable:$true] %s2305_s0 }
  0x26   : > { %2652 = vmatmul.mubr.msk.bf16.vlgmr.msra.gmra.mxu0 %vm712_vm1, %v694_v8  ;;  %v2927_v28 = vld [vmem:[%s3607_s6 + $0x20] sm:$0xff]   ;;  %s2958_s29 = scalar_lea.vmem %s3541_s0, 512 }
  0x27   : > { %2676 = vmatmul.mubr.msk.bf16.vlgmr.msra.gmra.mxu1 %vm712_vm1, %v694_v8  ;;  %2656 = vmatpush3.bf16.msra.mxu0 %v2908_v5  ;;  %p2959_p12 = scmp.ne.s32.totalorder %s3541_s0, %s2958_s29 }
  0x28   : > { %2688 = vmatpush3.bf16.msra.mxu1 %v2909_v7  ;;  %2657 = vmatprep.subr.bf16.mxu0 %v3036_v1 }
  0x29   : > { %2689 = vmatprep.subr.bf16.mxu1 %v3036_v1  ;;  %2659 = vmatprep.mubr.msk.bf16.mxu0 %vm3037_vm0, %v3036_v1  ;;  %p2960_p13 = pnand %p2959_p12, %p3177_p4 }
  0x2a   : > { %2691 = vmatprep.mubr.msk.bf16.mxu1 %vm3037_vm0, %v3036_v1 }
  0x2b   : > { %2658 = vmatpush3.bf16.msra.mxu0 %v2910_v9  ;;  %p2961_p0 = pneg %p2960_p13 }
  0x2c   : > { %2690 = vmatpush3.bf16.msra.mxu1 %v2911_v10  ;;  %2663 = vmatprep.subr.bf16.mxu0 %v3036_v1 }
  0x2d   : > { %2703 = vmatprep.subr.bf16.mxu1 %v3036_v1 }
  0x2e   : > { %2660 = vmatmul.mubr.msk.bf16.vlgmr.msra.gmra.mxu0 %vm712_vm1, %v694_v8 }
  0x2f   : > { %2692 = vmatmul.mubr.msk.bf16.vlgmr.msra.gmra.mxu1 %vm712_vm1, %v3253_v12  ;;  %2664 = vmatpush3.bf16.msra.mxu0 %v2912_v13 }
  0x30   : > { %2704 = vmatpush3.bf16.msra.mxu1 %v2913_v14  ;;  %2665 = vmatprep.subr.bf16.mxu0 %v3036_v1 }
  0x31   : > { %2705 = vmatprep.subr.bf16.mxu1 %v3036_v1  ;;  %2667 = vmatprep.mubr.msk.bf16.mxu0 %vm3037_vm0, %v3036_v1 }
  0x32   : > { %2707 = vmatprep.mubr.msk.bf16.mxu1 %vm3037_vm0, %v3036_v1 }
  0x33   : > { %2666 = vmatpush3.bf16.msra.mxu0 %v2914_v15 }
  0x34   : > { %2706 = vmatpush3.bf16.msra.mxu1 %v2915_v16  ;;  %2679 = vmatprep.subr.bf16.mxu0 %v3036_v1 }
  0x35   : > { %2719 = vmatprep.subr.bf16.mxu1 %v3036_v1 }
  0x36   : > { %2668 = vmatmul.mubr.msk.bf16.vlgmr.msra.gmra.mxu0 %vm712_vm1, %v694_v8 }
  0x37   : > { %2708 = vmatmul.mubr.msk.bf16.vlgmr.msra.gmra.mxu1 %vm712_vm1, %v3253_v12  ;;  %2680 = vmatpush3.bf16.msra.mxu0 %v2916_v17 }
  0x38   : > { %2683 = vmatprep.mubr.msk.bf16.mxu0 %vm3037_vm0, %v3036_v1  ;;  %2681 = vmatprep.subr.bf16.mxu0 %v3036_v1 }
  0x39   : > { %2720 = vmatpush3.bf16.msra.mxu1 %v2920_v18  ;;  %2723 = vmatprep.mubr.msk.bf16.mxu1 %vm3037_vm0, %v3036_v1 }
  0x3a   : > { %2721 = vmatprep.subr.bf16.mxu1 %v3036_v1 }
  0x3b   : > { %2682 = vmatpush3.bf16.msra.mxu0 %v2917_v19 }
  0x3c   : > { %2695 = vmatprep.subr.bf16.mxu0 %v3036_v1 }
  0x3d   : > { %2722 = vmatpush3.bf16.msra.mxu1 %v2921_v22 }
  0x3e   : > { %2684 = vmatmul.mubr.msk.bf16.vlgmr.msra.gmra.mxu0 %vm712_vm1, %v3253_v12  ;;  %2735 = vmatprep.subr.bf16.mxu1 %v3036_v1 }
  0x3f   : > { %2696 = vmatpush3.bf16.msra.mxu0 %v2918_v20  ;;  %2699 = vmatprep.mubr.msk.bf16.mxu0 %vm3037_vm0, %v3036_v1 }
  0x40   : > { %2697 = vmatprep.subr.bf16.mxu0 %v3036_v1  ;;  %2724 = vmatmul.mubr.msk.bf16.vlgmr.msra.gmra.mxu1 %vm712_vm1, %v3253_v12 }
  0x41   : > { %2736 = vmatpush3.bf16.msra.mxu1 %v2922_v23  ;;  %2739 = vmatprep.mubr.msk.bf16.mxu1 %vm3037_vm0, %v3036_v1 }
  0x42   : > { %2737 = vmatprep.subr.bf16.mxu1 %v3036_v1 }
  0x43   : > { %2698 = vmatpush3.bf16.msra.mxu0 %v2919_v21 }
  0x44   : > { %2711 = vmatprep.subr.bf16.mxu0 %v3036_v1 }
  0x45   : > { %2738 = vmatpush3.bf16.msra.mxu1 %v2924_v25 }
  0x46   : > { %2700 = vmatmul.mubr.msk.bf16.vlgmr.msra.gmra.mxu0 %vm712_vm1, %v3253_v12  ;;  %2749 = vmatprep.subr.bf16.mxu1 %v3036_v1 }
  0x47   : > { %2715 = vmatprep.mubr.msk.bf16.mxu0 %vm3037_vm0, %v3036_v1  ;;  %2712 = vmatpush3.bf16.msra.mxu0 %v2923_v24 }
  0x48   : > { %2713 = vmatprep.subr.bf16.mxu0 %v3036_v1  ;;  %2740 = vmatmul.mubr.msk.bf16.vlgmr.msra.gmra.mxu1 %vm712_vm1, %v3253_v12 }
  0x49   : > { %2751 = vmatprep.mubr.msk.bf16.mxu1 %vm3037_vm0, %v3036_v1 }
  0x4b   : > { %2714 = vmatpush3.bf16.msra.mxu0 %v2925_v26 }
  0x4c   : > { %2727 = vmatprep.subr.bf16.mxu0 %v3036_v1 }
  0x4e   : > { %2716 = vmatmul.mubr.msk.bf16.vlgmr.msra.gmra.mxu0 %vm712_vm1, %v3253_v12 }
  0x4f   : > { %2728 = vmatpush3.bf16.msra.mxu0 %v2926_v27  ;;  %2731 = vmatprep.mubr.msk.bf16.mxu0 %vm3037_vm0, %v3036_v1 }
  0x50   : > { %2729 = vmatprep.subr.bf16.mxu0 %v3036_v1 }
  0x53   : > { %2730 = vmatpush3.bf16.msra.mxu0 %v2927_v28 }
  0x54   : > { %2743 = vmatprep.subr.bf16.mxu0 %v3036_v1 }
  0x56   : > { %2732 = vmatmul.mubr.msk.bf16.vlgmr.msra.gmra.mxu0 %vm712_vm1, %v3253_v12 }
  0x57   : > { %2745 = vmatprep.mubr.msk.bf16.mxu0 %vm3037_vm0, %v3036_v1 }
  0xe6   : > { %v750_v29 = vpop.f32.mrf.mxu0 }
  0xe7   : > { %v921_v30 = vpop.f32.mrf.mxu1  ;;  %v1384_v3 = vmul.f32 0.35355338, %v750_v29 }
  0xe8   : > { %v2653_v31 = vpop.f32.mrf.mxu0  ;;  %v1387_v57 = vmul.f32 0.35355338, %v921_v30 }
  0xe9   : > { %v2677_v32 = vpop.f32.mrf.mxu1  ;;  %v1388_v7 = vpack.c.bf16 %v1384_v3, %v1384_v3 }
  0xea   : > { %v753_v33 = vpop.f32.mrf.mxu0  ;;  %v1391_v61 = vpack.c.bf16 %v1387_v57, %v1387_v57 }
  0xeb   : > { %v924_v34 = vpop.f32.mrf.mxu1 }
  0xec   : > { %v2654_v35 = vpop.f32.mrf.mxu0 }
  0xed   : > { %v2678_v36 = vpop.f32.mrf.mxu1 }
  0xee   : > { %v807_v37 = vpop.f32.mrf.mxu0 }
  0xef   : > { %v1037_v38 = vpop.f32.mrf.mxu1  ;;  %v1385_v45 = vmul.f32 0.35355338, %v807_v37 }
  0xf0   : > { %v1393_v39 = vpack.c.bf16 %v1037_v38, %v1037_v38  ;;  %v2661_v40 = vpop.f32.mrf.mxu0 }
  0xf1   : > { %v2693_v41 = vpop.f32.mrf.mxu1  ;;  %v1389_v50 = vpack.c.bf16 %v1385_v45, %v1385_v45 }
  0xf2   : > { %v1447_v42 = vsel %vm1396_vm2, %v1393_v39, 0  ;;  %v810_v43 = vpop.f32.mrf.mxu0  ;;  %v691_v41 = vld [vmem:[%s673_s19] sm:$0xf] }
  0xf3   : > { %v1040_v44 = vpop.f32.mrf.mxu1  ;;  %2750 = vmatpush3.bf16.xpose.msra.mxu1 %v1447_v42 }
  0xf4   : > { %2761 = vmatprep.subr.bf16.mxu1 %v3036_v1  ;;  %v2662_v46 = vpop.f32.mrf.mxu0  ;;  %v692_v44 = vunpack.c.l.bf16 %v691_v41 }
  0xf5   : > { %v2694_v47 = vpop.f32.mrf.mxu1 }
  0xf6   : > { %v864_v48 = vpop.f32.mrf.mxu0 }
  0xf7   : > { %v1151_v49 = vpop.f32.mrf.mxu1  ;;  %v1386_v12 = vmul.f32 0.35355338, %v864_v48 }
  0xf8   : > { %v1395_v51 = vpack.c.bf16 %v1151_v49, %v1151_v49  ;;  %v2669_v52 = vpop.f32.mrf.mxu0 }
  0xf9   : > { %v2709_v53 = vpop.f32.mrf.mxu1  ;;  %v1390_v14 = vpack.c.bf16 %v1386_v12, %v1386_v12 }
  0xfa   : > { %v1539_v54 = vsel %vm1396_vm2, %v1395_v51, 0  ;;  %2752 = vmatmul.mubr.msk.bf16.vlgmr.msra.gmra.mxu1 %vm1396_vm2, %v1389_v50  ;;  %v867_v55 = vpop.f32.mrf.mxu0 }
  0xfb   : > { %2762 = vmatpush3.bf16.xpose.msra.mxu1 %v1539_v54  ;;  %2763 = vmatprep.mubr.msk.bf16.mxu1 %vm3037_vm0, %v3036_v1  ;;  %v1154_v56 = vpop.f32.mrf.mxu1 }
  0xfc   : > { %2773 = vmatprep.subr.bf16.mxu1 %v3036_v1  ;;  %v2670_v58 = vpop.f32.mrf.mxu0 }
  0xfd   : > { %v2710_v59 = vpop.f32.mrf.mxu1 }
  0xfe   : > { %v980_v60 = vpop.f32.mrf.mxu0 }
  0xff   : > { %v1392_v62 = vpack.c.bf16 %v980_v60, %v980_v60 }
 0x100   : > { %v2685_v63 = vpop.f32.mrf.mxu0  ;;  %v1264_v15 = vpop.f32.mrf.mxu1 }
 0x101   : > { %v1401_v0 = vsel %vm1396_vm2, %v1392_v62, 0  ;;  %v1639_v16 = vpack.c.bf16 %v1264_v15, %v1264_v15 }
 0x102   : > { %2764 = vmatmul.mubr.msk.bf16.vlgmr.msra.gmra.mxu1 %vm1396_vm2, %v1391_v61  ;;  %v983_v2 = vpop.f32.mrf.mxu0  ;;  %2744 = vmatpush3.bf16.xpose.msra.mxu0 %v1401_v0  ;;  %v2725_v17 = vpop.f32.mrf.mxu1  ;;  %v3038_v61 = vmov 0  }
 0x103   : > { %2775 = vmatprep.mubr.msk.bf16.mxu1 %vm3037_vm0, %v3036_v1  ;;  %2755 = vmatprep.subr.bf16.mxu0 %v3036_v1  ;;  %v1693_v18 = vsel %vm1645_vm3, %v1639_v16, 0 }
 0x104   : > { %v2686_v4 = vpop.f32.mrf.mxu0  ;;  %v1267_v19 = vpop.f32.mrf.mxu1  ;;  %2774 = vmatpush3.bf16.msra.mxu1 %v1693_v18  ;;  %2903 = vset.pattern.permute.xlu0 %v3038_v61 }
 0x105   : > { %2785 = vmatprep.subr.bf16.mxu1 %v3036_v1 }
 0x106   : > { %v1094_v5 = vpop.f32.mrf.mxu0  ;;  %v2726_v20 = vpop.f32.mrf.mxu1 }
 0x107   : > { %v1394_v8 = vpack.c.bf16 %v1094_v5, %v1094_v5  ;;  %v693_v20 = vld [vmem:[%s680_s1] sm:$0xff]  ;;  %s2574_s1 = sshll.u32 %s3026_s30, 9  ;;  %s3039_s30 = smov [#allocation2]  }
 0x108   : > { %v2701_v9 = vpop.f32.mrf.mxu0  ;;  %v3381_v21 = vpop.f32.mrf.mxu1  ;;  %s3539_s17 = scalar_lea.hbm %s3619_s18, %s2574_s1 }
 0x109   : > { %v1493_v10 = vsel %vm1396_vm2, %v1394_v8, 0  ;;  %2746 = vmatmul.mubr.msk.bf16.vlgmr.msra.gmra.mxu0 %vm1396_vm2, %v1388_v7 }
 0x10a   : > { %v1097_v11 = vpop.f32.mrf.mxu0  ;;  %2756 = vmatpush3.bf16.xpose.msra.mxu0 %v1493_v10  ;;  %2757 = vmatprep.mubr.msk.bf16.mxu0 %vm3037_vm0, %v3036_v1  ;;  %v2741_v22 = vpop.f32.mrf.mxu1 }
 0x10b   : > { %2767 = vmatprep.subr.bf16.mxu0 %v3036_v1 }
 0x10c   : > { %v2702_v13 = vpop.f32.mrf.mxu0  ;;  %v1381_v25 = vpop.f32.mrf.mxu1 }
 0x10e   : > { %v1207_v23 = vpop.f32.mrf.mxu0  ;;  %v2742_v28 = vpop.f32.mrf.mxu1 }
 0x10f   : > { %v1638_v24 = vpack.c.bf16 %v1207_v23, %v1207_v23 }
 0x110   : > { %v2717_v26 = vpop.f32.mrf.mxu0 }
 0x111   : > { %2758 = vmatmul.mubr.msk.bf16.vlgmr.msra.gmra.mxu0 %vm1396_vm2, %v1390_v14  ;;  %v1647_v27 = vsel %vm1645_vm3, %v1638_v24, 0 }
 0x112   : > { %2769 = vmatprep.mubr.msk.bf16.mxu0 %vm3037_vm0, %v3036_v1  ;;  %v1210_v29 = vpop.f32.mrf.mxu0  ;;  %2768 = vmatpush3.bf16.msra.mxu0 %v1647_v27 }
 0x113   : > { %2779 = vmatprep.subr.bf16.mxu0 %v3036_v1 }
 0x114   : > { %v2718_v30 = vpop.f32.mrf.mxu0 }
 0x116   : > { %v3385_v31 = vpop.f32.mrf.mxu0 }
 0x117   : > { %v1640_v29 = vpack.c.bf16 %v3385_v31, %v3385_v31 }
 0x118   : > { %v2733_v32 = vpop.f32.mrf.mxu0 }
 0x11a   : > { %v1324_v33 = vpop.f32.mrf.mxu0 }
 0x11c   : > { %v2734_v34 = vpop.f32.mrf.mxu0 }
 0x1ba   : > { %v1483_v35 = vpop.f32.mrf.mxu1 }
 0x1bb   : > { %v1484_v48 = vadd.f32 %v1483_v35, %v692_v44  ;;  %v1641_v35 = vpack.c.bf16 %v3381_v21, %v3381_v21  ;;  %v1829_v21 = vld [vmem:[%s3608_s7] sm:$0xf] }
 0x1bc   : > { %v2753_v36 = vpop.f32.mrf.mxu1 }
 0x1bd   : > { %v1584_v52 = vsel %vm1396_vm2, %v1484_v48, -inf  ;;  %v1739_v36 = vsel %vm1645_vm3, %v1640_v29, 0 }
 0x1be   : > { %v1486_v37 = vpop.f32.mrf.mxu1 }
 0x1c0   : > { %v2754_v38 = vpop.f32.mrf.mxu1 }
 0x1c2   : > { %v1575_v39 = vpop.f32.mrf.mxu1 }
 0x1c3   : > { %v1576_v56 = vadd.f32 %v1575_v39, %v692_v44 }
 0x1c4   : > { %v2765_v40 = vpop.f32.mrf.mxu1 }
 0x1c5   : > { %v1590_v60 = vsel %vm1396_vm2, %v1576_v56, -inf  ;;  %v1785_v40 = vsel %vm1645_vm3, %v1641_v35, 0 }
 0x1c6   : > { %v1578_v42 = vpop.f32.mrf.mxu1 }
 0x1c8   : > { %v2766_v43 = vpop.f32.mrf.mxu1 }
 0x1c9   : > { %v1437_v45 = vpop.f32.mrf.mxu0 }
 0x1ca   : > { %v1438_v46 = vadd.f32 %v1437_v45, %v692_v44  ;;  %v1834_v45 = vsel %vm1645_vm3, %v1829_v21, 0 }
 0x1cb   : > { %v2747_v47 = vpop.f32.mrf.mxu0 }
 0x1cc   : > { %v1581_v49 = vsel %vm1396_vm2, %v1438_v46, -inf }
 0x1cd   : > { %1582 = vmax.xlane.f32.xlu0 %v1581_v49  ;;  %v1440_v50 = vpop.f32.mrf.mxu0 }
 0x1ce   : > { %v2548_v50 = vld [vmem:[%s3608_s7 + $0x8] sm:$0xf] }
 0x1cf   : > { %v2748_v51 = vpop.f32.mrf.mxu0 }
 0x1d1   : > { %1585 = vmax.xlane.f32.xlu0 %v1584_v52  ;;  %v1529_v53 = vpop.f32.mrf.mxu0 }
 0x1d2   : > { %v1530_v54 = vadd.f32 %v1529_v53, %v692_v44  ;;  %v1940_v53 = vsel %vm1645_vm3, %v2548_v50, 0 }
 0x1d3   : > { %v2759_v55 = vpop.f32.mrf.mxu0 }
 0x1d4   : > { %v1587_v57 = vsel %vm1396_vm2, %v1530_v54, -inf  ;;  %v2550_v55 = vld [vmem:[%s3608_s7 + $0xc] sm:$0xf] }
 0x1d5   : > { %1588 = vmax.xlane.f32.xlu1 %v1587_v57  ;;  %v1532_v58 = vpop.f32.mrf.mxu0 }
 0x1d7   : > { %v2760_v59 = vpop.f32.mrf.mxu0 }
 0x1d8   : > { %v1990_v59 = vsel %vm1645_vm3, %v2550_v55, 0 }
 0x1d9   : > { %1591 = vmax.xlane.f32.xlu1 %v1590_v60 }
 0x256   : > { %v1583_v62 = vpop.xlane.xlu0 %1582 }
 0x257   : > { %v1593_v63 = vsub.f32 %v1438_v46, %v1583_v62 }
 0x259   : > { %v1597_v0 = vmul.f32 1.442695, %v1593_v63 }
 0x25a   : > { %v1586_v2 = vpop.xlane.xlu0 %1585 }
 0x25b   : > { %2938 = vpow2.f32 %v1597_v0  ;;  %v1594_v3 = vsub.f32 %v1484_v48, %v1586_v2  ;;  %v2546_v48 = vld [vmem:[%s3608_s7 + $0x4] sm:$0xf] }
 0x25c   : > { %v1890_v49 = vsel %vm1645_vm3, %v2546_v48, 0 }
 0x25d   : > { %v1599_v4 = vmul.f32 1.442695, %v1594_v3 }
 0x25e   : > { %v1589_v5 = vpop.xlane.xlu1 %1588 }
 0x25f   : > { %2940 = vpow2.f32 %v1599_v4  ;;  %v1595_v7 = vsub.f32 %v1530_v54, %v1589_v5 }
 0x261   : > { %v1601_v8 = vmul.f32 1.442695, %v1595_v7 }
 0x262   : > { %v1592_v9 = vpop.xlane.xlu1 %1591 }
 0x263   : > { %2942 = vpow2.f32 %v1601_v8  ;;  %v1596_v10 = vsub.f32 %v1576_v56, %v1592_v9 }
 0x265   : > { %v1603_v11 = vmul.f32 1.442695, %v1596_v10 }
 0x267   : > { %2944 = vpow2.f32 %v1603_v11 }
 0x268   : > { %v2939_v12 = vpop.eup %2938 }
 0x269   : > { %v1605_v13 = vsel %vm1396_vm2, %v2939_v12, 0.0 }
 0x26a   : > { %1606 = vadd.xlane.f32.xlu0 %v1605_v13 }
 0x26c   : > { %v2941_v14 = vpop.eup %2940 }
 0x26d   : > { %v1608_v15 = vsel %vm1396_vm2, %v2941_v14, 0.0 }
 0x26e   : > { %1609 = vadd.xlane.f32.xlu1 %v1608_v15 }
 0x270   : > { %v2943_v16 = vpop.eup %2942 }
 0x271   : > { %v1611_v17 = vsel %vm1396_vm2, %v2943_v16, 0.0 }
 0x272   : > { %1612 = vadd.xlane.f32.xlu0 %v1611_v17 }
 0x274   : > { %v2945_v18 = vpop.eup %2944 }
 0x275   : > { %v1614_v19 = vsel %vm1396_vm2, %v2945_v18, 0.0 }
 0x276   : > { %1615 = vadd.xlane.f32.xlu1 %v1614_v19 }
 0x288   : > { %1627 = vperm.xlu0 %2903, %v693_v20  }
 0x2f3   : > { %v1607_v22 = vpop.xlane.xlu0 %1606 }
 0x2f4   : > { %2946 = vrcp.f32 %v1607_v22 }
 0x2f7   : > { %v1610_v23 = vpop.xlane.xlu1 %1609 }
 0x2f8   : > { %2948 = vrcp.f32 %v1610_v23 }
 0x2fb   : > { %v1613_v24 = vpop.xlane.xlu0 %1612 }
 0x2fc   : > { %2950 = vrcp.f32 %v1613_v24 }
 0x2ff   : > { %v1616_v25 = vpop.xlane.xlu1 %1615 }
 0x300   : > { %2952 = vrcp.f32 %v1616_v25 }
 0x301   : > { %v2947_v26 = vpop.eup %2946 }
 0x302   : > { %v1621_v27 = vmul.f32 %v2947_v26, %v2939_v12 }
 0x303   : > { %v3406_v28 = vpop.permute.xlu0 %1627 }
 0x304   : > { %v1630_v30 = vmul.f32 %v3406_v28, %v1621_v27 }
 0x305   : > { %v2949_v32 = vpop.eup %2948 }
 0x306   : > { %v1622_v33 = vmul.f32 %v2949_v32, %v2941_v14  ;;  %v1634_v34 = vpack.c.bf16 %v1630_v30, %v1630_v30  ;;  %2034 = vst.msk [vmem:[%s3411_s22] sm:$0xff] %vm1396_vm2, %v1630_v30  ;;  %v2545_v14 = vld [vmem:[%s3609_s8] ss:$0 sm:$0xff] }
 0x308   : > { %v1631_v37 = vmul.f32 %v3406_v28, %v1622_v33  ;;  %2770 = vmatmul.mubr.msk.bf16.vlgmr.msra.gmra.mxu0 %vm1396_vm2, %v1634_v34 }
 0x309   : > { %v2951_v31 = vpop.eup %2950  ;;  %2780 = vmatpush3.bf16.msra.mxu0 %v1739_v36  ;;  %2781 = vmatprep.mubr.msk.bf16.mxu0 %vm3037_vm0, %v3036_v1 }
 0x30a   : > { %v1623_v38 = vmul.f32 %v2951_v31, %v2943_v16  ;;  %v1635_v39 = vpack.c.bf16 %v1631_v37, %v1631_v37  ;;  %2035 = vst.msk [vmem:[%s3411_s22 + $0x8] sm:$0xff] %vm1396_vm2, %v1631_v37  ;;  %2791 = vmatprep.subr.bf16.mxu0 %v3036_v1 }
 0x30c   : > { %v1632_v41 = vmul.f32 %v3406_v28, %v1623_v38  ;;  %2776 = vmatmul.mubr.msk.bf16.vlgmr.msra.gmra.mxu1 %vm1396_vm2, %v1635_v39 }
 0x30d   : > { %v2953_v42 = vpop.eup %2952  ;;  %2786 = vmatpush3.bf16.msra.mxu1 %v1785_v40  ;;  %2787 = vmatprep.mubr.msk.bf16.mxu1 %vm3037_vm0, %v3036_v1 }
 0x30e   : > { %v1624_v43 = vmul.f32 %v2953_v42, %v2945_v18  ;;  %v1636_v44 = vpack.c.bf16 %v1632_v41, %v1632_v41  ;;  %2036 = vst.msk [vmem:[%s3411_s22 + $0x10] sm:$0xff] %vm1396_vm2, %v1632_v41  ;;  %2797 = vmatprep.subr.bf16.mxu1 %v3036_v1  ;;  %v2928_v41 = vld [vmem:[%s3612_s11 + $0x8] sm:$0xff]   ;;  %v2930_v42 = vld [vmem:[%s3614_s13 + $0x38] sm:$0xff]  }
 0x310   : > { %v1633_v46 = vmul.f32 %v3406_v28, %v1624_v43  ;;  %2782 = vmatmul.mubr.msk.bf16.vlgmr.msra.gmra.mxu0 %vm1396_vm2, %v1636_v44  ;;  %v2931_v43 = vld [vmem:[%s3614_s13 + $0x30] sm:$0xff]   ;;  %v2932_v44 = vld [vmem:[%s3614_s13 + $0x28] sm:$0xff]  }
 0x311   : > { %2792 = vmatpush3.bf16.msra.mxu0 %v1834_v45  ;;  %2793 = vmatprep.mubr.msk.bf16.mxu0 %vm3037_vm0, %v3036_v1  ;;  %v2933_v45 = vld [vmem:[%s3614_s13 + $0x20] sm:$0xff]  }
 0x312   : > { %v1637_v47 = vpack.c.bf16 %v1633_v46, %v1633_v46  ;;  %2037 = vst.msk [vmem:[%s3411_s22 + $0x18] sm:$0xff] %vm1396_vm2, %v1633_v46  ;;  %2803 = vmatprep.subr.bf16.mxu0 %v3036_v1  ;;  %v2934_v46 = vld [vmem:[%s3614_s13 + $0x18] sm:$0xff]   ;;  %s2962_s22 = sshll.u32 %s3039_s30, 4  ;;  %s2963_s22 = int_to_ptr.vmem [resolvable:$false] %s2962_s22 }
 0x313   : > { %s2964_s19 = scalar_lea.vmem %s2963_s22, 1024  ;;  %p2965_p1 = scmp.lt.s32.totalorder %s3541_s0, %s2963_s22 }
 0x314   : > { %2788 = vmatmul.mubr.msk.bf16.vlgmr.msra.gmra.mxu1 %vm1396_vm2, %v1637_v47  ;;  %v2935_v47 = vld [vmem:[%s3614_s13 + $0x10] sm:$0xff]   ;;  %p2966_p2 = scmp.lt.s32.totalorder %s2964_s19, %s2958_s29 }
 0x315   : > { %2799 = vmatprep.mubr.msk.bf16.mxu1 %vm3037_vm0, %v3036_v1  ;;  %2798 = vmatpush3.bf16.msra.mxu1 %v1890_v49 }
 0x316   : > { %2809 = vmatprep.subr.bf16.mxu1 %v3036_v1  ;;  %p2967_p3 = por %p2966_p2, %p2965_p1 }
 0x318   : > { %p2968_p5 = pnand %p2967_p3, %p2961_p0 }
 0x3c8   : > { %v1683_v51 = vpop.f32.mrf.mxu0 }
 0x3c9   : > { %v1828_v52 = vpack.c.bf16 %v1683_v51, %v1683_v51 }
 0x3ca   : > { %v2771_v54 = vpop.f32.mrf.mxu0 }
 0x3cb   : > { %2794 = vmatmul.mubr.msk.bf16.vlgmr.msra.gmra.mxu0 %vm1396_vm2, %v1828_v52  ;;  %v2552_v52 = vld [vmem:[%s3610_s9] ss:$0 sm:$0xff] }
 0x3cc   : > { %v1686_v56 = vpop.f32.mrf.mxu0  ;;  %v1729_v57 = vpop.f32.mrf.mxu1  ;;  %2804 = vmatpush3.bf16.msra.mxu0 %v1940_v53  ;;  %2805 = vmatprep.mubr.msk.bf16.mxu0 %vm3037_vm0, %v3036_v1  ;;  %v2553_v54 = vld [vmem:[%s3611_s10] ss:$0 sm:$0xff] }
 0x3cd   : > { %v1883_v58 = vpack.c.bf16 %v1729_v57, %v1729_v57  ;;  %2815 = vmatprep.subr.bf16.mxu0 %v3036_v1 }
 0x3ce   : > { %v2772_v60 = vpop.f32.mrf.mxu0  ;;  %v2777_v61 = vpop.f32.mrf.mxu1 }
 0x3cf   : > { %2800 = vmatmul.mubr.msk.bf16.vlgmr.msra.gmra.mxu1 %vm1396_vm2, %v1883_v58  ;;  %v2936_v58 = vld [vmem:[%s3614_s13 + $0x8] sm:$0xff]   ;;  %v2554_v60 = vld [vmem:[%s3613_s12] ss:$0 sm:$0xff] }
 0x3d0   : > { %v1732_v62 = vpop.f32.mrf.mxu1  ;;  %v1775_v63 = vpop.f32.mrf.mxu0  ;;  %2810 = vmatpush3.bf16.msra.mxu1 %v1990_v59  ;;  %2811 = vmatprep.mubr.msk.bf16.mxu1 %vm3037_vm0, %v3036_v1  ;;  %v2937_v59 = vld [vmem:[%s3614_s13] sm:$0xff]  }
 0x3d1   : > { %v1933_v0 = vpack.c.bf16 %v1775_v63, %v1775_v63  ;;  %2823 = vmatprep.subr.bf16.mxu1 %v3036_v1 }
 0x3d2   : > { %v2778_v2 = vpop.f32.mrf.mxu1  ;;  %v2783_v3 = vpop.f32.mrf.mxu0 }
 0x3d3   : > { %2806 = vmatmul.mubr.msk.bf16.vlgmr.msra.gmra.mxu0 %vm1396_vm2, %v1933_v0 }
 0x3d4   : > { %v1778_v4 = vpop.f32.mrf.mxu0  ;;  %v1821_v5 = vpop.f32.mrf.mxu1  ;;  %2819 = vmatprep.mubr.msk.bf16.mxu0 %vm3037_vm0, %v3036_v1  ;;  %2816 = vmatpush3.bf16.msra.mxu0 %v2928_v41 }
 0x3d5   : > { %v1983_v7 = vpack.c.bf16 %v1821_v5, %v1821_v5  ;;  %2817 = vmatprep.subr.bf16.mxu0 %v3036_v1 }
 0x3d6   : > { %v2784_v8 = vpop.f32.mrf.mxu0  ;;  %v2789_v9 = vpop.f32.mrf.mxu1 }
 0x3d7   : > { %2812 = vmatmul.mubr.msk.bf16.vlgmr.msra.gmra.mxu1 %vm1396_vm2, %v1983_v7 }
 0x3d8   : > { %v1824_v10 = vpop.f32.mrf.mxu1  ;;  %2839 = vmatprep.mubr.msk.bf16.mxu1 %vm3037_vm0, %v3036_v1  ;;  %2824 = vmatpush3.bf16.msra.mxu1 %v2930_v42 }
 0x3d9   : > { %2825 = vmatprep.subr.bf16.mxu1 %v3036_v1 }
 0x3da   : > { %v2790_v11 = vpop.f32.mrf.mxu1 }
 0x3dc   : > { %2826 = vmatpush3.bf16.msra.mxu1 %v2931_v43 }
 0x3dd   : > { %2827 = vmatprep.subr.bf16.mxu1 %v3036_v1 }
 0x3e0   : > { %2828 = vmatpush3.bf16.msra.mxu1 %v2932_v44 }
 0x3e1   : > { %2829 = vmatprep.subr.bf16.mxu1 %v3036_v1 }
 0x3e4   : > { %2830 = vmatpush3.bf16.msra.mxu1 %v2933_v45 }
 0x3e5   : > { %2831 = vmatprep.subr.bf16.mxu1 %v3036_v1 }
 0x3e8   : > { %2832 = vmatpush3.bf16.msra.mxu1 %v2934_v46 }
 0x3e9   : > { %2833 = vmatprep.subr.bf16.mxu1 %v3036_v1 }
 0x3ec   : > { %2834 = vmatpush3.bf16.msra.mxu1 %v2935_v47 }
 0x3ed   : > { %2835 = vmatprep.subr.bf16.mxu1 %v3036_v1 }
 0x3f0   : > { %2836 = vmatpush3.bf16.msra.mxu1 %v2936_v58 }
 0x3f1   : > { %2837 = vmatprep.subr.bf16.mxu1 %v3036_v1  ;;  %v2558_v1 = vld [vmem:[%s3615_s14] ss:$0 sm:$0xff] }
 0x3f4   : > { %2838 = vmatpush3.bf16.msra.mxu1 %v2937_v59 }
 0x48b   : > { %v1870_v12 = vpop.f32.mrf.mxu0 }
 0x48c   : > { %v1882_v19 = vadd.f32 %v2545_v14, %v1870_v12 }
 0x48d   : > { %v2795_v13 = vpop.f32.mrf.mxu0 }
 0x48f   : > { %v1873_v15 = vpop.f32.mrf.mxu0  ;;  %v1926_v16 = vpop.f32.mrf.mxu1 }
 0x490   : > { %v1932_v23 = vadd.f32 %v1926_v16, %v1882_v19 }
 0x491   : > { %v2796_v17 = vpop.f32.mrf.mxu0  ;;  %v2801_v18 = vpop.f32.mrf.mxu1 }
 0x493   : > { %v1929_v20 = vpop.f32.mrf.mxu1  ;;  %v1976_v22 = vpop.f32.mrf.mxu0 }
 0x494   : > { %v1982_v26 = vadd.f32 %v1976_v22, %v1932_v23 }
 0x495   : > { %v2802_v24 = vpop.f32.mrf.mxu1  ;;  %v2807_v25 = vpop.f32.mrf.mxu0 }
 0x497   : > { %v1979_v27 = vpop.f32.mrf.mxu0  ;;  %v2026_v29 = vpop.f32.mrf.mxu1 }
 0x498   : > { %v2032_v30 = vadd.f32 %v2026_v29, %v1982_v26 }
 0x499   : > { %v2808_v32 = vpop.f32.mrf.mxu0  ;;  %v2813_v33 = vpop.f32.mrf.mxu1 }
 0x49a   : > { %v2033_v34 = vadd.f32 %v2032_v30, %v3227_v6  ;;  %v2929_v6 = vld [vmem:[%s3612_s11] sm:$0xff]  }
 0x49b   : > { %v2029_v35 = vpop.f32.mrf.mxu1  ;;  %2818 = vmatpush3.bf16.msra.mxu0 %v2929_v6 }
 0x49c   : > { %v2040_v36 = vsel %vm712_vm1, %v2033_v34, 0.0 }
 0x49d   : > { %v2814_v37 = vpop.f32.mrf.mxu1  ;;  %2041 = vadd.xlane.f32.xlu1 %v2040_v36 }
 0x526   : > { %v2042_v31 = vpop.xlane.xlu1 %2041 }
 0x527   : > { %v2044_v38 = vmul.f32 0.03125, %v2042_v31 }
 0x529   : > { %v2045_v39 = vsub.f32 %v2033_v34, %v2044_v38 }
 0x52b   : > { %v2046_v21 = vmul.f32 %v2045_v39, %v2045_v39 }
 0x52d   : > { %v2047_v40 = vsel %vm712_vm1, %v2046_v21, 0.0 }
 0x52e   : > { %2048 = vadd.xlane.f32.xlu1 %v2047_v40 }
 0x5b7   : > { %v2049_v48 = vpop.xlane.xlu1 %2048 }
 0x5b8   : > { %v2050_v49 = vmul.f32 0.03125, %v2049_v48 }
 0x5ba   : > { %v2051_v50 = vadd.f32 1e-05, %v2050_v49 }
 0x5bc   : > { %2954 = vrsqrt.f32 %v2051_v50 }
 0x5c9   : > { %v2955_v51 = vpop.eup %2954 }
 0x5ca   : > { %v2053_v53 = vmul.f32 %v2955_v51, %v2045_v39 }
 0x5cc   : > { %v2060_v55 = vmul.f32 %v2552_v52, %v2053_v53 }
 0x5ce   : > { %v2067_v56 = vadd.f32 %v2553_v54, %v2060_v55 }
 0x5d0   : > { %v2068_v57 = vpack.c.bf16 %v2067_v56, %v2067_v56 }
 0x5d2   : > { %2820 = vmatmul.mubr.msk.bf16.vlgmr.msra.gmra.mxu0 %vm712_vm1, %v2068_v57 }
 0x692   : > { %v2129_v61 = vpop.f32.mrf.mxu0 }
 0x693   : > { %v2130_v62 = vadd.f32 %v2554_v60, %v2129_v61 }
 0x694   : > { %v2821_v63 = vpop.f32.mrf.mxu0 }
 0x695   : > { %v2135_v0 = vmax.f32 %v2130_v62, 0.0 }
 0x696   : > { %v2132_v2 = vpop.f32.mrf.mxu0 }
 0x697   : > { %v2136_v3 = vpack.c.bf16 %v2135_v0, %v2135_v0 }
 0x698   : > { %v2822_v4 = vpop.f32.mrf.mxu0 }
 0x699   : > { %2840 = vmatmul.mubr.bf16.vlgmr.msra.gmra.mxu1 %v2136_v3 }
 0x759   : > { %v2242_v5 = vpop.f32.mrf.mxu1 }
 0x75a   : > { %v2243_v7 = vadd.f32 %v2558_v1, %v2242_v5 }
 0x75b   : > { %v2841_v8 = vpop.f32.mrf.mxu1 }
 0x75c   : > { %v2248_v9 = vmul.f32 %v2243_v7, %v3406_v28 }
 0x75d   : > { %v2245_v10 = vpop.f32.mrf.mxu1 }
 0x75e   : > { %v2249_v11 = vadd.f32 %v2248_v9, %v2067_v56 }
 0x75f   : > { %v2842_v12 = vpop.f32.mrf.mxu1 }
 0x760   : > { %v2252_v13 = vsel %vm712_vm1, %v2249_v11, 0.0 }
 0x761   : > { %2253 = vadd.xlane.f32.xlu1 %v2252_v13 }
 0x7ea   : > { %v2254_v14 = vpop.xlane.xlu1 %2253 }
 0x7eb   : > { %v2255_v15 = vmul.f32 0.03125, %v2254_v14 }
 0x7ed   : > { %v2256_v16 = vsub.f32 %v2249_v11, %v2255_v15 }
 0x7ef   : > { %v2257_v17 = vmul.f32 %v2256_v16, %v2256_v16 }
 0x7f1   : > { %v2258_v18 = vsel %vm712_vm1, %v2257_v17, 0.0 }
 0x7f2   : > { %2259 = vadd.xlane.f32.xlu1 %v2258_v18 }
 0x7f3   : > { %2971 = shalt.err (!%p2968_p5)
}
 0x7f4   : > { %s2972_s23 = scalar_lea.hbm %s3539_s17, 512  ;;  %s2976_s1 = scalar_lea.hbm %s3619_s18, 1024 }
 0x7f5   : > { %p2973_p6 = scmp.ne.s32.totalorder %s3539_s17, %s2972_s23  ;;  %p2977_p10 = scmp.lt.s32.totalorder %s3539_s17, %s3619_s18 }
 0x7f6   : > { %p2978_p11 = scmp.lt.s32.totalorder %s2976_s1, %s2972_s23 }
 0x7f7   : > { %p2974_p7 = pnand %p2973_p6, %p3177_p4 }
 0x7f8   : > { %p2979_p12 = por %p2978_p11, %p2977_p10 }
 0x7f9   : > { %p2975_p9 = pneg %p2974_p7 }
 0x7fb   : > { %p2980_p13 = pnand %p2979_p12, %p2975_p9 }
 0x7fd   : > { %2983 = shalt.err (!%p2980_p13)
}
 0x7fe   : > { %s3040_s29 = smov 128   ;;  %s3041_s30 = smov 8   ;;  %v2567_v23 = vld [vmem:[%s3616_s15] ss:$0 sm:$0xff] }
 0x7ff   : > { %2843 = dma.vmem_to_hbm [thread:$0]  (%p3177_p4), %s3541_s0, 512, %s3539_s17, %s3545_s27, %s3040_s29, %s3040_s29, %s3041_s30  }
 0x800   : > { %v2568_v25 = vld [vmem:[%s3617_s16] ss:$0 sm:$0xff]  ;;  %s3643_s25 = sld [smem:[#allocation15_spill]] }
 0x806   : > { %s687_s2 = scalar_lea.vmem %s3643_s25, %s3217_s21 }
 0x87b   : > { %v2260_v28 = vpop.xlane.xlu1 %2259 }
 0x87c   : > { %v2261_v19 = vmul.f32 0.03125, %v2260_v28 }
 0x87e   : > { %v2262_v20 = vadd.f32 1e-05, %v2261_v19 }
 0x880   : > { %2956 = vrsqrt.f32 %v2262_v20 }
 0x88d   : > { %v2957_v22 = vpop.eup %2956 }
 0x88e   : > { %v2264_v24 = vmul.f32 %v2957_v22, %v2256_v16 }
 0x890   : > { %v2271_v26 = vmul.f32 %v2567_v23, %v2264_v24 }
 0x892   : > { %v2278_v27 = vadd.f32 %v2568_v25, %v2271_v26 }
 0x894   : > { %2279 = vst.msk [vmem:[%s687_s2] sm:$0xff] %vm712_vm1, %v2278_v27 }
 0x895 PF: > { %s3644_s0 = sld [smem:[#allocation8_spill]] }
 0x896   : > { %s3645_s17 = sld [smem:[#allocation5_spill]] }
 0x89b   : > { %p2849_p4 = scmp.ge.s32.totalorder %s3644_s0, 2 }
 0x89c   : > { %s2330_s26 = sand.u32 1, %s3645_s17  }
 0x89d   : > { %p2846_p0 = pnand %p2849_p4, %p3184_p8  ;;  %s2331_s29 = scalar_lea.sflag [#allocation3], %s2330_s26 }
 0x89f   : > { %p2847_p1 = pneg %p2846_p0 }
 0x8a1   : > { %3009 = dma.done.wait (%p2847_p1), %s2331_s29, 512  }
 0x8a2   : > { %3011 = vsyncadd (%p2847_p1), %s2331_s29, 4294966784  ;;  %s32_s19 = sadd.s32 1, %s3644_s0   ;;  %s3647_s21 = sld [smem:[#allocation6_spill]] }
 0x8a3   : > { %p29_p2 = scmp.ge.s32.totalorder %s32_s19, 4   ;;  %s3648_s29 = sld [smem:[#allocation11_spill]] }
 0x8a4   : > { %s3649_s30 = sld [smem:[#allocation7_spill]]  ;;  %s3651_s27 = smov %s3018_s28 }
 0x8a5   : > { %s3650_s0 = sld [smem:[#allocation9_spill]]  ;;  %31 = sbr.rel (!%p29_p2) target bundleno = 9 (0x9), region = 156 }
 0x8a8   : > { %s3652_s28 = smov %s3647_s21 }
 0x8aa   :  { %2336 = vsyncpa [#allocation3], 1 }
 0x8ab   :  { %2338 = vsyncpa [#allocation3 + $0x1], 1 }

// kernel: phone_autoregressive_decoder_layer.13
= control target key start
LH: loop header
LB: loop body
LE: loop exit
PB: predicated region body
PF: predicated region fallthrough
CT: control target
= control target key end

     0   :  { %s3657_s0 = inlined_call_operand.vmem [shape: f32[2,8,32], index: 0, kind: input, shape index: {}, may-alias: {0,1}]   ;;  %s3658_s1 = inlined_call_operand.vmem [shape: f32[2,8,32], index: 1, kind: input, shape index: {}, may-alias: {0,1}]   ;;  %s3659_s2 = inlined_call_operand.vmem [shape: bf16[2,8,8], index: 2, kind: input, shape index: {}]   ;;  %s3660_s3 = inlined_call_operand.vmem [shape: f32[2,8,1], index: 3, kind: input, shape index: {}]   ;;  %s3661_s4 = inlined_call_operand.vmem [shape: bf16[4,32,8], index: 4, kind: input, shape index: {}]   ;;  %s3662_s5 = inlined_call_operand.vmem [shape: bf16[4,32,8], index: 5, kind: input, shape index: {}]   ;;  %s3663_s6 = inlined_call_operand.vmem [shape: bf16[4,32,8], index: 6, kind: input, shape index: {}]   ;;  %s3664_s7 = inlined_call_operand.vmem [shape: bf16[4,8,32], index: 7, kind: input, shape index: {}]   ;;  %s3665_s8 = inlined_call_operand.vmem [shape: f32[1,32], index: 8, kind: input, shape index: {}]   ;;  %s3666_s9 = inlined_call_operand.vmem [shape: f32[1,32], index: 9, kind: input, shape index: {}]   ;;  %s3667_s10 = inlined_call_operand.vmem [shape: f32[1,32], index: 10, kind: input, shape index: {}]   ;;  %s3668_s11 = inlined_call_operand.vmem [shape: bf16[32,128], index: 11, kind: input, shape index: {}]   ;;  %s3669_s12 = inlined_call_operand.vmem [shape: f32[1,128], index: 12, kind: input, shape index: {}]   ;;  %s3670_s13 = inlined_call_operand.vmem [shape: bf16[128,32], index: 13, kind: input, shape index: {}]   ;;  %s3671_s14 = inlined_call_operand.vmem [shape: f32[1,32], index: 14, kind: input, shape index: {}]   ;;  %s3672_s15 = inlined_call_operand.vmem [shape: f32[1,32], index: 15, kind: input, shape index: {}]   ;;  %s3673_s16 = inlined_call_operand.vmem [shape: f32[1,32], index: 16, kind: input, shape index: {}]   ;;  %s3674_s17 = inlined_call_operand.hbm [shape: f32[2,8,32], index: 17, kind: output, shape index: {0}]   ;;  %s3675_s18 = inlined_call_operand.hbm [shape: f32[2,4,8,8], index: 18, kind: output, shape index: {1}]  }
   0x1   :  { %3684 = sst [smem:[#allocation15_spill]] %s3657_s0 }
   0x2   :  { %3685 = sst [smem:[#allocation16_spill]] %s3658_s1 }
   0x3   :  { %3686 = sst [smem:[#allocation17_spill]] %s3659_s2 }
   0x4   :  { %3687 = sst [smem:[#allocation18_spill]] %s3660_s3 }
   0x5   :  { %3688 = sst [smem:[#allocation19_spill]] %s3674_s17 }
   0x6   :  { %24 = vsyncpa [#allocation3], 0 }
   0x7   :  { %26 = vsyncpa [#allocation3 + $0x1], 0 }
   0x8   :  { %27 = vsyncpa [#allocation5], 0 }
   0x9   :  { %29 = vsyncpa [#allocation5 + $0x1], 0  ;;  %s3180_s27 = smov 0   ;;  %s3182_s28 = smov 0  }
   0xa   :  { %s3184_s29 = smov 0   ;;  %s3186_s30 = smov 0  }
   0xb   :  { %s3188_s0 = smov 0   ;;  %s3190_s19 = smov 0  }
   0xc LB: > { %3689 = sst [smem:[#allocation8_spill]] %s3056_s27  ;;  %s2458_s1 = sadd.s32 4294967295, %s3076_s19   ;;  %s3076_s19 = sphi %s3190_s19, %s35_s19   ;;  %s3072_s0 = sphi %s3188_s0, %s3709_s0   ;;  %s3068_s30 = sphi %s3186_s30, %s3708_s30   ;;  %s3064_s29 = sphi %s3184_s29, %s3707_s29   ;;  %s3060_s28 = sphi %s3182_s28, %s3711_s28   ;;  %s3056_s27 = sphi %s3180_s27, %s3710_s27  }
   0xd   : > { %3690 = sst [smem:[#allocation9_spill]] %s3064_s29  ;;  %s2459_s20 = sadd.s32 4294967294, %s3076_s19  }
   0xe   : > { %3691 = sst [smem:[#allocation10_spill]] %s3072_s0  ;;  %s47_s21 = sadd.s32 1, %s3072_s0 }
   0xf   : > { %3692 = sst [smem:[#allocation11_spill]] %s3076_s19  ;;  %s439_s22 = sadd.s32 1, %s3064_s29 }
  0x10   : > { %p49_p0 = scmp.ge.s32.totalorder %s47_s21, 2  ;;  %p449_p1 = scmp.ne.s32.totalorder %s3064_s29, %s3060_s28 }
  0x11   : > { %p450_p2 = scmp.eq.s32.totalorder %s2458_s1, 1  ;;  %p455_p3 = scmp.ne.s32.totalorder %s3060_s28, %s3056_s27 }
  0x12   : > { %s3713_s21 = smov (%p49_p0, %s47_s21), 0  ;;  %p456_p5 = scmp.eq.s32.totalorder %s2459_s20, 1 }
  0x13   : > { %3693 = sst [smem:[#allocation12_spill]] %s3713_s21  ;;  %p3220_p4 = por %p450_p2, %p449_p1 }
  0x14   : > { %s434_s23 = ssub.s32 %s3072_s0, %s3713_s21  ;;  %p2462_p6 = scmp.ge.s32.totalorder %s3076_s19, 1 }
  0x15   : > { %p437_p7 = scmp.eq.s32.totalorder %s434_s23, 0  ;;  %p3227_p8 = por %p456_p5, %p455_p3 }
  0x16   : > { %p578_p9 = scmp.lt.s32.totalorder %s3076_s19, 3 }
  0x17   : > { %s3695_s24 = scalar_select %p3227_p8, 1, 0 }
  0x18   : > { %s3233_s25 = scalar_select %p437_p7, %s3064_s29, %s439_s22  }
  0x19   : > { %3696 = sst [smem:[#allocation13_spill]] %s3695_s24  ;;  %p579_p10 = pnand %p2462_p6, %p578_p9 }
  0x1a   : > { %3697 = sst [smem:[#allocation14_spill]] %s3233_s25  ;;  %p657_p11 = scmp.lt.s32.totalorder (!%p579_p10), %s3068_s30, 1 }
  0x1b   : > { %582 = sbr.rel (%p579_p10) target bundleno = 2212 (0x8a4), region = 88  ;;  %s3698_s0 = sld [smem:[#allocation15_spill]] (!%p579_p10) }
  0x1c   : > { %s3699_s17 = sld [smem:[#allocation16_spill]] (!%p579_p10) }
  0x1d   : > { %s3700_s29 = sld [smem:[#allocation17_spill]] (!%p579_p10) }
  0x1e   : > { %s3701_s3 = sld [smem:[#allocation18_spill]] (!%p579_p10) }
  0x20   : > { %v2916_v0 = vld [vmem:[%s3661_s4 + $0x8] sm:$0xff]   ;;  %v3078_v1 = vmov 0.0   ;;  %v2917_v2 = vld [vmem:[%s3661_s4 + $0x38] sm:$0xff]   ;;  %v2918_v3 = vld [vmem:[%s3661_s4] sm:$0xff]   ;;  %vm3079_vm0 = vmmov 0   ;;  %s3257_s20 = scalar_select %p657_p11, %s3068_s30, 1 }
  0x21   : > { %2654 = vmatprep.subr.bf16.mxu0 %v3078_v1  ;;  %2678 = vmatprep.subr.bf16.mxu1 %v3078_v1  ;;  %v2919_v4 = vld [vmem:[%s3661_s4 + $0x30] sm:$0xff]   ;;  %v2920_v5 = vld [vmem:[%s3661_s4 + $0x18] sm:$0xff]   ;;  %vm706_vm1 = vcmask 261120   ;;  %v2924_v13 = vld [vmem:[%s3661_s4 + $0x28] sm:$0xff]   ;;  %vm1390_vm2 = vcmask 64512   ;;  %vm1639_vm3 = vcmask 1043456  }
  0x22   : > { %2655 = vmatpush3.bf16.msra.mxu0 %v2916_v0  ;;  %2658 = vmatprep.mubr.msk.bf16.mxu0 %vm3079_vm0, %v3078_v1  ;;  %s3260_s21 = sshll.u32 %s3257_s20, 3  ;;  %v2921_v7 = vld [vmem:[%s3662_s5 + $0x18] sm:$0xff]   ;;  %v2922_v9 = vld [vmem:[%s3661_s4 + $0x10] sm:$0xff]   ;;  %v2926_v15 = vld [vmem:[%s3661_s4 + $0x20] sm:$0xff]   ;;  %s2467_s26 = sshll.u32 %s3257_s20, 2 }
  0x23   : > { %2679 = vmatpush3.bf16.msra.mxu1 %v2917_v2  ;;  %2656 = vmatprep.subr.bf16.mxu0 %v3078_v1  ;;  %s663_s25 = scalar_lea.vmem %s3698_s0, %s3260_s21  ;;  %s667_s23 = scalar_lea.vmem %s3699_s17, %s3260_s21  ;;  %v2923_v10 = vld [vmem:[%s3662_s5 + $0x10] sm:$0xff]   ;;  %v2925_v14 = vld [vmem:[%s3662_s5 + $0x38] sm:$0xff]   ;;  %v2928_v17 = vld [vmem:[%s3662_s5 + $0x8] sm:$0xff]  }
  0x24   : > { %2680 = vmatprep.subr.bf16.mxu1 %v3078_v1  ;;  %2682 = vmatprep.mubr.msk.bf16.mxu1 %vm3079_vm0, %v3078_v1  ;;  %v3270_v6 = vld [vmem:[%s663_s25] sm:$0xff]  ;;  %v2927_v16 = vld [vmem:[%s3662_s5 + $0x30] sm:$0xff]   ;;  %v2932_v18 = vld [vmem:[%s3663_s6 + $0x18] sm:$0xff]   ;;  %s674_s19 = scalar_lea.vmem %s3700_s29, %s2467_s26  ;;  %s681_s1 = scalar_lea.vmem %s3701_s3, %s3260_s21 }
  0x25   : > { %v688_v8 = vpack.c.bf16 %v3270_v6, %v3270_v6  ;;  %v684_v11 = vld [vmem:[%s667_s23] sm:$0xff]  ;;  %v2930_v20 = vld [vmem:[%s3662_s5 + $0x28] sm:$0xff]   ;;  %v2933_v22 = vld [vmem:[%s3663_s6 + $0x10] sm:$0xff]   ;;  %s3447_s23 = sand.u32 1, %s3060_s28   ;;  %s3081_s25 = smov [#allocation4]  }
  0x26   : > { %2657 = vmatpush3.bf16.msra.mxu0 %v2918_v3  ;;  %v3296_v12 = vpack.c.bf16 %v684_v11, %v684_v11  ;;  %v2929_v19 = vld [vmem:[%s3662_s5] sm:$0xff]   ;;  %v2934_v23 = vld [vmem:[%s3663_s6 + $0x38] sm:$0xff]   ;;  %v2935_v24 = vld [vmem:[%s3663_s6 + $0x8] sm:$0xff]   ;;  %s2464_s0 = sshll.u32 %s3447_s23, 5  ;;  %s2974_s26 = sshll.u32 %s3081_s25, 4  ;;  %s2975_s26 = int_to_ptr.vmem [resolvable:$false] %s2974_s26 }
  0x27   : > { %2681 = vmatpush3.bf16.msra.mxu1 %v2919_v4  ;;  %2662 = vmatprep.subr.bf16.mxu0 %v3078_v1  ;;  %v2931_v21 = vld [vmem:[%s3662_s5 + $0x20] sm:$0xff]   ;;  %v2936_v25 = vld [vmem:[%s3663_s6 + $0x30] sm:$0xff]   ;;  %v2938_v27 = vld [vmem:[%s3663_s6 + $0x28] sm:$0xff]   ;;  %s3455_s21 = scalar_lea.vmem [#allocation4], %s2464_s0  ;;  %s2280_s0 = scalar_lea.sflag [#allocation5], %s3447_s23 }
  0x28   : > { %2694 = vmatprep.subr.bf16.mxu1 %v3078_v1  ;;  %v2937_v26 = vld [vmem:[%s3663_s6] sm:$0xff]   ;;  %s2308_s29 = sshll.u32 %s3455_s21, 4  ;;  %s3580_s29 = int_to_ptr.vmem [resolvable:$true] %s2308_s29 }
  0x29   : > { %2659 = vmatmul.mubr.msk.bf16.vlgmr.msra.gmra.mxu0 %vm706_vm1, %v688_v8  ;;  %v2939_v28 = vld [vmem:[%s3663_s6 + $0x20] sm:$0xff]   ;;  %s2970_s22 = scalar_lea.vmem %s3580_s29, 512  ;;  %p2977_p1 = scmp.lt.s32.totalorder %s3580_s29, %s2975_s26 }
  0x2a   : > { %2683 = vmatmul.mubr.msk.bf16.vlgmr.msra.gmra.mxu1 %vm706_vm1, %v688_v8  ;;  %2663 = vmatpush3.bf16.msra.mxu0 %v2920_v5  ;;  %p2971_p12 = scmp.ne.s32.totalorder %s3580_s29, %s2970_s22 }
  0x2b   : > { %2695 = vmatpush3.bf16.msra.mxu1 %v2921_v7  ;;  %2664 = vmatprep.subr.bf16.mxu0 %v3078_v1 }
  0x2c   : > { %2696 = vmatprep.subr.bf16.mxu1 %v3078_v1  ;;  %2666 = vmatprep.mubr.msk.bf16.mxu0 %vm3079_vm0, %v3078_v1  ;;  %p2972_p13 = pnand %p2971_p12, %p3220_p4 }
  0x2d   : > { %2698 = vmatprep.mubr.msk.bf16.mxu1 %vm3079_vm0, %v3078_v1 }
  0x2e   : > { %2665 = vmatpush3.bf16.msra.mxu0 %v2922_v9  ;;  %p2973_p0 = pneg %p2972_p13 }
  0x2f   : > { %2697 = vmatpush3.bf16.msra.mxu1 %v2923_v10  ;;  %2670 = vmatprep.subr.bf16.mxu0 %v3078_v1 }
  0x30   : > { %2710 = vmatprep.subr.bf16.mxu1 %v3078_v1 }
  0x31   : > { %2667 = vmatmul.mubr.msk.bf16.vlgmr.msra.gmra.mxu0 %vm706_vm1, %v688_v8 }
  0x32   : > { %2699 = vmatmul.mubr.msk.bf16.vlgmr.msra.gmra.mxu1 %vm706_vm1, %v3296_v12  ;;  %2671 = vmatpush3.bf16.msra.mxu0 %v2924_v13 }
  0x33   : > { %2711 = vmatpush3.bf16.msra.mxu1 %v2925_v14  ;;  %2672 = vmatprep.subr.bf16.mxu0 %v3078_v1 }
  0x34   : > { %2712 = vmatprep.subr.bf16.mxu1 %v3078_v1  ;;  %2674 = vmatprep.mubr.msk.bf16.mxu0 %vm3079_vm0, %v3078_v1 }
  0x35   : > { %2714 = vmatprep.mubr.msk.bf16.mxu1 %vm3079_vm0, %v3078_v1 }
  0x36   : > { %2673 = vmatpush3.bf16.msra.mxu0 %v2926_v15 }
  0x37   : > { %2713 = vmatpush3.bf16.msra.mxu1 %v2927_v16  ;;  %2686 = vmatprep.subr.bf16.mxu0 %v3078_v1 }
  0x38   : > { %2726 = vmatprep.subr.bf16.mxu1 %v3078_v1 }
  0x39   : > { %2675 = vmatmul.mubr.msk.bf16.vlgmr.msra.gmra.mxu0 %vm706_vm1, %v688_v8 }
  0x3a   : > { %2715 = vmatmul.mubr.msk.bf16.vlgmr.msra.gmra.mxu1 %vm706_vm1, %v3296_v12  ;;  %2687 = vmatpush3.bf16.msra.mxu0 %v2928_v17 }
  0x3b   : > { %2690 = vmatprep.mubr.msk.bf16.mxu0 %vm3079_vm0, %v3078_v1  ;;  %2688 = vmatprep.subr.bf16.mxu0 %v3078_v1 }
  0x3c   : > { %2727 = vmatpush3.bf16.msra.mxu1 %v2932_v18  ;;  %2730 = vmatprep.mubr.msk.bf16.mxu1 %vm3079_vm0, %v3078_v1 }
  0x3d   : > { %2728 = vmatprep.subr.bf16.mxu1 %v3078_v1 }
  0x3e   : > { %2689 = vmatpush3.bf16.msra.mxu0 %v2929_v19 }
  0x3f   : > { %2702 = vmatprep.subr.bf16.mxu0 %v3078_v1 }
  0x40   : > { %2729 = vmatpush3.bf16.msra.mxu1 %v2933_v22 }
  0x41   : > { %2691 = vmatmul.mubr.msk.bf16.vlgmr.msra.gmra.mxu0 %vm706_vm1, %v3296_v12  ;;  %2742 = vmatprep.subr.bf16.mxu1 %v3078_v1 }
  0x42   : > { %2703 = vmatpush3.bf16.msra.mxu0 %v2930_v20  ;;  %2706 = vmatprep.mubr.msk.bf16.mxu0 %vm3079_vm0, %v3078_v1 }
  0x43   : > { %2704 = vmatprep.subr.bf16.mxu0 %v3078_v1  ;;  %2731 = vmatmul.mubr.msk.bf16.vlgmr.msra.gmra.mxu1 %vm706_vm1, %v3296_v12 }
  0x44   : > { %2743 = vmatpush3.bf16.msra.mxu1 %v2934_v23  ;;  %2746 = vmatprep.mubr.msk.bf16.mxu1 %vm3079_vm0, %v3078_v1 }
  0x45   : > { %2744 = vmatprep.subr.bf16.mxu1 %v3078_v1 }
  0x46   : > { %2705 = vmatpush3.bf16.msra.mxu0 %v2931_v21 }
  0x47   : > { %2718 = vmatprep.subr.bf16.mxu0 %v3078_v1 }
  0x48   : > { %2745 = vmatpush3.bf16.msra.mxu1 %v2936_v25 }
  0x49   : > { %2707 = vmatmul.mubr.msk.bf16.vlgmr.msra.gmra.mxu0 %vm706_vm1, %v3296_v12  ;;  %2756 = vmatprep.subr.bf16.mxu1 %v3078_v1 }
  0x4a   : > { %2722 = vmatprep.mubr.msk.bf16.mxu0 %vm3079_vm0, %v3078_v1  ;;  %2719 = vmatpush3.bf16.msra.mxu0 %v2935_v24 }
  0x4b   : > { %2720 = vmatprep.subr.bf16.mxu0 %v3078_v1  ;;  %2747 = vmatmul.mubr.msk.bf16.vlgmr.msra.gmra.mxu1 %vm706_vm1, %v3296_v12 }
  0x4c   : > { %2758 = vmatprep.mubr.msk.bf16.mxu1 %vm3079_vm0, %v3078_v1 }
  0x4e   : > { %2721 = vmatpush3.bf16.msra.mxu0 %v2937_v26 }
  0x4f   : > { %2734 = vmatprep.subr.bf16.mxu0 %v3078_v1 }
  0x51   : > { %2723 = vmatmul.mubr.msk.bf16.vlgmr.msra.gmra.mxu0 %vm706_vm1, %v3296_v12 }
  0x52   : > { %2735 = vmatpush3.bf16.msra.mxu0 %v2938_v27  ;;  %2738 = vmatprep.mubr.msk.bf16.mxu0 %vm3079_vm0, %v3078_v1 }
  0x53   : > { %2736 = vmatprep.subr.bf16.mxu0 %v3078_v1 }
  0x56   : > { %2737 = vmatpush3.bf16.msra.mxu0 %v2939_v28 }
  0x57   : > { %2750 = vmatprep.subr.bf16.mxu0 %v3078_v1 }
  0x59   : > { %2739 = vmatmul.mubr.msk.bf16.vlgmr.msra.gmra.mxu0 %vm706_vm1, %v3296_v12 }
  0x5a   : > { %2752 = vmatprep.mubr.msk.bf16.mxu0 %vm3079_vm0, %v3078_v1 }
  0xe9   : > { %v744_v29 = vpop.f32.mrf.mxu0 }
  0xea   : > { %v915_v30 = vpop.f32.mrf.mxu1  ;;  %v1378_v3 = vmul.f32 0.35355338, %v744_v29 }
  0xeb   : > { %v2660_v31 = vpop.f32.mrf.mxu0  ;;  %v1381_v57 = vmul.f32 0.35355338, %v915_v30 }
  0xec   : > { %v2684_v32 = vpop.f32.mrf.mxu1  ;;  %v1382_v7 = vpack.c.bf16 %v1378_v3, %v1378_v3 }
  0xed   : > { %v747_v33 = vpop.f32.mrf.mxu0  ;;  %v1385_v61 = vpack.c.bf16 %v1381_v57, %v1381_v57 }
  0xee   : > { %v918_v34 = vpop.f32.mrf.mxu1 }
  0xef   : > { %v2661_v35 = vpop.f32.mrf.mxu0 }
  0xf0   : > { %v2685_v36 = vpop.f32.mrf.mxu1 }
  0xf1   : > { %v801_v37 = vpop.f32.mrf.mxu0 }
  0xf2   : > { %v1031_v38 = vpop.f32.mrf.mxu1  ;;  %v1379_v45 = vmul.f32 0.35355338, %v801_v37 }
  0xf3   : > { %v1387_v39 = vpack.c.bf16 %v1031_v38, %v1031_v38  ;;  %v2668_v40 = vpop.f32.mrf.mxu0 }
  0xf4   : > { %v2700_v41 = vpop.f32.mrf.mxu1  ;;  %v1383_v50 = vpack.c.bf16 %v1379_v45, %v1379_v45 }
  0xf5   : > { %v1441_v42 = vsel %vm1390_vm2, %v1387_v39, 0  ;;  %v804_v43 = vpop.f32.mrf.mxu0  ;;  %v685_v41 = vld [vmem:[%s674_s19] sm:$0xf]  ;;  %s2581_s19 = sshll.u32 %s3068_s30, 9 }
  0xf6   : > { %v1034_v44 = vpop.f32.mrf.mxu1  ;;  %2757 = vmatpush3.bf16.xpose.msra.mxu1 %v1441_v42 }
  0xf7   : > { %2768 = vmatprep.subr.bf16.mxu1 %v3078_v1  ;;  %v2669_v46 = vpop.f32.mrf.mxu0  ;;  %v686_v44 = vunpack.c.l.bf16 %v685_v41 }
  0xf8   : > { %v2701_v47 = vpop.f32.mrf.mxu1 }
  0xf9   : > { %v858_v48 = vpop.f32.mrf.mxu0 }
  0xfa   : > { %v1145_v49 = vpop.f32.mrf.mxu1  ;;  %v1380_v12 = vmul.f32 0.35355338, %v858_v48 }
  0xfb   : > { %v1389_v51 = vpack.c.bf16 %v1145_v49, %v1145_v49  ;;  %v2676_v52 = vpop.f32.mrf.mxu0 }
  0xfc   : > { %v2716_v53 = vpop.f32.mrf.mxu1  ;;  %v1384_v14 = vpack.c.bf16 %v1380_v12, %v1380_v12 }
  0xfd   : > { %v1533_v54 = vsel %vm1390_vm2, %v1389_v51, 0  ;;  %2759 = vmatmul.mubr.msk.bf16.vlgmr.msra.gmra.mxu1 %vm1390_vm2, %v1383_v50  ;;  %v861_v55 = vpop.f32.mrf.mxu0 }
  0xfe   : > { %2769 = vmatpush3.bf16.xpose.msra.mxu1 %v1533_v54  ;;  %2770 = vmatprep.mubr.msk.bf16.mxu1 %vm3079_vm0, %v3078_v1  ;;  %v1148_v56 = vpop.f32.mrf.mxu1 }
  0xff   : > { %2780 = vmatprep.subr.bf16.mxu1 %v3078_v1  ;;  %v2677_v58 = vpop.f32.mrf.mxu0 }
 0x100   : > { %v2717_v59 = vpop.f32.mrf.mxu1 }
 0x101   : > { %v974_v60 = vpop.f32.mrf.mxu0 }
 0x102   : > { %v1386_v62 = vpack.c.bf16 %v974_v60, %v974_v60 }
 0x103   : > { %v2692_v63 = vpop.f32.mrf.mxu0  ;;  %v1258_v15 = vpop.f32.mrf.mxu1 }
 0x104   : > { %v1395_v0 = vsel %vm1390_vm2, %v1386_v62, 0  ;;  %v1633_v16 = vpack.c.bf16 %v1258_v15, %v1258_v15 }
 0x105   : > { %2771 = vmatmul.mubr.msk.bf16.vlgmr.msra.gmra.mxu1 %vm1390_vm2, %v1385_v61  ;;  %v977_v2 = vpop.f32.mrf.mxu0  ;;  %2751 = vmatpush3.bf16.xpose.msra.mxu0 %v1395_v0  ;;  %v2732_v17 = vpop.f32.mrf.mxu1  ;;  %v3080_v61 = vmov 0  }
 0x106   : > { %2782 = vmatprep.mubr.msk.bf16.mxu1 %vm3079_vm0, %v3078_v1  ;;  %2762 = vmatprep.subr.bf16.mxu0 %v3078_v1  ;;  %v1687_v18 = vsel %vm1639_vm3, %v1633_v16, 0 }
 0x107   : > { %v2693_v4 = vpop.f32.mrf.mxu0  ;;  %v1261_v19 = vpop.f32.mrf.mxu1  ;;  %2781 = vmatpush3.bf16.msra.mxu1 %v1687_v18  ;;  %2915 = vset.pattern.permute.xlu0 %v3080_v61 }
 0x108   : > { %2792 = vmatprep.subr.bf16.mxu1 %v3078_v1 }
 0x109   : > { %v1088_v5 = vpop.f32.mrf.mxu0  ;;  %v2733_v20 = vpop.f32.mrf.mxu1 }
 0x10a   : > { %v1388_v8 = vpack.c.bf16 %v1088_v5, %v1088_v5  ;;  %v687_v20 = vld [vmem:[%s681_s1] sm:$0xff]  ;;  %s3585_s1 = scalar_lea.hbm %s3675_s18, %s2581_s19 }
 0x10b   : > { %v2708_v9 = vpop.f32.mrf.mxu0  ;;  %v3424_v21 = vpop.f32.mrf.mxu1 }
 0x10c   : > { %v1487_v10 = vsel %vm1390_vm2, %v1388_v8, 0  ;;  %2753 = vmatmul.mubr.msk.bf16.vlgmr.msra.gmra.mxu0 %vm1390_vm2, %v1382_v7 }
 0x10d   : > { %v1091_v11 = vpop.f32.mrf.mxu0  ;;  %2763 = vmatpush3.bf16.xpose.msra.mxu0 %v1487_v10  ;;  %2764 = vmatprep.mubr.msk.bf16.mxu0 %vm3079_vm0, %v3078_v1  ;;  %v2748_v22 = vpop.f32.mrf.mxu1 }
 0x10e   : > { %2774 = vmatprep.subr.bf16.mxu0 %v3078_v1 }
 0x10f   : > { %v2709_v13 = vpop.f32.mrf.mxu0  ;;  %v1375_v25 = vpop.f32.mrf.mxu1 }
 0x111   : > { %v1201_v23 = vpop.f32.mrf.mxu0  ;;  %v2749_v28 = vpop.f32.mrf.mxu1 }
 0x112   : > { %v1632_v24 = vpack.c.bf16 %v1201_v23, %v1201_v23 }
 0x113   : > { %v2724_v26 = vpop.f32.mrf.mxu0 }
 0x114   : > { %2765 = vmatmul.mubr.msk.bf16.vlgmr.msra.gmra.mxu0 %vm1390_vm2, %v1384_v14  ;;  %v1641_v27 = vsel %vm1639_vm3, %v1632_v24, 0 }
 0x115   : > { %2776 = vmatprep.mubr.msk.bf16.mxu0 %vm3079_vm0, %v3078_v1  ;;  %v1204_v29 = vpop.f32.mrf.mxu0  ;;  %2775 = vmatpush3.bf16.msra.mxu0 %v1641_v27 }
 0x116   : > { %2786 = vmatprep.subr.bf16.mxu0 %v3078_v1 }
 0x117   : > { %v2725_v30 = vpop.f32.mrf.mxu0 }
 0x119   : > { %v3428_v31 = vpop.f32.mrf.mxu0 }
 0x11a   : > { %v1634_v29 = vpack.c.bf16 %v3428_v31, %v3428_v31 }
 0x11b   : > { %v2740_v32 = vpop.f32.mrf.mxu0 }
 0x11d   : > { %v1318_v33 = vpop.f32.mrf.mxu0 }
 0x11f   : > { %v2741_v34 = vpop.f32.mrf.mxu0 }
 0x1bd   : > { %v1477_v35 = vpop.f32.mrf.mxu1 }
 0x1be   : > { %v1478_v48 = vadd.f32 %v1477_v35, %v686_v44  ;;  %v1635_v35 = vpack.c.bf16 %v3424_v21, %v3424_v21  ;;  %v1823_v21 = vld [vmem:[%s3664_s7] sm:$0xf] }
 0x1bf   : > { %v2760_v36 = vpop.f32.mrf.mxu1 }
 0x1c0   : > { %v1578_v52 = vsel %vm1390_vm2, %v1478_v48, -inf  ;;  %v1733_v36 = vsel %vm1639_vm3, %v1634_v29, 0 }
 0x1c1   : > { %v1480_v37 = vpop.f32.mrf.mxu1 }
 0x1c3   : > { %v2761_v38 = vpop.f32.mrf.mxu1 }
 0x1c5   : > { %v1569_v39 = vpop.f32.mrf.mxu1 }
 0x1c6   : > { %v1570_v56 = vadd.f32 %v1569_v39, %v686_v44 }
 0x1c7   : > { %v2772_v40 = vpop.f32.mrf.mxu1 }
 0x1c8   : > { %v1584_v60 = vsel %vm1390_vm2, %v1570_v56, -inf  ;;  %v1779_v40 = vsel %vm1639_vm3, %v1635_v35, 0 }
 0x1c9   : > { %v1572_v42 = vpop.f32.mrf.mxu1 }
 0x1cb   : > { %v2773_v43 = vpop.f32.mrf.mxu1 }
 0x1cc   : > { %v1431_v45 = vpop.f32.mrf.mxu0 }
 0x1cd   : > { %v1432_v46 = vadd.f32 %v1431_v45, %v686_v44  ;;  %v1828_v45 = vsel %vm1639_vm3, %v1823_v21, 0 }
 0x1ce   : > { %v2754_v47 = vpop.f32.mrf.mxu0 }
 0x1cf   : > { %v1575_v49 = vsel %vm1390_vm2, %v1432_v46, -inf }
 0x1d0   : > { %1576 = vmax.xlane.f32.xlu0 %v1575_v49  ;;  %v1434_v50 = vpop.f32.mrf.mxu0 }
 0x1d1   : > { %v2553_v50 = vld [vmem:[%s3664_s7 + $0x8] sm:$0xf] }
 0x1d2   : > { %v2755_v51 = vpop.f32.mrf.mxu0 }
 0x1d4   : > { %1579 = vmax.xlane.f32.xlu0 %v1578_v52  ;;  %v1523_v53 = vpop.f32.mrf.mxu0 }
 0x1d5   : > { %v1524_v54 = vadd.f32 %v1523_v53, %v686_v44  ;;  %v1934_v53 = vsel %vm1639_vm3, %v2553_v50, 0 }
 0x1d6   : > { %v2766_v55 = vpop.f32.mrf.mxu0 }
 0x1d7   : > { %v1581_v57 = vsel %vm1390_vm2, %v1524_v54, -inf  ;;  %v2555_v55 = vld [vmem:[%s3664_s7 + $0xc] sm:$0xf] }
 0x1d8   : > { %1582 = vmax.xlane.f32.xlu1 %v1581_v57  ;;  %v1526_v58 = vpop.f32.mrf.mxu0 }
 0x1da   : > { %v2767_v59 = vpop.f32.mrf.mxu0 }
 0x1db   : > { %v1984_v59 = vsel %vm1639_vm3, %v2555_v55, 0 }
 0x1dc   : > { %1585 = vmax.xlane.f32.xlu1 %v1584_v60 }
 0x259   : > { %v1577_v62 = vpop.xlane.xlu0 %1576 }
 0x25a   : > { %v1587_v63 = vsub.f32 %v1432_v46, %v1577_v62 }
 0x25c   : > { %v1591_v0 = vmul.f32 1.442695, %v1587_v63 }
 0x25d   : > { %v1580_v2 = vpop.xlane.xlu0 %1579 }
 0x25e   : > { %2950 = vpow2.f32 %v1591_v0  ;;  %v1588_v3 = vsub.f32 %v1478_v48, %v1580_v2  ;;  %v2551_v48 = vld [vmem:[%s3664_s7 + $0x4] sm:$0xf] }
 0x25f   : > { %v1884_v49 = vsel %vm1639_vm3, %v2551_v48, 0 }
 0x260   : > { %v1593_v4 = vmul.f32 1.442695, %v1588_v3 }
 0x261   : > { %v1583_v5 = vpop.xlane.xlu1 %1582 }
 0x262   : > { %2952 = vpow2.f32 %v1593_v4  ;;  %v1589_v7 = vsub.f32 %v1524_v54, %v1583_v5 }
 0x264   : > { %v1595_v8 = vmul.f32 1.442695, %v1589_v7 }
 0x265   : > { %v1586_v9 = vpop.xlane.xlu1 %1585 }
 0x266   : > { %2954 = vpow2.f32 %v1595_v8  ;;  %v1590_v10 = vsub.f32 %v1570_v56, %v1586_v9 }
 0x268   : > { %v1597_v11 = vmul.f32 1.442695, %v1590_v10 }
 0x26a   : > { %2956 = vpow2.f32 %v1597_v11 }
 0x26b   : > { %v2951_v12 = vpop.eup %2950 }
 0x26c   : > { %v1599_v13 = vsel %vm1390_vm2, %v2951_v12, 0.0 }
 0x26d   : > { %1600 = vadd.xlane.f32.xlu0 %v1599_v13 }
 0x26f   : > { %v2953_v14 = vpop.eup %2952 }
 0x270   : > { %v1602_v15 = vsel %vm1390_vm2, %v2953_v14, 0.0 }
 0x271   : > { %1603 = vadd.xlane.f32.xlu1 %v1602_v15 }
 0x273   : > { %v2955_v16 = vpop.eup %2954 }
 0x274   : > { %v1605_v17 = vsel %vm1390_vm2, %v2955_v16, 0.0 }
 0x275   : > { %1606 = vadd.xlane.f32.xlu0 %v1605_v17 }
 0x277   : > { %v2957_v18 = vpop.eup %2956 }
 0x278   : > { %v1608_v19 = vsel %vm1390_vm2, %v2957_v18, 0.0 }
 0x279   : > { %1609 = vadd.xlane.f32.xlu1 %v1608_v19 }
 0x28b   : > { %1621 = vperm.xlu0 %2915, %v687_v20  }
 0x2f6   : > { %v1601_v22 = vpop.xlane.xlu0 %1600 }
 0x2f7   : > { %2958 = vrcp.f32 %v1601_v22 }
 0x2fa   : > { %v1604_v23 = vpop.xlane.xlu1 %1603 }
 0x2fb   : > { %2960 = vrcp.f32 %v1604_v23 }
 0x2fe   : > { %v1607_v24 = vpop.xlane.xlu0 %1606 }
 0x2ff   : > { %2962 = vrcp.f32 %v1607_v24 }
 0x302   : > { %v1610_v25 = vpop.xlane.xlu1 %1609 }
 0x303   : > { %2964 = vrcp.f32 %v1610_v25 }
 0x304   : > { %v2959_v26 = vpop.eup %2958 }
 0x305   : > { %v1615_v27 = vmul.f32 %v2959_v26, %v2951_v12 }
 0x306   : > { %v3450_v28 = vpop.permute.xlu0 %1621 }
 0x307   : > { %v1624_v30 = vmul.f32 %v3450_v28, %v1615_v27 }
 0x308   : > { %v2961_v32 = vpop.eup %2960 }
 0x309   : > { %v1616_v33 = vmul.f32 %v2961_v32, %v2953_v14  ;;  %v1628_v34 = vpack.c.bf16 %v1624_v30, %v1624_v30  ;;  %2028 = vst.msk [vmem:[%s3455_s21] sm:$0xff] %vm1390_vm2, %v1624_v30  ;;  %v2550_v14 = vld [vmem:[%s3665_s8] ss:$0 sm:$0xff] }
 0x30b   : > { %v1625_v37 = vmul.f32 %v3450_v28, %v1616_v33  ;;  %2777 = vmatmul.mubr.msk.bf16.vlgmr.msra.gmra.mxu0 %vm1390_vm2, %v1628_v34 }
 0x30c   : > { %v2963_v31 = vpop.eup %2962  ;;  %2787 = vmatpush3.bf16.msra.mxu0 %v1733_v36  ;;  %2788 = vmatprep.mubr.msk.bf16.mxu0 %vm3079_vm0, %v3078_v1 }
 0x30d   : > { %v1617_v38 = vmul.f32 %v2963_v31, %v2955_v16  ;;  %v1629_v39 = vpack.c.bf16 %v1625_v37, %v1625_v37  ;;  %2798 = vmatprep.subr.bf16.mxu0 %v3078_v1  ;;  %2029 = vst.msk [vmem:[%s3455_s21 + $0x8] sm:$0xff] %vm1390_vm2, %v1625_v37 }
 0x30f   : > { %v1626_v41 = vmul.f32 %v3450_v28, %v1617_v38  ;;  %2783 = vmatmul.mubr.msk.bf16.vlgmr.msra.gmra.mxu1 %vm1390_vm2, %v1629_v39 }
 0x310   : > { %v2965_v42 = vpop.eup %2964  ;;  %2793 = vmatpush3.bf16.msra.mxu1 %v1779_v40  ;;  %2794 = vmatprep.mubr.msk.bf16.mxu1 %vm3079_vm0, %v3078_v1 }
 0x311   : > { %v1618_v43 = vmul.f32 %v2965_v42, %v2957_v18  ;;  %v1630_v44 = vpack.c.bf16 %v1626_v41, %v1626_v41  ;;  %2804 = vmatprep.subr.bf16.mxu1 %v3078_v1  ;;  %2030 = vst.msk [vmem:[%s3455_s21 + $0x10] sm:$0xff] %vm1390_vm2, %v1626_v41  ;;  %v2940_v41 = vld [vmem:[%s3668_s11 + $0x8] sm:$0xff]   ;;  %v2942_v42 = vld [vmem:[%s3670_s13 + $0x38] sm:$0xff]  }
 0x313   : > { %v1627_v46 = vmul.f32 %v3450_v28, %v1618_v43  ;;  %2789 = vmatmul.mubr.msk.bf16.vlgmr.msra.gmra.mxu0 %vm1390_vm2, %v1630_v44  ;;  %v2943_v43 = vld [vmem:[%s3670_s13 + $0x30] sm:$0xff]   ;;  %v2944_v44 = vld [vmem:[%s3670_s13 + $0x28] sm:$0xff]  }
 0x314   : > { %2799 = vmatpush3.bf16.msra.mxu0 %v1828_v45  ;;  %2800 = vmatprep.mubr.msk.bf16.mxu0 %vm3079_vm0, %v3078_v1  ;;  %v2945_v45 = vld [vmem:[%s3670_s13 + $0x20] sm:$0xff]  }
 0x315   : > { %v1631_v47 = vpack.c.bf16 %v1627_v46, %v1627_v46  ;;  %2810 = vmatprep.subr.bf16.mxu0 %v3078_v1  ;;  %2031 = vst.msk [vmem:[%s3455_s21 + $0x18] sm:$0xff] %vm1390_vm2, %v1627_v46  ;;  %v2946_v46 = vld [vmem:[%s3670_s13 + $0x18] sm:$0xff]   ;;  %s2976_s21 = scalar_lea.vmem %s2975_s26, 1024 }
 0x316   : > { %p2978_p2 = scmp.lt.s32.totalorder %s2976_s21, %s2970_s22 }
 0x317   : > { %2795 = vmatmul.mubr.msk.bf16.vlgmr.msra.gmra.mxu1 %vm1390_vm2, %v1631_v47  ;;  %v2947_v47 = vld [vmem:[%s3670_s13 + $0x10] sm:$0xff]  }
 0x318   : > { %2806 = vmatprep.mubr.msk.bf16.mxu1 %vm3079_vm0, %v3078_v1  ;;  %2805 = vmatpush3.bf16.msra.mxu1 %v1884_v49  ;;  %p2979_p3 = por %p2978_p2, %p2977_p1 }
 0x319   : > { %2816 = vmatprep.subr.bf16.mxu1 %v3078_v1 }
 0x31a   : > { %p2980_p5 = pnand %p2979_p3, %p2973_p0 }
 0x3cb   : > { %v1677_v51 = vpop.f32.mrf.mxu0 }
 0x3cc   : > { %v1822_v52 = vpack.c.bf16 %v1677_v51, %v1677_v51 }
 0x3cd   : > { %v2778_v54 = vpop.f32.mrf.mxu0 }
 0x3ce   : > { %2801 = vmatmul.mubr.msk.bf16.vlgmr.msra.gmra.mxu0 %vm1390_vm2, %v1822_v52  ;;  %v2557_v52 = vld [vmem:[%s3666_s9] ss:$0 sm:$0xff] }
 0x3cf   : > { %v1680_v56 = vpop.f32.mrf.mxu0  ;;  %v1723_v57 = vpop.f32.mrf.mxu1  ;;  %2811 = vmatpush3.bf16.msra.mxu0 %v1934_v53  ;;  %2812 = vmatprep.mubr.msk.bf16.mxu0 %vm3079_vm0, %v3078_v1  ;;  %v2558_v54 = vld [vmem:[%s3667_s10] ss:$0 sm:$0xff] }
 0x3d0   : > { %v1877_v58 = vpack.c.bf16 %v1723_v57, %v1723_v57  ;;  %2822 = vmatprep.subr.bf16.mxu0 %v3078_v1 }
 0x3d1   : > { %v2779_v60 = vpop.f32.mrf.mxu0  ;;  %v2784_v61 = vpop.f32.mrf.mxu1 }
 0x3d2   : > { %2807 = vmatmul.mubr.msk.bf16.vlgmr.msra.gmra.mxu1 %vm1390_vm2, %v1877_v58  ;;  %v2948_v58 = vld [vmem:[%s3670_s13 + $0x8] sm:$0xff]   ;;  %v2559_v60 = vld [vmem:[%s3669_s12] ss:$0 sm:$0xff] }
 0x3d3   : > { %v1726_v62 = vpop.f32.mrf.mxu1  ;;  %v1769_v63 = vpop.f32.mrf.mxu0  ;;  %2817 = vmatpush3.bf16.msra.mxu1 %v1984_v59  ;;  %2818 = vmatprep.mubr.msk.bf16.mxu1 %vm3079_vm0, %v3078_v1  ;;  %v2949_v59 = vld [vmem:[%s3670_s13] sm:$0xff]  }
 0x3d4   : > { %v1927_v0 = vpack.c.bf16 %v1769_v63, %v1769_v63  ;;  %2830 = vmatprep.subr.bf16.mxu1 %v3078_v1 }
 0x3d5   : > { %v2785_v2 = vpop.f32.mrf.mxu1  ;;  %v2790_v3 = vpop.f32.mrf.mxu0 }
 0x3d6   : > { %2813 = vmatmul.mubr.msk.bf16.vlgmr.msra.gmra.mxu0 %vm1390_vm2, %v1927_v0 }
 0x3d7   : > { %v1772_v4 = vpop.f32.mrf.mxu0  ;;  %v1815_v5 = vpop.f32.mrf.mxu1  ;;  %2826 = vmatprep.mubr.msk.bf16.mxu0 %vm3079_vm0, %v3078_v1  ;;  %2823 = vmatpush3.bf16.msra.mxu0 %v2940_v41 }
 0x3d8   : > { %v1977_v7 = vpack.c.bf16 %v1815_v5, %v1815_v5  ;;  %2824 = vmatprep.subr.bf16.mxu0 %v3078_v1 }
 0x3d9   : > { %v2791_v8 = vpop.f32.mrf.mxu0  ;;  %v2796_v9 = vpop.f32.mrf.mxu1 }
 0x3da   : > { %2819 = vmatmul.mubr.msk.bf16.vlgmr.msra.gmra.mxu1 %vm1390_vm2, %v1977_v7 }
 0x3db   : > { %v1818_v10 = vpop.f32.mrf.mxu1  ;;  %2846 = vmatprep.mubr.msk.bf16.mxu1 %vm3079_vm0, %v3078_v1  ;;  %2831 = vmatpush3.bf16.msra.mxu1 %v2942_v42 }
 0x3dc   : > { %2832 = vmatprep.subr.bf16.mxu1 %v3078_v1 }
 0x3dd   : > { %v2797_v11 = vpop.f32.mrf.mxu1 }
 0x3df   : > { %2833 = vmatpush3.bf16.msra.mxu1 %v2943_v43 }
 0x3e0   : > { %2834 = vmatprep.subr.bf16.mxu1 %v3078_v1 }
 0x3e3   : > { %2835 = vmatpush3.bf16.msra.mxu1 %v2944_v44 }
 0x3e4   : > { %2836 = vmatprep.subr.bf16.mxu1 %v3078_v1 }
 0x3e7   : > { %2837 = vmatpush3.bf16.msra.mxu1 %v2945_v45 }
 0x3e8   : > { %2838 = vmatprep.subr.bf16.mxu1 %v3078_v1 }
 0x3eb   : > { %2839 = vmatpush3.bf16.msra.mxu1 %v2946_v46 }
 0x3ec   : > { %2840 = vmatprep.subr.bf16.mxu1 %v3078_v1 }
 0x3ef   : > { %2841 = vmatpush3.bf16.msra.mxu1 %v2947_v47 }
 0x3f0   : > { %2842 = vmatprep.subr.bf16.mxu1 %v3078_v1 }
 0x3f3   : > { %2843 = vmatpush3.bf16.msra.mxu1 %v2948_v58 }
 0x3f4   : > { %2844 = vmatprep.subr.bf16.mxu1 %v3078_v1  ;;  %v2563_v1 = vld [vmem:[%s3671_s14] ss:$0 sm:$0xff] }
 0x3f7   : > { %2845 = vmatpush3.bf16.msra.mxu1 %v2949_v59 }
 0x48e   : > { %v1864_v12 = vpop.f32.mrf.mxu0 }
 0x48f   : > { %v1876_v19 = vadd.f32 %v2550_v14, %v1864_v12 }
 0x490   : > { %v2802_v13 = vpop.f32.mrf.mxu0 }
 0x492   : > { %v1867_v15 = vpop.f32.mrf.mxu0  ;;  %v1920_v16 = vpop.f32.mrf.mxu1 }
 0x493   : > { %v1926_v23 = vadd.f32 %v1920_v16, %v1876_v19 }
 0x494   : > { %v2803_v17 = vpop.f32.mrf.mxu0  ;;  %v2808_v18 = vpop.f32.mrf.mxu1 }
 0x496   : > { %v1923_v20 = vpop.f32.mrf.mxu1  ;;  %v1970_v22 = vpop.f32.mrf.mxu0 }
 0x497   : > { %v1976_v26 = vadd.f32 %v1970_v22, %v1926_v23 }
 0x498   : > { %v2809_v24 = vpop.f32.mrf.mxu1  ;;  %v2814_v25 = vpop.f32.mrf.mxu0 }
 0x49a   : > { %v1973_v27 = vpop.f32.mrf.mxu0  ;;  %v2020_v29 = vpop.f32.mrf.mxu1 }
 0x49b   : > { %v2026_v30 = vadd.f32 %v2020_v29, %v1976_v26 }
 0x49c   : > { %v2815_v32 = vpop.f32.mrf.mxu0  ;;  %v2820_v33 = vpop.f32.mrf.mxu1 }
 0x49d   : > { %v2027_v34 = vadd.f32 %v2026_v30, %v3270_v6  ;;  %v2941_v6 = vld [vmem:[%s3668_s11] sm:$0xff]  }
 0x49e   : > { %v2023_v35 = vpop.f32.mrf.mxu1  ;;  %2825 = vmatpush3.bf16.msra.mxu0 %v2941_v6 }
 0x49f   : > { %v2034_v36 = vsel %vm706_vm1, %v2027_v34, 0.0 }
 0x4a0   : > { %v2821_v37 = vpop.f32.mrf.mxu1  ;;  %2035 = vadd.xlane.f32.xlu1 %v2034_v36 }
 0x529   : > { %v2036_v31 = vpop.xlane.xlu1 %2035 }
 0x52a   : > { %v2038_v38 = vmul.f32 0.03125, %v2036_v31 }
 0x52c   : > { %v2039_v39 = vsub.f32 %v2027_v34, %v2038_v38 }
 0x52e   : > { %v2040_v21 = vmul.f32 %v2039_v39, %v2039_v39 }
 0x530   : > { %v2041_v40 = vsel %vm706_vm1, %v2040_v21, 0.0 }
 0x531   : > { %2042 = vadd.xlane.f32.xlu1 %v2041_v40 }
 0x5ba   : > { %v2043_v48 = vpop.xlane.xlu1 %2042 }
 0x5bb   : > { %v2044_v49 = vmul.f32 0.03125, %v2043_v48 }
 0x5bd   : > { %v2045_v50 = vadd.f32 1e-05, %v2044_v49 }
 0x5bf   : > { %2966 = vrsqrt.f32 %v2045_v50 }
 0x5cc   : > { %v2967_v51 = vpop.eup %2966 }
 0x5cd   : > { %v2047_v53 = vmul.f32 %v2967_v51, %v2039_v39 }
 0x5cf   : > { %v2054_v55 = vmul.f32 %v2557_v52, %v2047_v53 }
 0x5d1   : > { %v2061_v56 = vadd.f32 %v2558_v54, %v2054_v55 }
 0x5d3   : > { %v2062_v57 = vpack.c.bf16 %v2061_v56, %v2061_v56 }
 0x5d5   : > { %2827 = vmatmul.mubr.msk.bf16.vlgmr.msra.gmra.mxu0 %vm706_vm1, %v2062_v57 }
 0x695   : > { %v2123_v61 = vpop.f32.mrf.mxu0 }
 0x696   : > { %v2124_v62 = vadd.f32 %v2559_v60, %v2123_v61 }
 0x697   : > { %v2828_v63 = vpop.f32.mrf.mxu0 }
 0x698   : > { %v2129_v0 = vmax.f32 %v2124_v62, 0.0 }
 0x699   : > { %v2126_v2 = vpop.f32.mrf.mxu0 }
 0x69a   : > { %v2130_v3 = vpack.c.bf16 %v2129_v0, %v2129_v0 }
 0x69b   : > { %v2829_v4 = vpop.f32.mrf.mxu0 }
 0x69c   : > { %2847 = vmatmul.mubr.bf16.vlgmr.msra.gmra.mxu1 %v2130_v3 }
 0x75c   : > { %v2236_v5 = vpop.f32.mrf.mxu1 }
 0x75d   : > { %v2237_v7 = vadd.f32 %v2563_v1, %v2236_v5 }
 0x75e   : > { %v2848_v8 = vpop.f32.mrf.mxu1 }
 0x75f   : > { %v2242_v9 = vmul.f32 %v2237_v7, %v3450_v28 }
 0x760   : > { %v2239_v10 = vpop.f32.mrf.mxu1 }
 0x761   : > { %v2243_v11 = vadd.f32 %v2242_v9, %v2061_v56 }
 0x762   : > { %v2849_v12 = vpop.f32.mrf.mxu1 }
 0x763   : > { %v2246_v13 = vsel %vm706_vm1, %v2243_v11, 0.0 }
 0x764   : > { %2247 = vadd.xlane.f32.xlu1 %v2246_v13 }
 0x7ed   : > { %v2248_v14 = vpop.xlane.xlu1 %2247 }
 0x7ee   : > { %v2249_v15 = vmul.f32 0.03125, %v2248_v14 }
 0x7f0   : > { %v2250_v16 = vsub.f32 %v2243_v11, %v2249_v15 }
 0x7f2   : > { %v2251_v17 = vmul.f32 %v2250_v16, %v2250_v16 }
 0x7f4   : > { %v2252_v18 = vsel %vm706_vm1, %v2251_v17, 0.0 }
 0x7f5   : > { %2253 = vadd.xlane.f32.xlu1 %v2252_v18 }
 0x7f6   : > { %2983 = shalt.err (!%p2980_p5)
}
 0x7f7   : > { %s2984_s17 = scalar_lea.hbm %s3585_s1, 512  ;;  %s2988_s20 = scalar_lea.hbm %s3675_s18, 1024 }
 0x7f8   : > { %p2985_p6 = scmp.ne.s32.totalorder %s3585_s1, %s2984_s17  ;;  %p2989_p10 = scmp.lt.s32.totalorder %s3585_s1, %s3675_s18 }
 0x7f9   : > { %p2990_p11 = scmp.lt.s32.totalorder %s2988_s20, %s2984_s17 }
 0x7fa   : > { %p2986_p7 = pnand %p2985_p6, %p3220_p4 }
 0x7fb   : > { %p2991_p12 = por %p2990_p11, %p2989_p10 }
 0x7fc   : > { %p2987_p9 = pneg %p2986_p7 }
 0x7fe   : > { %p2992_p13 = pnand %p2991_p12, %p2987_p9 }
 0x800   : > { %2995 = shalt.err (!%p2992_p13)
}
 0x801   : > { %s3082_s22 = smov 128   ;;  %s3083_s26 = smov 8   ;;  %v2572_v23 = vld [vmem:[%s3672_s15] ss:$0 sm:$0xff] }
 0x802   : > { %2851 = dma.vmem_to_hbm [thread:$0]  (%p3220_p4), %s3580_s29, 512, %s3585_s1, %s2280_s0, %s3082_s22, %s3082_s22, %s3083_s26  }
 0x803   : > { %s2463_s21 = sshll.u32 %s3447_s23, 3  ;;  %v2573_v25 = vld [vmem:[%s3673_s16] ss:$0 sm:$0xff]  ;;  %s2576_s24 = sshll.u32 %s3068_s30, 7 }
 0x804   : > { %s649_s25 = scalar_lea.vmem [#allocation2], %s2463_s21  ;;  %s3702_s22 = sld [smem:[#allocation19_spill]] }
 0x805   : > { %s2294_s29 = sshll.u32 %s649_s25, 4  ;;  %s2275_s3 = scalar_lea.sflag [#allocation3], %s3447_s23  ;;  %s2295_s29 = int_to_ptr.vmem [resolvable:$true] %s2294_s29 }
 0x806   : > { %s2996_s17 = scalar_lea.vmem %s2295_s29, 128  ;;  %s3084_s27 = smov [#allocation2]  }
 0x807   : > { %p2997_p0 = scmp.ne.s32.totalorder %s2295_s29, %s2996_s17  ;;  %s3000_s19 = sshll.u32 %s3084_s27, 4  ;;  %s3001_s19 = int_to_ptr.vmem [resolvable:$false] %s3000_s19 }
 0x808   : > { %s3002_s30 = scalar_lea.vmem %s3001_s19, 256  ;;  %p3003_p3 = scmp.lt.s32.totalorder %s2295_s29, %s3001_s19 }
 0x809   : > { %p2998_p1 = pnand %p2997_p0, %p3220_p4  ;;  %p3004_p5 = scmp.lt.s32.totalorder %s3002_s30, %s2996_s17 }
 0x80a   : > { %s2292_s26 = scalar_lea.hbm %s3702_s22, %s2576_s24 }
 0x80b   : > { %p2999_p2 = pneg %p2998_p1  ;;  %p3005_p6 = por %p3004_p5, %p3003_p3 }
 0x80d   : > { %p3006_p7 = pnand %p3005_p6, %p2999_p2 }
 0x87e   : > { %v2254_v28 = vpop.xlane.xlu1 %2253 }
 0x87f   : > { %v2255_v19 = vmul.f32 0.03125, %v2254_v28 }
 0x881   : > { %v2256_v20 = vadd.f32 1e-05, %v2255_v19 }
 0x883   : > { %2968 = vrsqrt.f32 %v2256_v20 }
 0x890   : > { %v2969_v22 = vpop.eup %2968 }
 0x891   : > { %v2258_v24 = vmul.f32 %v2969_v22, %v2250_v16 }
 0x893   : > { %v2265_v26 = vmul.f32 %v2572_v23, %v2258_v24 }
 0x895   : > { %v2272_v27 = vadd.f32 %v2573_v25, %v2265_v26 }
 0x897   : > { %2273 = vst.msk [vmem:[%s649_s25] sm:$0xff] %vm706_vm1, %v2272_v27 }
 0x898   : > { %3009 = shalt.err (!%p3006_p7)
}
 0x899   : > { %s3010_s21 = scalar_lea.hbm %s2292_s26, 128  ;;  %s3014_s24 = scalar_lea.hbm %s3702_s22, 256 }
 0x89a   : > { %p3011_p9 = scmp.ne.s32.totalorder %s2292_s26, %s3010_s21  ;;  %p3015_p12 = scmp.lt.s32.totalorder %s2292_s26, %s3702_s22 }
 0x89b   : > { %p3016_p13 = scmp.lt.s32.totalorder %s3014_s24, %s3010_s21 }
 0x89c   : > { %p3012_p10 = pnand %p3011_p9, %p3220_p4 }
 0x89d   : > { %p3017_p0 = por %p3016_p13, %p3015_p12 }
 0x89e   : > { %p3013_p11 = pneg %p3012_p10 }
 0x8a0   : > { %p3018_p1 = pnand %p3017_p0, %p3013_p11 }
 0x8a2   : > { %3021 = shalt.err (!%p3018_p1)
}
 0x8a3   : > { %2850 = dma.vmem_to_hbm [thread:$0]  (%p3220_p4), %s2295_s29, 128, %s2292_s26, %s2275_s3  }
 0x8a4 PF: > { %s3703_s0 = sld [smem:[#allocation11_spill]] }
 0x8a5   : > { %s3704_s17 = sld [smem:[#allocation8_spill]] }
 0x8aa   : > { %p2861_p2 = scmp.ge.s32.totalorder %s3703_s0, 2 }
 0x8ab   : > { %s2323_s19 = sand.u32 1, %s3704_s17  }
 0x8ac   : > { %p2855_p3 = pnand %p2861_p2, %p3227_p8  ;;  %s2324_s30 = scalar_lea.sflag [#allocation3], %s2323_s19 }
 0x8ae   : > { %p2856_p5 = pneg %p2855_p3 }
 0x8b0   : > { %3047 = dma.done.wait (%p2856_p5), %s2324_s30, 128  }
 0x8b1   : > { %3049 = vsyncadd (%p2856_p5), %s2324_s30, 4294967168  ;;  %s2333_s23 = scalar_lea.sflag [#allocation5], %s2323_s19 }
 0x8b2   : > { %3051 = dma.done.wait (%p2856_p5), %s2333_s23, 512  }
 0x8b3   : > { %3053 = vsyncadd (%p2856_p5), %s2333_s23, 4294966784  ;;  %s35_s19 = sadd.s32 1, %s3703_s0   ;;  %s3706_s3 = sld [smem:[#allocation9_spill]] }
 0x8b4   : > { %p32_p6 = scmp.ge.s32.totalorder %s35_s19, 4   ;;  %s3707_s29 = sld [smem:[#allocation14_spill]] }
 0x8b5   : > { %s3708_s30 = sld [smem:[#allocation10_spill]]  ;;  %s3710_s27 = smov %s3060_s28 }
 0x8b6   : > { %s3709_s0 = sld [smem:[#allocation12_spill]]  ;;  %34 = sbr.rel (!%p32_p6) target bundleno = 12 (0xc), region = 161 }
 0x8b9   : > { %s3711_s28 = smov %s3706_s3 }
 0x8bb   :  { %2338 = vsyncpa [#allocation3], 1 }
 0x8bc   :  { %2340 = vsyncpa [#allocation3 + $0x1], 1 }
 0x8bd   :  { %2341 = vsyncpa [#allocation5], 1 }
 0x8be   :  { %2343 = vsyncpa [#allocation5 + $0x1], 1 }

// kernel: phone_autoregressive_decoder_layer.8
= control target key start
LH: loop header
LB: loop body
LE: loop exit
PB: predicated region body
PF: predicated region fallthrough
CT: control target
= control target key end

     0   :  { %s3790_s0 = inlined_call_operand.vmem [shape: f32[2,8,32], index: 0, kind: input, shape index: {}, may-alias: {0,1}]   ;;  %s3791_s1 = inlined_call_operand.vmem [shape: f32[2,8,32], index: 1, kind: input, shape index: {}, may-alias: {0,1}]   ;;  %s3792_s2 = inlined_call_operand.vmem [shape: bf16[2,8,8], index: 2, kind: input, shape index: {}]   ;;  %s3793_s3 = inlined_call_operand.vmem [shape: f32[2,8,1], index: 3, kind: input, shape index: {}]   ;;  %s3794_s4 = inlined_call_operand.vmem [shape: f32[2,8,32], index: 4, kind: input, shape index: {}]   ;;  %s3795_s5 = inlined_call_operand.vmem [shape: bf16[4,32,8], index: 5, kind: input, shape index: {}]   ;;  %s3796_s6 = inlined_call_operand.vmem [shape: bf16[4,32,8], index: 6, kind: input, shape index: {}]   ;;  %s3797_s7 = inlined_call_operand.vmem [shape: bf16[4,32,8], index: 7, kind: input, shape index: {}]   ;;  %s3798_s8 = inlined_call_operand.vmem [shape: bf16[4,8,32], index: 8, kind: input, shape index: {}]   ;;  %s3799_s9 = inlined_call_operand.vmem [shape: f32[1,32], index: 9, kind: input, shape index: {}]   ;;  %s3800_s10 = inlined_call_operand.vmem [shape: f32[1,32], index: 10, kind: input, shape index: {}]   ;;  %s3801_s11 = inlined_call_operand.vmem [shape: f32[1,32], index: 11, kind: input, shape index: {}]   ;;  %s3802_s12 = inlined_call_operand.vmem [shape: f32[1,32], index: 12, kind: input, shape index: {}]   ;;  %s3803_s13 = inlined_call_operand.vmem [shape: f32[1,32], index: 13, kind: input, shape index: {}]   ;;  %s3804_s14 = inlined_call_operand.vmem [shape: bf16[32,128], index: 14, kind: input, shape index: {}]   ;;  %s3805_s15 = inlined_call_operand.vmem [shape: f32[1,128], index: 15, kind: input, shape index: {}]   ;;  %s3806_s16 = inlined_call_operand.vmem [shape: bf16[128,32], index: 16, kind: input, shape index: {}]   ;;  %s3807_s17 = inlined_call_operand.vmem [shape: f32[1,32], index: 17, kind: input, shape index: {}]   ;;  %s3808_s18 = inlined_call_operand.vmem [shape: f32[1,32], index: 18, kind: input, shape index: {}]   ;;  %s3809_s19 = inlined_call_operand.vmem [shape: f32[1,32], index: 19, kind: input, shape index: {}]   ;;  %s3810_s20 = inlined_call_operand.vmem [shape: f32[2,8,32], index: 20, kind: output, shape index: {0}]   ;;  %s3811_s21 = inlined_call_operand.hbm [shape: f32[2,4,8,8], index: 21, kind: output, shape index: {1}]  }
   0x1   :  { %3820 = sst [smem:[#allocation12_spill]] %s3790_s0 }
   0x2   :  { %3821 = sst [smem:[#allocation13_spill]] %s3791_s1 }
   0x3   :  { %3822 = sst [smem:[#allocation14_spill]] %s3792_s2 }
   0x4   :  { %3823 = sst [smem:[#allocation15_spill]] %s3793_s3 }
   0x5   :  { %3824 = sst [smem:[#allocation16_spill]] %s3794_s4 }
   0x6   :  { %3825 = sst [smem:[#allocation17_spill]] %s3795_s5 }
   0x7   :  { %3826 = sst [smem:[#allocation18_spill]] %s3809_s19 }
   0x8   :  { %3827 = sst [smem:[#allocation19_spill]] %s3810_s20 }
   0x9   :  { %27 = vsyncpa [#allocation3], 0 }
   0xa   :  { %29 = vsyncpa [#allocation3 + $0x1], 0  ;;  %s3313_s2 = smov 0   ;;  %s3315_s25 = smov 0  }
   0xb   :  { %s3317_s26 = smov 0   ;;  %s3319_s27 = smov 0  }
   0xc   :  { %s3321_s3 = smov 0   ;;  %s3323_s28 = smov 0  }
   0xd LB: > { %3828 = sst [smem:[#allocation5_spill]] %s3175_s2  ;;  %s2609_s29 = sadd.s32 4294967295, %s3195_s28   ;;  %s3195_s28 = sphi %s3323_s28, %s35_s28   ;;  %s3191_s3 = sphi %s3321_s3, %s3852_s3   ;;  %s3187_s27 = sphi %s3319_s27, %s3851_s27   ;;  %s3183_s26 = sphi %s3317_s26, %s3850_s26   ;;  %s3179_s25 = sphi %s3315_s25, %s3854_s25   ;;  %s3175_s2 = sphi %s3313_s2, %s3853_s2  }
   0xe   : > { %3829 = sst [smem:[#allocation6_spill]] %s3183_s26  ;;  %s2610_s0 = sadd.s32 4294967294, %s3195_s28  }
   0xf   : > { %3830 = sst [smem:[#allocation7_spill]] %s3191_s3  ;;  %s47_s4 = sadd.s32 1, %s3191_s3 }
  0x10   : > { %3831 = sst [smem:[#allocation8_spill]] %s3195_s28  ;;  %s537_s30 = sadd.s32 1, %s3183_s26 }
  0x11   : > { %p49_p0 = scmp.ge.s32.totalorder %s47_s4, 2  ;;  %p547_p1 = scmp.ne.s32.totalorder %s3183_s26, %s3179_s25 }
  0x12   : > { %p548_p2 = scmp.eq.s32.totalorder %s2609_s29, 1  ;;  %p553_p3 = scmp.ne.s32.totalorder %s3179_s25, %s3175_s2 }
  0x13   : > { %s3856_s4 = smov (%p49_p0, %s47_s4), 0  ;;  %p554_p5 = scmp.eq.s32.totalorder %s2610_s0, 1 }
  0x14   : > { %3832 = sst [smem:[#allocation9_spill]] %s3856_s4  ;;  %p3353_p4 = por %p548_p2, %p547_p1 }
  0x15   : > { %s532_s22 = ssub.s32 %s3191_s3, %s3856_s4  ;;  %p2613_p6 = scmp.ge.s32.totalorder %s3195_s28, 1 }
  0x16   : > { %p535_p7 = scmp.eq.s32.totalorder %s532_s22, 0  ;;  %p3360_p8 = por %p554_p5, %p553_p3 }
  0x17   : > { %p664_p9 = scmp.lt.s32.totalorder %s3195_s28, 3 }
  0x18   : > { %s3834_s23 = scalar_select %p3360_p8, 1, 0 }
  0x19   : > { %s3366_s1 = scalar_select %p535_p7, %s3183_s26, %s537_s30  }
  0x1a   : > { %3835 = sst [smem:[#allocation10_spill]] %s3834_s23  ;;  %p665_p10 = pnand %p2613_p6, %p664_p9 }
  0x1b   : > { %3836 = sst [smem:[#allocation11_spill]] %s3366_s1  ;;  %p758_p11 = scmp.lt.s32.totalorder (!%p665_p10), %s3187_s27, 1 }
  0x1c   : > { %668 = sbr.rel (%p665_p10) target bundleno = 2511 (0x9cf), region = 100  ;;  %s3837_s2 = sld [smem:[#allocation17_spill]] (!%p665_p10) }
  0x1d   : > { %s3839_s30 = sld [smem:[#allocation12_spill]] (!%p665_p10)  ;;  %s755_s22 = sand.u32 (!%p665_p10), 1, %s3179_s25  }
  0x1e   : > { %s3840_s19 = sld [smem:[#allocation13_spill]] (!%p665_p10)  ;;  %s2733_s1 = sshll.u32 (!%p665_p10), %s3187_s27, 9 }
  0x1f   : > { %s3841_s28 = sld [smem:[#allocation14_spill]] (!%p665_p10) }
  0x20   : > { %s3842_s24 = sld [smem:[#allocation15_spill]] (!%p665_p10) }
  0x21   : > { %v3197_v1 = vmov 0.0   ;;  %vm3198_vm0 = vmmov 0   ;;  %s3390_s29 = scalar_select %p758_p11, %s3187_s27, 1  ;;  %vm821_vm1 = vcmask 261120   ;;  %v3068_v7 = vld [vmem:[%s3796_s6 + $0x18] sm:$0xff]   ;;  %v3070_v10 = vld [vmem:[%s3796_s6 + $0x10] sm:$0xff]  }
  0x22   : > { %s3838_s20 = smov %s3837_s2  ;;  %v3063_v0 = vld [vmem:[%s3837_s2 + $0x8] sm:$0xff]   ;;  %2806 = vmatprep.subr.bf16.mxu0 %v3197_v1  ;;  %2830 = vmatprep.subr.bf16.mxu1 %v3197_v1  ;;  %v3072_v14 = vld [vmem:[%s3796_s6 + $0x38] sm:$0xff]   ;;  %v3074_v16 = vld [vmem:[%s3796_s6 + $0x30] sm:$0xff]   ;;  %vm1505_vm2 = vcmask 64512   ;;  %vm1754_vm3 = vcmask 1043456   ;;  %s3843_s26 = sld [smem:[#allocation16_spill]] }
  0x23   : > { %v3064_v2 = vld [vmem:[%s3838_s20 + $0x38] sm:$0xff]   ;;  %2807 = vmatpush3.bf16.msra.mxu0 %v3063_v0  ;;  %v3065_v3 = vld [vmem:[%s3838_s20] sm:$0xff]   ;;  %2810 = vmatprep.mubr.msk.bf16.mxu0 %vm3198_vm0, %v3197_v1  ;;  %v3066_v4 = vld [vmem:[%s3838_s20 + $0x30] sm:$0xff]   ;;  %s3393_s4 = sshll.u32 %s3390_s29, 3  ;;  %s2617_s2 = sshll.u32 %s3390_s29, 2 }
  0x24   : > { %2831 = vmatpush3.bf16.msra.mxu1 %v3064_v2  ;;  %2808 = vmatprep.subr.bf16.mxu0 %v3197_v1  ;;  %s764_s3 = scalar_lea.vmem %s3839_s30, %s3393_s4  ;;  %v3067_v5 = vld [vmem:[%s3838_s20 + $0x18] sm:$0xff]   ;;  %s768_s0 = scalar_lea.vmem %s3840_s19, %s3393_s4  ;;  %v3069_v9 = vld [vmem:[%s3838_s20 + $0x10] sm:$0xff]   ;;  %v3071_v13 = vld [vmem:[%s3838_s20 + $0x28] sm:$0xff]  }
  0x25   : > { %2832 = vmatprep.subr.bf16.mxu1 %v3197_v1  ;;  %2834 = vmatprep.mubr.msk.bf16.mxu1 %vm3198_vm0, %v3197_v1  ;;  %v3403_v6 = vld [vmem:[%s764_s3] sm:$0xff]  ;;  %v3075_v17 = vld [vmem:[%s3796_s6 + $0x8] sm:$0xff]   ;;  %v3079_v18 = vld [vmem:[%s3797_s7 + $0x18] sm:$0xff]   ;;  %s775_s23 = scalar_lea.vmem %s3841_s28, %s2617_s2  ;;  %s2614_s30 = sshll.u32 %s755_s22, 5 }
  0x26   : > { %v803_v8 = vpack.c.bf16 %v3403_v6, %v3403_v6  ;;  %v799_v11 = vld [vmem:[%s768_s0] sm:$0xff]  ;;  %v3077_v20 = vld [vmem:[%s3796_s6 + $0x28] sm:$0xff]   ;;  %v3080_v22 = vld [vmem:[%s3797_s7 + $0x10] sm:$0xff]   ;;  %s782_s0 = scalar_lea.vmem %s3842_s24, %s3393_s4  ;;  %s3587_s3 = scalar_lea.vmem [#allocation2], %s2614_s30 }
  0x27   : > { %2809 = vmatpush3.bf16.msra.mxu0 %v3065_v3  ;;  %v3429_v12 = vpack.c.bf16 %v799_v11, %v799_v11  ;;  %v3073_v15 = vld [vmem:[%s3838_s20 + $0x20] sm:$0xff]   ;;  %v3081_v23 = vld [vmem:[%s3797_s7 + $0x38] sm:$0xff]   ;;  %v3082_v24 = vld [vmem:[%s3797_s7 + $0x8] sm:$0xff]   ;;  %s2446_s24 = sshll.u32 %s3587_s3, 4  ;;  %s3728_s2 = scalar_lea.hbm %s3811_s21, %s2733_s1  ;;  %s3730_s24 = int_to_ptr.vmem [resolvable:$true] %s2446_s24 }
  0x28   : > { %2833 = vmatpush3.bf16.msra.mxu1 %v3066_v4  ;;  %2814 = vmatprep.subr.bf16.mxu0 %v3197_v1  ;;  %v3076_v19 = vld [vmem:[%s3796_s6] sm:$0xff]   ;;  %v3083_v25 = vld [vmem:[%s3797_s7 + $0x30] sm:$0xff]   ;;  %v3085_v27 = vld [vmem:[%s3797_s7 + $0x28] sm:$0xff]   ;;  %s789_s28 = scalar_lea.vmem %s3843_s26, %s3393_s4  ;;  %s3734_s19 = scalar_lea.sflag [#allocation3], %s755_s22 }
  0x29   : > { %2846 = vmatprep.subr.bf16.mxu1 %v3197_v1  ;;  %v3078_v21 = vld [vmem:[%s3796_s6 + $0x20] sm:$0xff]   ;;  %s3119_s26 = scalar_lea.vmem %s3730_s24, 512  ;;  %s3200_s27 = smov [#allocation2]  }
  0x2a   : > { %2811 = vmatmul.mubr.msk.bf16.vlgmr.msra.gmra.mxu0 %vm821_vm1, %v803_v8  ;;  %v3084_v26 = vld [vmem:[%s3797_s7] sm:$0xff]   ;;  %p3120_p12 = scmp.ne.s32.totalorder %s3730_s24, %s3119_s26 }
  0x2b   : > { %2835 = vmatmul.mubr.msk.bf16.vlgmr.msra.gmra.mxu1 %vm821_vm1, %v803_v8  ;;  %2815 = vmatpush3.bf16.msra.mxu0 %v3067_v5  ;;  %v3086_v28 = vld [vmem:[%s3797_s7 + $0x20] sm:$0xff]  }
  0x2c   : > { %2847 = vmatpush3.bf16.msra.mxu1 %v3068_v7  ;;  %2816 = vmatprep.subr.bf16.mxu0 %v3197_v1  ;;  %p3121_p13 = pnand %p3120_p12, %p3353_p4 }
  0x2d   : > { %2848 = vmatprep.subr.bf16.mxu1 %v3197_v1  ;;  %2818 = vmatprep.mubr.msk.bf16.mxu0 %vm3198_vm0, %v3197_v1 }
  0x2e   : > { %2850 = vmatprep.mubr.msk.bf16.mxu1 %vm3198_vm0, %v3197_v1  ;;  %p3122_p0 = pneg %p3121_p13 }
  0x2f   : > { %2817 = vmatpush3.bf16.msra.mxu0 %v3069_v9 }
  0x30   : > { %2849 = vmatpush3.bf16.msra.mxu1 %v3070_v10  ;;  %2822 = vmatprep.subr.bf16.mxu0 %v3197_v1 }
  0x31   : > { %2862 = vmatprep.subr.bf16.mxu1 %v3197_v1 }
  0x32   : > { %2819 = vmatmul.mubr.msk.bf16.vlgmr.msra.gmra.mxu0 %vm821_vm1, %v803_v8 }
  0x33   : > { %2851 = vmatmul.mubr.msk.bf16.vlgmr.msra.gmra.mxu1 %vm821_vm1, %v3429_v12  ;;  %2823 = vmatpush3.bf16.msra.mxu0 %v3071_v13 }
  0x34   : > { %2863 = vmatpush3.bf16.msra.mxu1 %v3072_v14  ;;  %2824 = vmatprep.subr.bf16.mxu0 %v3197_v1 }
  0x35   : > { %2864 = vmatprep.subr.bf16.mxu1 %v3197_v1  ;;  %2826 = vmatprep.mubr.msk.bf16.mxu0 %vm3198_vm0, %v3197_v1 }
  0x36   : > { %2866 = vmatprep.mubr.msk.bf16.mxu1 %vm3198_vm0, %v3197_v1 }
  0x37   : > { %2825 = vmatpush3.bf16.msra.mxu0 %v3073_v15 }
  0x38   : > { %2865 = vmatpush3.bf16.msra.mxu1 %v3074_v16  ;;  %2838 = vmatprep.subr.bf16.mxu0 %v3197_v1 }
  0x39   : > { %2878 = vmatprep.subr.bf16.mxu1 %v3197_v1 }
  0x3a   : > { %2827 = vmatmul.mubr.msk.bf16.vlgmr.msra.gmra.mxu0 %vm821_vm1, %v803_v8 }
  0x3b   : > { %2867 = vmatmul.mubr.msk.bf16.vlgmr.msra.gmra.mxu1 %vm821_vm1, %v3429_v12  ;;  %2839 = vmatpush3.bf16.msra.mxu0 %v3075_v17 }
  0x3c   : > { %2842 = vmatprep.mubr.msk.bf16.mxu0 %vm3198_vm0, %v3197_v1  ;;  %2840 = vmatprep.subr.bf16.mxu0 %v3197_v1 }
  0x3d   : > { %2879 = vmatpush3.bf16.msra.mxu1 %v3079_v18  ;;  %2882 = vmatprep.mubr.msk.bf16.mxu1 %vm3198_vm0, %v3197_v1 }
  0x3e   : > { %2880 = vmatprep.subr.bf16.mxu1 %v3197_v1 }
  0x3f   : > { %2841 = vmatpush3.bf16.msra.mxu0 %v3076_v19 }
  0x40   : > { %2854 = vmatprep.subr.bf16.mxu0 %v3197_v1 }
  0x41   : > { %2881 = vmatpush3.bf16.msra.mxu1 %v3080_v22 }
  0x42   : > { %2843 = vmatmul.mubr.msk.bf16.vlgmr.msra.gmra.mxu0 %vm821_vm1, %v3429_v12  ;;  %2894 = vmatprep.subr.bf16.mxu1 %v3197_v1 }
  0x43   : > { %2855 = vmatpush3.bf16.msra.mxu0 %v3077_v20  ;;  %2858 = vmatprep.mubr.msk.bf16.mxu0 %vm3198_vm0, %v3197_v1 }
  0x44   : > { %2856 = vmatprep.subr.bf16.mxu0 %v3197_v1  ;;  %2883 = vmatmul.mubr.msk.bf16.vlgmr.msra.gmra.mxu1 %vm821_vm1, %v3429_v12 }
  0x45   : > { %2895 = vmatpush3.bf16.msra.mxu1 %v3081_v23  ;;  %2898 = vmatprep.mubr.msk.bf16.mxu1 %vm3198_vm0, %v3197_v1 }
  0x46   : > { %2896 = vmatprep.subr.bf16.mxu1 %v3197_v1 }
  0x47   : > { %2857 = vmatpush3.bf16.msra.mxu0 %v3078_v21 }
  0x48   : > { %2870 = vmatprep.subr.bf16.mxu0 %v3197_v1 }
  0x49   : > { %2897 = vmatpush3.bf16.msra.mxu1 %v3083_v25 }
  0x4a   : > { %2859 = vmatmul.mubr.msk.bf16.vlgmr.msra.gmra.mxu0 %vm821_vm1, %v3429_v12  ;;  %2908 = vmatprep.subr.bf16.mxu1 %v3197_v1 }
  0x4b   : > { %2874 = vmatprep.mubr.msk.bf16.mxu0 %vm3198_vm0, %v3197_v1  ;;  %2871 = vmatpush3.bf16.msra.mxu0 %v3082_v24 }
  0x4c   : > { %2872 = vmatprep.subr.bf16.mxu0 %v3197_v1  ;;  %2899 = vmatmul.mubr.msk.bf16.vlgmr.msra.gmra.mxu1 %vm821_vm1, %v3429_v12 }
  0x4d   : > { %2910 = vmatprep.mubr.msk.bf16.mxu1 %vm3198_vm0, %v3197_v1 }
  0x4f   : > { %2873 = vmatpush3.bf16.msra.mxu0 %v3084_v26 }
  0x50   : > { %2886 = vmatprep.subr.bf16.mxu0 %v3197_v1 }
  0x52   : > { %2875 = vmatmul.mubr.msk.bf16.vlgmr.msra.gmra.mxu0 %vm821_vm1, %v3429_v12 }
  0x53   : > { %2887 = vmatpush3.bf16.msra.mxu0 %v3085_v27  ;;  %2890 = vmatprep.mubr.msk.bf16.mxu0 %vm3198_vm0, %v3197_v1 }
  0x54   : > { %2888 = vmatprep.subr.bf16.mxu0 %v3197_v1 }
  0x57   : > { %2889 = vmatpush3.bf16.msra.mxu0 %v3086_v28 }
  0x58   : > { %2902 = vmatprep.subr.bf16.mxu0 %v3197_v1 }
  0x5a   : > { %2891 = vmatmul.mubr.msk.bf16.vlgmr.msra.gmra.mxu0 %vm821_vm1, %v3429_v12 }
  0x5b   : > { %2904 = vmatprep.mubr.msk.bf16.mxu0 %vm3198_vm0, %v3197_v1 }
  0xea   : > { %v859_v29 = vpop.f32.mrf.mxu0 }
  0xeb   : > { %v1030_v30 = vpop.f32.mrf.mxu1  ;;  %v1493_v3 = vmul.f32 0.35355338, %v859_v29 }
  0xec   : > { %v2812_v31 = vpop.f32.mrf.mxu0  ;;  %v1496_v57 = vmul.f32 0.35355338, %v1030_v30 }
  0xed   : > { %v2836_v32 = vpop.f32.mrf.mxu1  ;;  %v1497_v7 = vpack.c.bf16 %v1493_v3, %v1493_v3 }
  0xee   : > { %v862_v33 = vpop.f32.mrf.mxu0  ;;  %v1500_v61 = vpack.c.bf16 %v1496_v57, %v1496_v57 }
  0xef   : > { %v1033_v34 = vpop.f32.mrf.mxu1 }
  0xf0   : > { %v2813_v35 = vpop.f32.mrf.mxu0 }
  0xf1   : > { %v2837_v36 = vpop.f32.mrf.mxu1 }
  0xf2   : > { %v916_v37 = vpop.f32.mrf.mxu0 }
  0xf3   : > { %v1146_v38 = vpop.f32.mrf.mxu1  ;;  %v1494_v45 = vmul.f32 0.35355338, %v916_v37 }
  0xf4   : > { %v1502_v39 = vpack.c.bf16 %v1146_v38, %v1146_v38  ;;  %v2820_v40 = vpop.f32.mrf.mxu0 }
  0xf5   : > { %v2852_v41 = vpop.f32.mrf.mxu1  ;;  %v1498_v50 = vpack.c.bf16 %v1494_v45, %v1494_v45 }
  0xf6   : > { %v1556_v42 = vsel %vm1505_vm2, %v1502_v39, 0  ;;  %v919_v43 = vpop.f32.mrf.mxu0  ;;  %v800_v41 = vld [vmem:[%s775_s23] sm:$0xf] }
  0xf7   : > { %v1149_v44 = vpop.f32.mrf.mxu1  ;;  %2909 = vmatpush3.bf16.xpose.msra.mxu1 %v1556_v42 }
  0xf8   : > { %2920 = vmatprep.subr.bf16.mxu1 %v3197_v1  ;;  %v2821_v46 = vpop.f32.mrf.mxu0  ;;  %v801_v44 = vunpack.c.l.bf16 %v800_v41 }
  0xf9   : > { %v2853_v47 = vpop.f32.mrf.mxu1 }
  0xfa   : > { %v973_v48 = vpop.f32.mrf.mxu0 }
  0xfb   : > { %v1260_v49 = vpop.f32.mrf.mxu1  ;;  %v1495_v12 = vmul.f32 0.35355338, %v973_v48 }
  0xfc   : > { %v1504_v51 = vpack.c.bf16 %v1260_v49, %v1260_v49  ;;  %v2828_v52 = vpop.f32.mrf.mxu0 }
  0xfd   : > { %v2868_v53 = vpop.f32.mrf.mxu1  ;;  %v1499_v14 = vpack.c.bf16 %v1495_v12, %v1495_v12 }
  0xfe   : > { %v1648_v54 = vsel %vm1505_vm2, %v1504_v51, 0  ;;  %2911 = vmatmul.mubr.msk.bf16.vlgmr.msra.gmra.mxu1 %vm1505_vm2, %v1498_v50  ;;  %v976_v55 = vpop.f32.mrf.mxu0 }
  0xff   : > { %2921 = vmatpush3.bf16.xpose.msra.mxu1 %v1648_v54  ;;  %2922 = vmatprep.mubr.msk.bf16.mxu1 %vm3198_vm0, %v3197_v1  ;;  %v1263_v56 = vpop.f32.mrf.mxu1 }
 0x100   : > { %2932 = vmatprep.subr.bf16.mxu1 %v3197_v1  ;;  %v2829_v58 = vpop.f32.mrf.mxu0 }
 0x101   : > { %v2869_v59 = vpop.f32.mrf.mxu1 }
 0x102   : > { %v1089_v60 = vpop.f32.mrf.mxu0 }
 0x103   : > { %v1501_v62 = vpack.c.bf16 %v1089_v60, %v1089_v60 }
 0x104   : > { %v2844_v63 = vpop.f32.mrf.mxu0  ;;  %v1373_v15 = vpop.f32.mrf.mxu1 }
 0x105   : > { %v1510_v0 = vsel %vm1505_vm2, %v1501_v62, 0  ;;  %v1748_v16 = vpack.c.bf16 %v1373_v15, %v1373_v15 }
 0x106   : > { %2923 = vmatmul.mubr.msk.bf16.vlgmr.msra.gmra.mxu1 %vm1505_vm2, %v1500_v61  ;;  %v1092_v2 = vpop.f32.mrf.mxu0  ;;  %2903 = vmatpush3.bf16.xpose.msra.mxu0 %v1510_v0  ;;  %v2884_v17 = vpop.f32.mrf.mxu1  ;;  %v3199_v61 = vmov 0  }
 0x107   : > { %2934 = vmatprep.mubr.msk.bf16.mxu1 %vm3198_vm0, %v3197_v1  ;;  %2914 = vmatprep.subr.bf16.mxu0 %v3197_v1  ;;  %v1802_v18 = vsel %vm1754_vm3, %v1748_v16, 0 }
 0x108   : > { %v2845_v4 = vpop.f32.mrf.mxu0  ;;  %v1376_v19 = vpop.f32.mrf.mxu1  ;;  %2933 = vmatpush3.bf16.msra.mxu1 %v1802_v18  ;;  %3062 = vset.pattern.permute.xlu0 %v3199_v61 }
 0x109   : > { %2944 = vmatprep.subr.bf16.mxu1 %v3197_v1 }
 0x10a   : > { %v1203_v5 = vpop.f32.mrf.mxu0  ;;  %v2885_v20 = vpop.f32.mrf.mxu1 }
 0x10b   : > { %v1503_v8 = vpack.c.bf16 %v1203_v5, %v1203_v5  ;;  %v802_v20 = vld [vmem:[%s782_s0] sm:$0xff] }
 0x10c   : > { %v2860_v9 = vpop.f32.mrf.mxu0  ;;  %v3557_v21 = vpop.f32.mrf.mxu1 }
 0x10d   : > { %v1602_v10 = vsel %vm1505_vm2, %v1503_v8, 0  ;;  %2905 = vmatmul.mubr.msk.bf16.vlgmr.msra.gmra.mxu0 %vm1505_vm2, %v1497_v7 }
 0x10e   : > { %v1206_v11 = vpop.f32.mrf.mxu0  ;;  %2915 = vmatpush3.bf16.xpose.msra.mxu0 %v1602_v10  ;;  %2916 = vmatprep.mubr.msk.bf16.mxu0 %vm3198_vm0, %v3197_v1  ;;  %v2900_v22 = vpop.f32.mrf.mxu1 }
 0x10f   : > { %2926 = vmatprep.subr.bf16.mxu0 %v3197_v1 }
 0x110   : > { %v2861_v13 = vpop.f32.mrf.mxu0  ;;  %v1490_v25 = vpop.f32.mrf.mxu1 }
 0x112   : > { %v1316_v23 = vpop.f32.mrf.mxu0  ;;  %v2901_v28 = vpop.f32.mrf.mxu1 }
 0x113   : > { %v1747_v24 = vpack.c.bf16 %v1316_v23, %v1316_v23 }
 0x114   : > { %v2876_v26 = vpop.f32.mrf.mxu0 }
 0x115   : > { %2917 = vmatmul.mubr.msk.bf16.vlgmr.msra.gmra.mxu0 %vm1505_vm2, %v1499_v14  ;;  %v1756_v27 = vsel %vm1754_vm3, %v1747_v24, 0 }
 0x116   : > { %2928 = vmatprep.mubr.msk.bf16.mxu0 %vm3198_vm0, %v3197_v1  ;;  %v1319_v29 = vpop.f32.mrf.mxu0  ;;  %2927 = vmatpush3.bf16.msra.mxu0 %v1756_v27 }
 0x117   : > { %2938 = vmatprep.subr.bf16.mxu0 %v3197_v1 }
 0x118   : > { %v2877_v30 = vpop.f32.mrf.mxu0 }
 0x11a   : > { %v3561_v31 = vpop.f32.mrf.mxu0 }
 0x11b   : > { %v1749_v29 = vpack.c.bf16 %v3561_v31, %v3561_v31 }
 0x11c   : > { %v2892_v32 = vpop.f32.mrf.mxu0 }
 0x11e   : > { %v1433_v33 = vpop.f32.mrf.mxu0 }
 0x120   : > { %v2893_v34 = vpop.f32.mrf.mxu0 }
 0x1be   : > { %v1592_v35 = vpop.f32.mrf.mxu1 }
 0x1bf   : > { %v1593_v48 = vadd.f32 %v1592_v35, %v801_v44  ;;  %v1750_v35 = vpack.c.bf16 %v3557_v21, %v3557_v21  ;;  %v1938_v21 = vld [vmem:[%s3798_s8] sm:$0xf] }
 0x1c0   : > { %v2912_v36 = vpop.f32.mrf.mxu1 }
 0x1c1   : > { %v1693_v52 = vsel %vm1505_vm2, %v1593_v48, -inf  ;;  %v1848_v36 = vsel %vm1754_vm3, %v1749_v29, 0 }
 0x1c2   : > { %v1595_v37 = vpop.f32.mrf.mxu1 }
 0x1c4   : > { %v2913_v38 = vpop.f32.mrf.mxu1 }
 0x1c6   : > { %v1684_v39 = vpop.f32.mrf.mxu1 }
 0x1c7   : > { %v1685_v56 = vadd.f32 %v1684_v39, %v801_v44 }
 0x1c8   : > { %v2924_v40 = vpop.f32.mrf.mxu1 }
 0x1c9   : > { %v1699_v60 = vsel %vm1505_vm2, %v1685_v56, -inf  ;;  %v1894_v40 = vsel %vm1754_vm3, %v1750_v35, 0 }
 0x1ca   : > { %v1687_v42 = vpop.f32.mrf.mxu1 }
 0x1cc   : > { %v2925_v43 = vpop.f32.mrf.mxu1 }
 0x1cd   : > { %v1546_v45 = vpop.f32.mrf.mxu0 }
 0x1ce   : > { %v1547_v46 = vadd.f32 %v1546_v45, %v801_v44  ;;  %v1943_v45 = vsel %vm1754_vm3, %v1938_v21, 0 }
 0x1cf   : > { %v2906_v47 = vpop.f32.mrf.mxu0 }
 0x1d0   : > { %v1690_v49 = vsel %vm1505_vm2, %v1547_v46, -inf }
 0x1d1   : > { %1691 = vmax.xlane.f32.xlu0 %v1690_v49  ;;  %v1549_v50 = vpop.f32.mrf.mxu0 }
 0x1d2   : > { %v2705_v50 = vld [vmem:[%s3798_s8 + $0x8] sm:$0xf] }
 0x1d3   : > { %v2907_v51 = vpop.f32.mrf.mxu0 }
 0x1d5   : > { %1694 = vmax.xlane.f32.xlu0 %v1693_v52  ;;  %v1638_v53 = vpop.f32.mrf.mxu0 }
 0x1d6   : > { %v1639_v54 = vadd.f32 %v1638_v53, %v801_v44  ;;  %v2049_v53 = vsel %vm1754_vm3, %v2705_v50, 0 }
 0x1d7   : > { %v2918_v55 = vpop.f32.mrf.mxu0 }
 0x1d8   : > { %v1696_v57 = vsel %vm1505_vm2, %v1639_v54, -inf  ;;  %v2707_v55 = vld [vmem:[%s3798_s8 + $0xc] sm:$0xf] }
 0x1d9   : > { %1697 = vmax.xlane.f32.xlu1 %v1696_v57  ;;  %v1641_v58 = vpop.f32.mrf.mxu0 }
 0x1db   : > { %v2919_v59 = vpop.f32.mrf.mxu0 }
 0x1dc   : > { %v2099_v59 = vsel %vm1754_vm3, %v2707_v55, 0 }
 0x1dd   : > { %1700 = vmax.xlane.f32.xlu1 %v1699_v60 }
 0x25a   : > { %v1692_v62 = vpop.xlane.xlu0 %1691 }
 0x25b   : > { %v1702_v63 = vsub.f32 %v1547_v46, %v1692_v62 }
 0x25d   : > { %v1706_v0 = vmul.f32 1.442695, %v1702_v63 }
 0x25e   : > { %v1695_v2 = vpop.xlane.xlu0 %1694 }
 0x25f   : > { %3097 = vpow2.f32 %v1706_v0  ;;  %v1703_v3 = vsub.f32 %v1593_v48, %v1695_v2  ;;  %v2703_v48 = vld [vmem:[%s3798_s8 + $0x4] sm:$0xf] }
 0x260   : > { %v1999_v49 = vsel %vm1754_vm3, %v2703_v48, 0 }
 0x261   : > { %v1708_v4 = vmul.f32 1.442695, %v1703_v3 }
 0x262   : > { %v1698_v5 = vpop.xlane.xlu1 %1697 }
 0x263   : > { %3099 = vpow2.f32 %v1708_v4  ;;  %v1704_v7 = vsub.f32 %v1639_v54, %v1698_v5 }
 0x265   : > { %v1710_v8 = vmul.f32 1.442695, %v1704_v7 }
 0x266   : > { %v1701_v9 = vpop.xlane.xlu1 %1700 }
 0x267   : > { %3101 = vpow2.f32 %v1710_v8  ;;  %v1705_v10 = vsub.f32 %v1685_v56, %v1701_v9 }
 0x269   : > { %v1712_v11 = vmul.f32 1.442695, %v1705_v10 }
 0x26b   : > { %3103 = vpow2.f32 %v1712_v11 }
 0x26c   : > { %v3098_v12 = vpop.eup %3097 }
 0x26d   : > { %v1714_v13 = vsel %vm1505_vm2, %v3098_v12, 0.0 }
 0x26e   : > { %1715 = vadd.xlane.f32.xlu0 %v1714_v13 }
 0x270   : > { %v3100_v14 = vpop.eup %3099 }
 0x271   : > { %v1717_v15 = vsel %vm1505_vm2, %v3100_v14, 0.0 }
 0x272   : > { %1718 = vadd.xlane.f32.xlu1 %v1717_v15 }
 0x274   : > { %v3102_v16 = vpop.eup %3101 }
 0x275   : > { %v1720_v17 = vsel %vm1505_vm2, %v3102_v16, 0.0 }
 0x276   : > { %1721 = vadd.xlane.f32.xlu0 %v1720_v17 }
 0x278   : > { %v3104_v18 = vpop.eup %3103 }
 0x279   : > { %v1723_v19 = vsel %vm1505_vm2, %v3104_v18, 0.0 }
 0x27a   : > { %1724 = vadd.xlane.f32.xlu1 %v1723_v19 }
 0x28c   : > { %1736 = vperm.xlu0 %3062, %v802_v20  }
 0x2f7   : > { %v1716_v22 = vpop.xlane.xlu0 %1715 }
 0x2f8   : > { %3105 = vrcp.f32 %v1716_v22 }
 0x2fb   : > { %v1719_v23 = vpop.xlane.xlu1 %1718 }
 0x2fc   : > { %3107 = vrcp.f32 %v1719_v23 }
 0x2ff   : > { %v1722_v24 = vpop.xlane.xlu0 %1721 }
 0x300   : > { %3109 = vrcp.f32 %v1722_v24 }
 0x303   : > { %v1725_v25 = vpop.xlane.xlu1 %1724 }
 0x304   : > { %3111 = vrcp.f32 %v1725_v25 }
 0x305   : > { %v3106_v26 = vpop.eup %3105 }
 0x306   : > { %v1730_v27 = vmul.f32 %v3106_v26, %v3098_v12 }
 0x307   : > { %v3582_v28 = vpop.permute.xlu0 %1736 }
 0x308   : > { %v1739_v30 = vmul.f32 %v3582_v28, %v1730_v27 }
 0x309   : > { %v3108_v32 = vpop.eup %3107 }
 0x30a   : > { %v1731_v33 = vmul.f32 %v3108_v32, %v3100_v14  ;;  %v1743_v34 = vpack.c.bf16 %v1739_v30, %v1739_v30  ;;  %2143 = vst.msk [vmem:[%s3587_s3] sm:$0xff] %vm1505_vm2, %v1739_v30  ;;  %v2702_v14 = vld [vmem:[%s3799_s9] ss:$0 sm:$0xff] }
 0x30c   : > { %v1740_v37 = vmul.f32 %v3582_v28, %v1731_v33  ;;  %2929 = vmatmul.mubr.msk.bf16.vlgmr.msra.gmra.mxu0 %vm1505_vm2, %v1743_v34 }
 0x30d   : > { %v3110_v31 = vpop.eup %3109  ;;  %2939 = vmatpush3.bf16.msra.mxu0 %v1848_v36  ;;  %2940 = vmatprep.mubr.msk.bf16.mxu0 %vm3198_vm0, %v3197_v1 }
 0x30e   : > { %v1732_v38 = vmul.f32 %v3110_v31, %v3102_v16  ;;  %v1744_v39 = vpack.c.bf16 %v1740_v37, %v1740_v37  ;;  %2144 = vst.msk [vmem:[%s3587_s3 + $0x8] sm:$0xff] %vm1505_vm2, %v1740_v37  ;;  %2950 = vmatprep.subr.bf16.mxu0 %v3197_v1 }
 0x310   : > { %v1741_v41 = vmul.f32 %v3582_v28, %v1732_v38  ;;  %2935 = vmatmul.mubr.msk.bf16.vlgmr.msra.gmra.mxu1 %vm1505_vm2, %v1744_v39 }
 0x311   : > { %v3112_v42 = vpop.eup %3111  ;;  %2945 = vmatpush3.bf16.msra.mxu1 %v1894_v40  ;;  %2946 = vmatprep.mubr.msk.bf16.mxu1 %vm3198_vm0, %v3197_v1 }
 0x312   : > { %v1733_v43 = vmul.f32 %v3112_v42, %v3104_v18  ;;  %v1745_v44 = vpack.c.bf16 %v1741_v41, %v1741_v41  ;;  %2145 = vst.msk [vmem:[%s3587_s3 + $0x10] sm:$0xff] %vm1505_vm2, %v1741_v41  ;;  %2956 = vmatprep.subr.bf16.mxu1 %v3197_v1 }
 0x314   : > { %v1742_v46 = vmul.f32 %v3582_v28, %v1733_v43  ;;  %2941 = vmatmul.mubr.msk.bf16.vlgmr.msra.gmra.mxu0 %vm1505_vm2, %v1745_v44  ;;  %v2709_v44 = vld [vmem:[%s3800_s10] ss:$0 sm:$0xff] }
 0x315   : > { %2951 = vmatpush3.bf16.msra.mxu0 %v1943_v45  ;;  %2952 = vmatprep.mubr.msk.bf16.mxu0 %vm3198_vm0, %v3197_v1 }
 0x316   : > { %v1746_v47 = vpack.c.bf16 %v1742_v46, %v1742_v46  ;;  %2146 = vst.msk [vmem:[%s3587_s3 + $0x18] sm:$0xff] %vm1505_vm2, %v1742_v46  ;;  %2962 = vmatprep.subr.bf16.mxu0 %v3197_v1  ;;  %v2710_v46 = vld [vmem:[%s3801_s11] ss:$0 sm:$0xff]  ;;  %s3123_s3 = sshll.u32 %s3200_s27, 4  ;;  %s3124_s3 = int_to_ptr.vmem [resolvable:$false] %s3123_s3 }
 0x317   : > { %p3126_p1 = scmp.lt.s32.totalorder %s3730_s24, %s3124_s3 }
 0x318   : > { %2947 = vmatmul.mubr.msk.bf16.vlgmr.msra.gmra.mxu1 %vm1505_vm2, %v1746_v47  ;;  %v2177_v47 = vld [vmem:[%s789_s28] sm:$0xff]  ;;  %s3125_s28 = scalar_lea.vmem %s3124_s3, 1024 }
 0x319   : > { %2958 = vmatprep.mubr.msk.bf16.mxu1 %vm3198_vm0, %v3197_v1  ;;  %2957 = vmatpush3.bf16.msra.mxu1 %v1999_v49  ;;  %v2178_v50 = vmul.f32 %v2177_v47, %v3582_v28  ;;  %p3127_p2 = scmp.lt.s32.totalorder %s3125_s28, %s3119_s26 }
 0x31a   : > { %2968 = vmatprep.subr.bf16.mxu1 %v3197_v1 }
 0x31b   : > { %p3128_p3 = por %p3127_p2, %p3126_p1 }
 0x31d   : > { %p3129_p5 = pnand %p3128_p3, %p3122_p0 }
 0x3cc   : > { %v1792_v51 = vpop.f32.mrf.mxu0 }
 0x3cd   : > { %v1937_v52 = vpack.c.bf16 %v1792_v51, %v1792_v51 }
 0x3ce   : > { %v2930_v54 = vpop.f32.mrf.mxu0 }
 0x3cf   : > { %2953 = vmatmul.mubr.msk.bf16.vlgmr.msra.gmra.mxu0 %vm1505_vm2, %v1937_v52 }
 0x3d0   : > { %v1795_v56 = vpop.f32.mrf.mxu0  ;;  %v1838_v57 = vpop.f32.mrf.mxu1  ;;  %2963 = vmatpush3.bf16.msra.mxu0 %v2049_v53  ;;  %2964 = vmatprep.mubr.msk.bf16.mxu0 %vm3198_vm0, %v3197_v1 }
 0x3d1   : > { %v1992_v58 = vpack.c.bf16 %v1838_v57, %v1838_v57  ;;  %2974 = vmatprep.subr.bf16.mxu0 %v3197_v1 }
 0x3d2   : > { %v2931_v60 = vpop.f32.mrf.mxu0  ;;  %v2936_v61 = vpop.f32.mrf.mxu1 }
 0x3d3   : > { %2959 = vmatmul.mubr.msk.bf16.vlgmr.msra.gmra.mxu1 %vm1505_vm2, %v1992_v58  ;;  %v3087_v58 = vld [vmem:[%s3804_s14 + $0x8] sm:$0xff]   ;;  %v3089_v60 = vld [vmem:[%s3806_s16 + $0x38] sm:$0xff]   ;;  %v3090_v61 = vld [vmem:[%s3806_s16 + $0x30] sm:$0xff]  }
 0x3d4   : > { %v1841_v62 = vpop.f32.mrf.mxu1  ;;  %v1884_v63 = vpop.f32.mrf.mxu0  ;;  %2969 = vmatpush3.bf16.msra.mxu1 %v2099_v59  ;;  %2970 = vmatprep.mubr.msk.bf16.mxu1 %vm3198_vm0, %v3197_v1  ;;  %v3088_v59 = vld [vmem:[%s3804_s14] sm:$0xff]  }
 0x3d5   : > { %v2042_v0 = vpack.c.bf16 %v1884_v63, %v1884_v63  ;;  %2982 = vmatprep.subr.bf16.mxu1 %v3197_v1  ;;  %v3091_v62 = vld [vmem:[%s3806_s16 + $0x28] sm:$0xff]   ;;  %v3092_v63 = vld [vmem:[%s3806_s16 + $0x20] sm:$0xff]  }
 0x3d6   : > { %v2937_v2 = vpop.f32.mrf.mxu1  ;;  %v2942_v3 = vpop.f32.mrf.mxu0 }
 0x3d7   : > { %2965 = vmatmul.mubr.msk.bf16.vlgmr.msra.gmra.mxu0 %vm1505_vm2, %v2042_v0  ;;  %v3093_v0 = vld [vmem:[%s3806_s16 + $0x18] sm:$0xff]   ;;  %v3094_v2 = vld [vmem:[%s3806_s16 + $0x10] sm:$0xff]  }
 0x3d8   : > { %v1887_v4 = vpop.f32.mrf.mxu0  ;;  %v1930_v5 = vpop.f32.mrf.mxu1  ;;  %2978 = vmatprep.mubr.msk.bf16.mxu0 %vm3198_vm0, %v3197_v1  ;;  %2975 = vmatpush3.bf16.msra.mxu0 %v3087_v58 }
 0x3d9   : > { %v2092_v7 = vpack.c.bf16 %v1930_v5, %v1930_v5  ;;  %2976 = vmatprep.subr.bf16.mxu0 %v3197_v1 }
 0x3da   : > { %v2943_v8 = vpop.f32.mrf.mxu0  ;;  %v2948_v9 = vpop.f32.mrf.mxu1 }
 0x3db   : > { %2971 = vmatmul.mubr.msk.bf16.vlgmr.msra.gmra.mxu1 %vm1505_vm2, %v2092_v7  ;;  %v2711_v8 = vld [vmem:[%s3802_s12] ss:$0 sm:$0xff] }
 0x3dc   : > { %v1933_v10 = vpop.f32.mrf.mxu1  ;;  %2998 = vmatprep.mubr.msk.bf16.mxu1 %vm3198_vm0, %v3197_v1  ;;  %2977 = vmatpush3.bf16.msra.mxu0 %v3088_v59 }
 0x3dd   : > { %2983 = vmatpush3.bf16.msra.mxu1 %v3089_v60  ;;  %v2712_v10 = vld [vmem:[%s3803_s13] ss:$0 sm:$0xff] }
 0x3de   : > { %v2949_v11 = vpop.f32.mrf.mxu1  ;;  %2984 = vmatprep.subr.bf16.mxu1 %v3197_v1 }
 0x3e1   : > { %2985 = vmatpush3.bf16.msra.mxu1 %v3090_v61 }
 0x3e2   : > { %2986 = vmatprep.subr.bf16.mxu1 %v3197_v1 }
 0x3e5   : > { %2987 = vmatpush3.bf16.msra.mxu1 %v3091_v62 }
 0x3e6   : > { %2988 = vmatprep.subr.bf16.mxu1 %v3197_v1 }
 0x3e9   : > { %2989 = vmatpush3.bf16.msra.mxu1 %v3092_v63 }
 0x3ea   : > { %2990 = vmatprep.subr.bf16.mxu1 %v3197_v1 }
 0x3ed   : > { %2991 = vmatpush3.bf16.msra.mxu1 %v3093_v0 }
 0x3ee   : > { %2992 = vmatprep.subr.bf16.mxu1 %v3197_v1 }
 0x3f1   : > { %2993 = vmatpush3.bf16.msra.mxu1 %v3094_v2 }
 0x3f2   : > { %2994 = vmatprep.subr.bf16.mxu1 %v3197_v1 }
 0x48f   : > { %v1979_v12 = vpop.f32.mrf.mxu0 }
 0x490   : > { %v1991_v19 = vadd.f32 %v2702_v14, %v1979_v12  ;;  %v3095_v14 = vld [vmem:[%s3806_s16 + $0x8] sm:$0xff]  }
 0x491   : > { %v2954_v13 = vpop.f32.mrf.mxu0  ;;  %2995 = vmatpush3.bf16.msra.mxu1 %v3095_v14 }
 0x492   : > { %2996 = vmatprep.subr.bf16.mxu1 %v3197_v1  ;;  %v2717_v1 = vld [vmem:[%s3807_s17] ss:$0 sm:$0xff] }
 0x493   : > { %v1982_v15 = vpop.f32.mrf.mxu0  ;;  %v2035_v16 = vpop.f32.mrf.mxu1 }
 0x494   : > { %v2041_v23 = vadd.f32 %v2035_v16, %v1991_v19  ;;  %v3096_v15 = vld [vmem:[%s3806_s16] sm:$0xff]  }
 0x495   : > { %v2955_v17 = vpop.f32.mrf.mxu0  ;;  %v2960_v18 = vpop.f32.mrf.mxu1  ;;  %2997 = vmatpush3.bf16.msra.mxu1 %v3096_v15  ;;  %v2713_v16 = vld [vmem:[%s3805_s15] ss:$0 sm:$0xff] }
 0x497   : > { %v2038_v20 = vpop.f32.mrf.mxu1  ;;  %v2085_v22 = vpop.f32.mrf.mxu0 }
 0x498   : > { %v2091_v26 = vadd.f32 %v2085_v22, %v2041_v23 }
 0x499   : > { %v2961_v24 = vpop.f32.mrf.mxu1  ;;  %v2966_v25 = vpop.f32.mrf.mxu0 }
 0x49b   : > { %v2088_v27 = vpop.f32.mrf.mxu0  ;;  %v2135_v29 = vpop.f32.mrf.mxu1 }
 0x49c   : > { %v2141_v30 = vadd.f32 %v2135_v29, %v2091_v26 }
 0x49d   : > { %v2967_v32 = vpop.f32.mrf.mxu0  ;;  %v2972_v33 = vpop.f32.mrf.mxu1 }
 0x49e   : > { %v2142_v34 = vadd.f32 %v2141_v30, %v3403_v6 }
 0x49f   : > { %v2138_v35 = vpop.f32.mrf.mxu1 }
 0x4a0   : > { %v2149_v36 = vsel %vm821_vm1, %v2142_v34, 0.0 }
 0x4a1   : > { %v2973_v37 = vpop.f32.mrf.mxu1  ;;  %2150 = vadd.xlane.f32.xlu1 %v2149_v36 }
 0x52a   : > { %v2151_v31 = vpop.xlane.xlu1 %2150 }
 0x52b   : > { %v2153_v38 = vmul.f32 0.03125, %v2151_v31 }
 0x52d   : > { %v2154_v39 = vsub.f32 %v2142_v34, %v2153_v38 }
 0x52f   : > { %v2155_v21 = vmul.f32 %v2154_v39, %v2154_v39 }
 0x531   : > { %v2156_v40 = vsel %vm821_vm1, %v2155_v21, 0.0 }
 0x532   : > { %2157 = vadd.xlane.f32.xlu1 %v2156_v40 }
 0x5bb   : > { %v2158_v41 = vpop.xlane.xlu1 %2157 }
 0x5bc   : > { %v2159_v42 = vmul.f32 0.03125, %v2158_v41 }
 0x5be   : > { %v2160_v43 = vadd.f32 1e-05, %v2159_v42 }
 0x5c0   : > { %3113 = vrsqrt.f32 %v2160_v43 }
 0x5cd   : > { %v3114_v6 = vpop.eup %3113 }
 0x5ce   : > { %v2162_v45 = vmul.f32 %v3114_v6, %v2154_v39 }
 0x5d0   : > { %v2169_v48 = vmul.f32 %v2709_v44, %v2162_v45 }
 0x5d2   : > { %v2176_v49 = vadd.f32 %v2710_v46, %v2169_v48 }
 0x5d4   : > { %v2179_v51 = vadd.f32 %v2178_v50, %v2176_v49 }
 0x5d6   : > { %v2182_v52 = vsel %vm821_vm1, %v2179_v51, 0.0 }
 0x5d7   : > { %2183 = vadd.xlane.f32.xlu1 %v2182_v52 }
 0x660   : > { %v2184_v53 = vpop.xlane.xlu1 %2183 }
 0x661   : > { %v2185_v54 = vmul.f32 0.03125, %v2184_v53 }
 0x663   : > { %v2186_v55 = vsub.f32 %v2179_v51, %v2185_v54 }
 0x665   : > { %v2187_v56 = vmul.f32 %v2186_v55, %v2186_v55 }
 0x667   : > { %v2188_v57 = vsel %vm821_vm1, %v2187_v56, 0.0 }
 0x668   : > { %2189 = vadd.xlane.f32.xlu1 %v2188_v57 }
 0x6f1   : > { %v2190_v3 = vpop.xlane.xlu1 %2189 }
 0x6f2   : > { %v2191_v4 = vmul.f32 0.03125, %v2190_v3 }
 0x6f4   : > { %v2192_v5 = vadd.f32 1e-05, %v2191_v4 }
 0x6f6   : > { %3115 = vrsqrt.f32 %v2192_v5 }
 0x703   : > { %v3116_v7 = vpop.eup %3115 }
 0x704   : > { %v2194_v9 = vmul.f32 %v3116_v7, %v2186_v55 }
 0x706   : > { %v2201_v11 = vmul.f32 %v2711_v8, %v2194_v9 }
 0x708   : > { %v2208_v12 = vadd.f32 %v2712_v10, %v2201_v11 }
 0x70a   : > { %v2209_v13 = vpack.c.bf16 %v2208_v12, %v2208_v12 }
 0x70c   : > { %2979 = vmatmul.mubr.msk.bf16.vlgmr.msra.gmra.mxu0 %vm821_vm1, %v2209_v13 }
 0x7cc   : > { %v2270_v17 = vpop.f32.mrf.mxu0 }
 0x7cd   : > { %v2271_v18 = vadd.f32 %v2713_v16, %v2270_v17 }
 0x7ce   : > { %v2980_v19 = vpop.f32.mrf.mxu0 }
 0x7cf   : > { %v2276_v20 = vmax.f32 %v2271_v18, 0.0 }
 0x7d0   : > { %v2273_v22 = vpop.f32.mrf.mxu0 }
 0x7d1   : > { %v2277_v23 = vpack.c.bf16 %v2276_v20, %v2276_v20 }
 0x7d2   : > { %v2981_v24 = vpop.f32.mrf.mxu0 }
 0x7d3   : > { %2999 = vmatmul.mubr.bf16.vlgmr.msra.gmra.mxu1 %v2277_v23 }
 0x893   : > { %v2383_v25 = vpop.f32.mrf.mxu1 }
 0x894   : > { %v2384_v26 = vadd.f32 %v2717_v1, %v2383_v25 }
 0x895   : > { %v3000_v27 = vpop.f32.mrf.mxu1 }
 0x896   : > { %v2389_v29 = vmul.f32 %v2384_v26, %v3582_v28 }
 0x897   : > { %v2386_v30 = vpop.f32.mrf.mxu1 }
 0x898   : > { %v2390_v32 = vadd.f32 %v2389_v29, %v2208_v12 }
 0x899   : > { %v3001_v33 = vpop.f32.mrf.mxu1 }
 0x89a   : > { %v2393_v34 = vsel %vm821_vm1, %v2390_v32, 0.0 }
 0x89b   : > { %2394 = vadd.xlane.f32.xlu1 %v2393_v34 }
 0x924   : > { %v2395_v35 = vpop.xlane.xlu1 %2394 }
 0x925   : > { %v2396_v36 = vmul.f32 0.03125, %v2395_v35 }
 0x927   : > { %v2397_v37 = vsub.f32 %v2390_v32, %v2396_v36 }
 0x929   : > { %v2398_v31 = vmul.f32 %v2397_v37, %v2397_v37 }
 0x92b   : > { %v2399_v38 = vsel %vm821_vm1, %v2398_v31, 0.0 }
 0x92c   : > { %2400 = vadd.xlane.f32.xlu1 %v2399_v38 }
 0x92d   : > { %3132 = shalt.err (!%p3129_p5)
}
 0x92e   : > { %s3133_s22 = scalar_lea.hbm %s3728_s2, 512  ;;  %s3137_s1 = scalar_lea.hbm %s3811_s21, 1024 }
 0x92f   : > { %p3134_p6 = scmp.ne.s32.totalorder %s3728_s2, %s3133_s22  ;;  %p3138_p10 = scmp.lt.s32.totalorder %s3728_s2, %s3811_s21 }
 0x930   : > { %p3139_p11 = scmp.lt.s32.totalorder %s3137_s1, %s3133_s22 }
 0x931   : > { %p3135_p7 = pnand %p3134_p6, %p3353_p4 }
 0x932   : > { %p3140_p12 = por %p3139_p11, %p3138_p10 }
 0x933   : > { %p3136_p9 = pneg %p3135_p7 }
 0x935   : > { %p3141_p13 = pnand %p3140_p12, %p3136_p9 }
 0x937   : > { %3144 = shalt.err (!%p3141_p13)
}
 0x938   : > { %s3201_s26 = smov 128   ;;  %s3202_s27 = smov 8   ;;  %v2726_v41 = vld [vmem:[%s3808_s18] ss:$0 sm:$0xff] }
 0x939   : > { %3002 = dma.vmem_to_hbm [thread:$0]  (%p3353_p4), %s3730_s24, 512, %s3728_s2, %s3734_s19, %s3201_s26, %s3201_s26, %s3202_s27  }
 0x93a   : > { %s3844_s29 = sld [smem:[#allocation18_spill]] }
 0x93b   : > { %s3845_s30 = sld [smem:[#allocation19_spill]] }
 0x940   : > { %v2727_v43 = vld [vmem:[%s3844_s29] ss:$0 sm:$0xff] }
 0x941   : > { %s796_s5 = scalar_lea.vmem %s3845_s30, %s3393_s4 }
 0x9b5   : > { %v2401_v28 = vpop.xlane.xlu1 %2400 }
 0x9b6   : > { %v2402_v39 = vmul.f32 0.03125, %v2401_v28 }
 0x9b8   : > { %v2403_v21 = vadd.f32 1e-05, %v2402_v39 }
 0x9ba   : > { %3117 = vrsqrt.f32 %v2403_v21 }
 0x9c7   : > { %v3118_v40 = vpop.eup %3117 }
 0x9c8   : > { %v2405_v42 = vmul.f32 %v3118_v40, %v2397_v37 }
 0x9ca   : > { %v2412_v6 = vmul.f32 %v2726_v41, %v2405_v42 }
 0x9cc   : > { %v2419_v44 = vadd.f32 %v2727_v43, %v2412_v6 }
 0x9ce   : > { %2420 = vst.msk [vmem:[%s796_s5] sm:$0xff] %vm821_vm1, %v2419_v44 }
 0x9cf PF: > { %s3846_s24 = sld [smem:[#allocation8_spill]] }
 0x9d0   : > { %s3847_s2 = sld [smem:[#allocation5_spill]] }
 0x9d5   : > { %p3008_p4 = scmp.ge.s32.totalorder %s3846_s24, 2 }
 0x9d6   : > { %s2471_s26 = sand.u32 1, %s3847_s2  }
 0x9d7   : > { %p3005_p0 = pnand %p3008_p4, %p3360_p8  ;;  %s2472_s27 = scalar_lea.sflag [#allocation3], %s2471_s26 }
 0x9d9   : > { %p3006_p1 = pneg %p3005_p0 }
 0x9db   : > { %3170 = dma.done.wait (%p3006_p1), %s2472_s27, 512  }
 0x9dc   : > { %3172 = vsyncadd (%p3006_p1), %s2472_s27, 4294966784  ;;  %s35_s28 = sadd.s32 1, %s3846_s24   ;;  %s3849_s4 = sld [smem:[#allocation6_spill]] }
 0x9dd   : > { %p32_p2 = scmp.ge.s32.totalorder %s35_s28, 4   ;;  %s3850_s26 = sld [smem:[#allocation11_spill]] }
 0x9de   : > { %s3851_s27 = sld [smem:[#allocation7_spill]]  ;;  %s3853_s2 = smov %s3179_s25 }
 0x9df   : > { %s3852_s3 = sld [smem:[#allocation9_spill]]  ;;  %34 = sbr.rel (!%p32_p2) target bundleno = 13 (0xd), region = 171 }
 0x9e2   : > { %s3854_s25 = smov %s3849_s4 }
 0x9e4   :  { %2477 = vsyncpa [#allocation3], 1 }
 0x9e5   :  { %2479 = vsyncpa [#allocation3 + $0x1], 1 }

</bundles_post_ra>
